<compile_context>
chip_gen: v5e
topology: v5e:2x2
jax: 0.10.0
libtpu: 0.0.40
codegen_flags: <defaults>
</compile_context>

<pallas_src>
import functools

import numpy as np
import jax
import jax.numpy as jnp
from jax import lax
from jax.experimental import pallas as pl
from jax.experimental.pallas import tpu as pltpu


# ----------------------------------------------------------------------------
# Trace-time helpers used inside the kernel (all static Python control flow).
# ----------------------------------------------------------------------------
def _reflect_index(rp, p, H):
    """PyTorch 'reflect' (edge not repeated) row index for padded row rp."""
    rr = rp - p
    if rr < 0:
        return -rr
    if rr >= H:
        return 2 * (H - 1) - rr
    return rr


def _leaky(v, slope):
    return jnp.where(v > 0, v, slope * v)


def _conv_from_flat(flat, Hp, Wp, K, wmat, bias, slope):
    """VALID KxK conv on a row-major flattened padded image.

    flat : (Cin, Hp*Wp) f32 (row-major).
    wmat : (Cout, K*K*Cin), columns ordered (dy, dx, ci).
    bias : (Cout, 1).
    Returns the 'wide' output (Cout, Ho*Wp); only cols [0, Wo) of each row are
    valid (Ho = Hp-K+1, Wo = Wp-K+1) — callers slice the valid part out.
    """
    Cin = flat.shape[0]
    Ho = Hp - K + 1
    P = Ho * Wp
    need = (K - 1) * (Wp + 1) + P          # end of the last tap slice
    if flat.shape[1] < need:
        flat = jnp.concatenate(
            [flat, jnp.zeros((Cin, need - flat.shape[1]), jnp.float32)], axis=1)
    # im2col: each of the K*K taps is a contiguous lane slice of the flat image.
    taps = [flat[:, dy * Wp + dx: dy * Wp + dx + P]
            for dy in range(K) for dx in range(K)]            # K*K x (Cin, P)
    patches = jnp.concatenate(taps, axis=0)                   # (K*K*Cin, P)
    out = jnp.dot(wmat, patches, preferred_element_type=jnp.float32) + bias
    if slope is not None:
        out = _leaky(out, slope)
    return out


def _build_padded_flat(get_row, H, W, p):
    """Row-major flattened (H+2p)x(W+2p) reflect-padded image built from a
    per-row getter returning (C, W). Pure static slice/concat ops."""
    row_cache = {}

    def row(r):
        if r not in row_cache:
            row_cache[r] = get_row(r)
        return row_cache[r]

    rows = []
    for rp in range(H + 2 * p):
        src = row(_reflect_index(rp, p, H))                   # (C, W)
        if p > 0:
            left = [src[:, p - j: p - j + 1] for j in range(p)]
            right = [src[:, W - 2 - j: W - 1 - j] for j in range(p)]
            rows.append(jnp.concatenate(left + [src] + right, axis=1))
        else:
            rows.append(src)
    return jnp.concatenate(rows, axis=1)                      # (C, (H+2p)*(W+2p))


def _build_dilated_flat(x, K):
    """Stride-2 zero-inserted + (K-1)-zero-padded x, flattened row-major.
    x: (Cin, H0, W0) -> (Cin, Hd*Wd), Hd = Wd = 2*H0-1+2*(K-1) (square input).
    The column interleave is done with ONE 0/1 placement matmul for all rows,
    so no scatter / strided store is needed and nothing round-trips to HBM."""
    Cin, H0, W0 = x.shape
    pad = K - 1
    Wd = 2 * W0 - 1 + 2 * pad
    Hd = 2 * H0 - 1 + 2 * pad
    jj = lax.broadcasted_iota(jnp.int32, (W0, 2 * W0 - 1), 0)
    nn = lax.broadcasted_iota(jnp.int32, (W0, 2 * W0 - 1), 1)
    place = (nn == 2 * jj).astype(jnp.float32)                # (W0, 2*W0-1)
    # One matmul for every (c, h) row at once.
    inter_all = jnp.dot(x.reshape(Cin * H0, W0), place,
                        preferred_element_type=jnp.float32)   # (Cin*H0, 2*W0-1)
    inter_all = inter_all.reshape(Cin, H0, 2 * W0 - 1)
    zrow = jnp.zeros((Cin, Wd), jnp.float32)
    zpad = jnp.zeros((Cin, pad), jnp.float32)
    rows = []
    for m in range(Hd):
        t = m - pad
        if t >= 0 and t % 2 == 0 and t // 2 < H0:
            rows.append(jnp.concatenate([zpad, inter_all[:, t // 2, :], zpad],
                                        axis=1))
        else:
            rows.append(zrow)
    return jnp.concatenate(rows, axis=1), Hd, Wd


# ----------------------------------------------------------------------------
# The fused kernel: one batch image per grid step, everything VMEM-resident.
# ----------------------------------------------------------------------------
def _unet_up_block_kernel(x_ref, bridge_ref, wu_ref, bu_ref, w1_ref, b1_ref,
                          w2_ref, b2_ref, o_ref, *, K, pad, slope,
                          crop_dy, crop_dx):
    # ---- 1) up = ConvTranspose2d(x, stride=2)  (bias, no activation) --------
    x = x_ref[0]                                              # (Cin, H0, W0)
    dil_flat, Hd, Wd = _build_dilated_flat(x, K)
    up_wide = _conv_from_flat(dil_flat, Hd, Wd, K, wu_ref[...], bu_ref[...], None)
    Hu, Wu = Hd - K + 1, Wd - K + 1                           # up spatial size

    # ---- 2) cat([up, center_crop(bridge)]) -> reflect pad -> conv1 + leaky --
    br = bridge_ref[0]                                        # (Cb, Hb, Wb) in vregs

    def c1_row(r):
        up_row = up_wide[:, r * Wd: r * Wd + Wu]                    # (Cout, Wu)
        br_row = br[:, crop_dy + r, crop_dx: crop_dx + Wu]          # (Cb, Wu)
        return jnp.concatenate([up_row, br_row], axis=0)

    flat1 = _build_padded_flat(c1_row, Hu, Wu, pad)
    Hp1, Wp1 = Hu + 2 * pad, Wu + 2 * pad
    c1_wide = _conv_from_flat(flat1, Hp1, Wp1, K, w1_ref[...], b1_ref[...], slope)
    H1, W1 = Hp1 - K + 1, Wp1 - K + 1

    # ---- 3) reflect pad -> conv2 + leaky -------------------------------------
    def c2_row(r):
        return c1_wide[:, r * Wp1: r * Wp1 + W1]

    flat2 = _build_padded_flat(c2_row, H1, W1, pad)
    Hp2, Wp2 = H1 + 2 * pad, W1 + 2 * pad
    c2_wide = _conv_from_flat(flat2, Hp2, Wp2, K, w2_ref[...], b2_ref[...], slope)
    H2, W2 = Hp2 - K + 1, Wp2 - K + 1

    # ---- 4) compact (drop wide garbage cols) and store lane-dense ------------
    out = jnp.concatenate(
        [c2_wide[:, r * Wp2: r * Wp2 + W2] for r in range(H2)], axis=1)  # (Cout, H2*W2)
    o_ref[0, :, :] = out.astype(o_ref.dtype)


# ----------------------------------------------------------------------------
# Wrapper: weight packing + pallas_call.
# ----------------------------------------------------------------------------
def _pack_oihw(w):
    # (Cout, Cin, K, K) -> (Cout, K*K*Cin) with column order (dy, dx, ci)
    Cout, Cin, K, _ = w.shape
    return jnp.transpose(w, (0, 2, 3, 1)).reshape(Cout, K * K * Cin).astype(jnp.float32)


def unet_up_block_pallas(params, x, bridge, *, padding=1, slope=0.1):
    """Fused forward of UNetUpBlock(up_mode='upconv'). NCHW in / NCHW out."""
    B, Cin, H0, W0 = x.shape
    up_w = params["up_w"]                   # ConvTranspose layout: (Cin, Cout, K, K)
    K = up_w.shape[-1]
    Cout = up_w.shape[1]
    Cb = bridge.shape[1]
    Hu, Wu = (H0 - 1) * 2 + K, (W0 - 1) * 2 + K
    crop_dy = (bridge.shape[2] - Hu) // 2
    crop_dx = (bridge.shape[3] - Wu) // 2
    H1, W1 = Hu + 2 * padding - K + 1, Wu + 2 * padding - K + 1
    H2, W2 = H1 + 2 * padding - K + 1, W1 + 2 * padding - K + 1

    # ConvTranspose2d == VALID conv (on the zero-dilated, (K-1)-padded input)
    # with the spatially flipped, (in,out)-transposed weight.
    w_eq = jnp.transpose(up_w[:, :, ::-1, ::-1], (1, 0, 2, 3))   # (Cout, Cin, K, K)
    wu = _pack_oihw(w_eq)
    w1 = _pack_oihw(params["c1_w"])
    w2 = _pack_oihw(params["c2_w"])
    bu = params["up_b"].reshape(Cout, 1).astype(jnp.float32)
    b1 = params["c1_b"].reshape(Cout, 1).astype(jnp.float32)
    b2 = params["c2_b"].reshape(Cout, 1).astype(jnp.float32)

    kernel = functools.partial(_unet_up_block_kernel, K=K, pad=padding,
                               slope=slope, crop_dy=crop_dy, crop_dx=crop_dx)

    out_flat = pl.pallas_call(
        kernel,
        out_shape=jax.ShapeDtypeStruct((B, Cout, H2 * W2), jnp.float32),
        grid=(B,),
        in_specs=[
            pl.BlockSpec((1, Cin, H0, W0), lambda n: (n, 0, 0, 0)),
            pl.BlockSpec((1, Cb) + tuple(bridge.shape[2:]), lambda n: (n, 0, 0, 0)),
            pl.BlockSpec(tuple(wu.shape), lambda n: (0, 0)),
            pl.BlockSpec(tuple(bu.shape), lambda n: (0, 0)),
            pl.BlockSpec(tuple(w1.shape), lambda n: (0, 0)),
            pl.BlockSpec(tuple(b1.shape), lambda n: (0, 0)),
            pl.BlockSpec(tuple(w2.shape), lambda n: (0, 0)),
            pl.BlockSpec(tuple(b2.shape), lambda n: (0, 0)),
        ],
        out_specs=pl.BlockSpec((1, Cout, H2 * W2), lambda n: (n, 0, 0)),
        compiler_params=pltpu.CompilerParams(dimension_semantics=("parallel",)),
    )(x.astype(jnp.float32), bridge.astype(jnp.float32), wu, bu, w1, b1, w2, b2)
    return out_flat.reshape(B, Cout, H2, W2)


# ----------------------------------------------------------------------------
# Pure-JAX reference (correctness check only).
# ----------------------------------------------------------------------------
def unet_up_block_ref(params, x, bridge, *, padding=1, slope=0.1):
    K = params["up_w"].shape[-1]
    N, Cin, H0, W0 = x.shape
    xd = jnp.zeros((N, Cin, 2 * H0 - 1, 2 * W0 - 1), x.dtype)
    xd = xd.at[:, :, ::2, ::2].set(x)
    xp = jnp.pad(xd, ((0, 0), (0, 0), (K - 1, K - 1), (K - 1, K - 1)))
    w_eq = jnp.transpose(params["up_w"][:, :, ::-1, ::-1], (1, 0, 2, 3))
    up = lax.conv_general_dilated(
        xp, w_eq, (1, 1), "VALID", dimension_numbers=("NCHW", "OIHW", "NCHW"),
        precision=lax.Precision.HIGHEST)
    up = up + params["up_b"][None, :, None, None]
    Hu, Wu = up.shape[2], up.shape[3]
    dy = (bridge.shape[2] - Hu) // 2
    dx = (bridge.shape[3] - Wu) // 2
    out = jnp.concatenate([up, bridge[:, :, dy:dy + Hu, dx:dx + Wu]], axis=1)

    def conv(o, w, b):
        o = jnp.pad(o, ((0, 0), (0, 0), (padding, padding), (padding, padding)),
                    mode="reflect")
        o = lax.conv_general_dilated(
            o, w, (1, 1), "VALID", dimension_numbers=("NCHW", "OIHW", "NCHW"),
            precision=lax.Precision.HIGHEST)
        o = o + b[None, :, None, None]
        return jnp.where(o > 0, o, slope * o)

    out = conv(out, params["c1_w"], params["c1_b"])
    out = conv(out, params["c2_w"], params["c2_b"])
    return out


# ----------------------------------------------------------------------------
if __name__ == "__main__":
    in_size, out_size, ksz, padding = 8, 4, 3, 1
    B, H, W = 2, 8, 8
    bridge_ch = in_size - out_size      # cat(up, crop) must give in_size channels
    bridge_hw = 20                      # >= 2H+1 = 17, exercises center_crop

    key = jax.random.PRNGKey(0)
    ks = jax.random.split(key, 8)

    def init(k, shape, fan_in):
        return (jax.random.normal(k, shape, jnp.float32) / np.sqrt(fan_in)).astype(jnp.float32)

    params = {
        # ConvTranspose2d(in_size, out_size, 3, stride=2): weight is (in, out, k, k)
        "up_w": init(ks[0], (in_size, out_size, ksz, ksz), in_size * ksz * ksz),
        "up_b": init(ks[1], (out_size,), in_size * ksz * ksz),
        # Conv2d(in_size, out_size, 3, padding=1, padding_mode='reflect')
        "c1_w": init(ks[2], (out_size, in_size, ksz, ksz), in_size * ksz * ksz),
        "c1_b": init(ks[3], (out_size,), in_size * ksz * ksz),
        # Conv2d(out_size, out_size, 3, padding=1, padding_mode='reflect')
        "c2_w": init(ks[4], (out_size, out_size, ksz, ksz), out_size * ksz * ksz),
        "c2_b": init(ks[5], (out_size,), out_size * ksz * ksz),
    }

    x = jax.random.normal(ks[6], (B, in_size, H, W), jnp.float32)
    bridge = jax.random.normal(ks[7], (B, bridge_ch, bridge_hw, bridge_hw), jnp.float32)

    out = unet_up_block_pallas(params, x, bridge, padding=padding)
    out = jax.block_until_ready(out)

    ref = unet_up_block_ref(params, x, bridge, padding=padding)
    np.testing.assert_allclose(np.asarray(out), np.asarray(ref), rtol=1e-2, atol=1e-2)
    assert out.shape == (B, out_size, 2 * H + 1, 2 * W + 1)

    print("KERNEL_OK")
</pallas_src>

<mosaic_0001>
module attributes {stable_mosaic.version = 11 : i64} {
  func.func @_unet_up_block_kernel(%arg0: i32, %arg1: memref<1x8x8x8xf32, #tpu.memory_space<vmem>>, %arg2: memref<1x4x20x20xf32, #tpu.memory_space<vmem>>, %arg3: memref<4x72xf32, #tpu.memory_space<vmem>>, %arg4: memref<4x1xf32, #tpu.memory_space<vmem>>, %arg5: memref<4x72xf32, #tpu.memory_space<vmem>>, %arg6: memref<4x1xf32, #tpu.memory_space<vmem>>, %arg7: memref<4x36xf32, #tpu.memory_space<vmem>>, %arg8: memref<4x1xf32, #tpu.memory_space<vmem>>, %arg9: memref<1x4x289xf32, #tpu.memory_space<vmem>>) attributes {dimension_semantics = [#tpu.dimension_semantics<parallel>], iteration_bounds = array<i64: 2>, scalar_prefetch = 0 : i64, scratch_operands = 0 : i64, tpu.core_type = #tpu.core_type<tc>, window_params = [{transform_indices = @transform_0, window_bounds = array<i64: 1, 8, 8, 8>}, {transform_indices = @transform_1, window_bounds = array<i64: 1, 4, 20, 20>}, {pipeline_mode = #tpu.pipeline_mode<synchronous>, transform_indices = @transform_2, window_bounds = array<i64: 4, 72>}, {pipeline_mode = #tpu.pipeline_mode<synchronous>, transform_indices = @transform_3, window_bounds = array<i64: 4, 1>}, {pipeline_mode = #tpu.pipeline_mode<synchronous>, transform_indices = @transform_4, window_bounds = array<i64: 4, 72>}, {pipeline_mode = #tpu.pipeline_mode<synchronous>, transform_indices = @transform_5, window_bounds = array<i64: 4, 1>}, {pipeline_mode = #tpu.pipeline_mode<synchronous>, transform_indices = @transform_6, window_bounds = array<i64: 4, 36>}, {pipeline_mode = #tpu.pipeline_mode<synchronous>, transform_indices = @transform_7, window_bounds = array<i64: 4, 1>}, {transform_indices = @transform_8, window_bounds = array<i64: 1, 4, 289>}]} {
    %c0 = arith.constant 0 : index
    %c0_0 = arith.constant 0 : index
    %c0_1 = arith.constant 0 : index
    %c0_2 = arith.constant 0 : index
    %0 = vector.load %arg1[%c0, %c0_0, %c0_1, %c0_2] : memref<1x8x8x8xf32, #tpu.memory_space<vmem>>, vector<1x8x8x8xf32>
    %1 = vector.shape_cast %0 : vector<1x8x8x8xf32> to vector<8x8x8xf32>
    %2 = tpu.iota {dimensions = array<i32: 0>} : vector<8x15xi32>
    %3 = tpu.iota {dimensions = array<i32: 1>} : vector<8x15xi32>
    %c2_i32 = arith.constant 2 : i32
    %4 = vector.broadcast %c2_i32 : i32 to vector<8x15xi32>
    %5 = arith.muli %4, %2 : vector<8x15xi32>
    %6 = arith.cmpi eq, %3, %5 : vector<8x15xi32>
    %7 = arith.extui %6 : vector<8x15xi1> to vector<8x15xi32>
    %8 = arith.sitofp %7 : vector<8x15xi32> to vector<8x15xf32>
    %9 = vector.shape_cast %1 : vector<8x8x8xf32> to vector<64x8xf32>
    %cst = arith.constant dense<0.000000e+00> : vector<64x15xf32>
    %10 = tpu.matmul %9, %8, %cst {dimension_numbers = #tpu.dot_dimension_numbers<[1], [0], [0], [1], [0, 0, 1, 1], [], []>} : vector<64x8xf32>, vector<8x15xf32>, vector<64x15xf32> -> vector<64x15xf32>
    %11 = vector.shape_cast %10 : vector<64x15xf32> to vector<8x8x15xf32>
    %cst_3 = arith.constant 0.000000e+00 : f32
    %12 = vector.broadcast %cst_3 : f32 to vector<8x19xf32>
    %cst_4 = arith.constant 0.000000e+00 : f32
    %13 = vector.broadcast %cst_4 : f32 to vector<8x2xf32>
    %14 = vector.extract_strided_slice %11 {offsets = [0, 0, 0], sizes = [8, 1, 15], strides = [1, 1, 1]} : vector<8x8x15xf32> to vector<8x1x15xf32>
    %15 = vector.shape_cast %14 : vector<8x1x15xf32> to vector<8x15xf32>
    %16 = tpu.concatenate %13, %15, %13 in 1 : vector<8x2xf32>, vector<8x15xf32>, vector<8x2xf32> -> vector<8x19xf32>
    %17 = vector.extract_strided_slice %11 {offsets = [0, 1, 0], sizes = [8, 1, 15], strides = [1, 1, 1]} : vector<8x8x15xf32> to vector<8x1x15xf32>
    %18 = vector.shape_cast %17 : vector<8x1x15xf32> to vector<8x15xf32>
    %19 = tpu.concatenate %13, %18, %13 in 1 : vector<8x2xf32>, vector<8x15xf32>, vector<8x2xf32> -> vector<8x19xf32>
    %20 = vector.extract_strided_slice %11 {offsets = [0, 2, 0], sizes = [8, 1, 15], strides = [1, 1, 1]} : vector<8x8x15xf32> to vector<8x1x15xf32>
    %21 = vector.shape_cast %20 : vector<8x1x15xf32> to vector<8x15xf32>
    %22 = tpu.concatenate %13, %21, %13 in 1 : vector<8x2xf32>, vector<8x15xf32>, vector<8x2xf32> -> vector<8x19xf32>
    %23 = vector.extract_strided_slice %11 {offsets = [0, 3, 0], sizes = [8, 1, 15], strides = [1, 1, 1]} : vector<8x8x15xf32> to vector<8x1x15xf32>
    %24 = vector.shape_cast %23 : vector<8x1x15xf32> to vector<8x15xf32>
    %25 = tpu.concatenate %13, %24, %13 in 1 : vector<8x2xf32>, vector<8x15xf32>, vector<8x2xf32> -> vector<8x19xf32>
    %26 = vector.extract_strided_slice %11 {offsets = [0, 4, 0], sizes = [8, 1, 15], strides = [1, 1, 1]} : vector<8x8x15xf32> to vector<8x1x15xf32>
    %27 = vector.shape_cast %26 : vector<8x1x15xf32> to vector<8x15xf32>
    %28 = tpu.concatenate %13, %27, %13 in 1 : vector<8x2xf32>, vector<8x15xf32>, vector<8x2xf32> -> vector<8x19xf32>
    %29 = vector.extract_strided_slice %11 {offsets = [0, 5, 0], sizes = [8, 1, 15], strides = [1, 1, 1]} : vector<8x8x15xf32> to vector<8x1x15xf32>
    %30 = vector.shape_cast %29 : vector<8x1x15xf32> to vector<8x15xf32>
    %31 = tpu.concatenate %13, %30, %13 in 1 : vector<8x2xf32>, vector<8x15xf32>, vector<8x2xf32> -> vector<8x19xf32>
    %32 = vector.extract_strided_slice %11 {offsets = [0, 6, 0], sizes = [8, 1, 15], strides = [1, 1, 1]} : vector<8x8x15xf32> to vector<8x1x15xf32>
    %33 = vector.shape_cast %32 : vector<8x1x15xf32> to vector<8x15xf32>
    %34 = tpu.concatenate %13, %33, %13 in 1 : vector<8x2xf32>, vector<8x15xf32>, vector<8x2xf32> -> vector<8x19xf32>
    %35 = vector.extract_strided_slice %11 {offsets = [0, 7, 0], sizes = [8, 1, 15], strides = [1, 1, 1]} : vector<8x8x15xf32> to vector<8x1x15xf32>
    %36 = vector.shape_cast %35 : vector<8x1x15xf32> to vector<8x15xf32>
    %37 = tpu.concatenate %13, %36, %13 in 1 : vector<8x2xf32>, vector<8x15xf32>, vector<8x2xf32> -> vector<8x19xf32>
    %38 = tpu.concatenate %12, %12, %16, %12, %19, %12, %22, %12, %25, %12, %28, %12, %31, %12, %34, %12 in 1 : vector<8x19xf32>, vector<8x19xf32>, vector<8x19xf32>, vector<8x19xf32>, vector<8x19xf32>, vector<8x19xf32>, vector<8x19xf32>, vector<8x19xf32>, vector<8x19xf32>, vector<8x19xf32>, vector<8x19xf32>, vector<8x19xf32>, vector<8x19xf32>, vector<8x19xf32>, vector<8x19xf32>, vector<8x19xf32> -> vector<8x304xf32>
    %39 = tpu.concatenate %37, %12, %12 in 1 : vector<8x19xf32>, vector<8x19xf32>, vector<8x19xf32> -> vector<8x57xf32>
    %40 = tpu.concatenate %38, %39 in 1 : vector<8x304xf32>, vector<8x57xf32> -> vector<8x361xf32>
    %c0_5 = arith.constant 0 : index
    %c0_6 = arith.constant 0 : index
    %41 = vector.load %arg3[%c0_5, %c0_6] : memref<4x72xf32, #tpu.memory_space<vmem>>, vector<4x72xf32>
    %c0_7 = arith.constant 0 : index
    %c0_8 = arith.constant 0 : index
    %42 = vector.load %arg4[%c0_7, %c0_8] : memref<4x1xf32, #tpu.memory_space<vmem>>, vector<4x1xf32>
    %cst_9 = arith.constant 0.000000e+00 : f32
    %43 = vector.broadcast %cst_9 : f32 to vector<8x2xf32>
    %44 = tpu.concatenate %40, %43 in 1 : vector<8x361xf32>, vector<8x2xf32> -> vector<8x363xf32>
    %45 = vector.extract_strided_slice %44 {offsets = [0, 0], sizes = [8, 323], strides = [1, 1]} : vector<8x363xf32> to vector<8x323xf32>
    %46 = vector.extract_strided_slice %44 {offsets = [0, 1], sizes = [8, 323], strides = [1, 1]} : vector<8x363xf32> to vector<8x323xf32>
    %47 = vector.extract_strided_slice %44 {offsets = [0, 2], sizes = [8, 323], strides = [1, 1]} : vector<8x363xf32> to vector<8x323xf32>
    %48 = vector.extract_strided_slice %44 {offsets = [0, 19], sizes = [8, 323], strides = [1, 1]} : vector<8x363xf32> to vector<8x323xf32>
    %49 = vector.extract_strided_slice %44 {offsets = [0, 20], sizes = [8, 323], strides = [1, 1]} : vector<8x363xf32> to vector<8x323xf32>
    %50 = vector.extract_strided_slice %44 {offsets = [0, 21], sizes = [8, 323], strides = [1, 1]} : vector<8x363xf32> to vector<8x323xf32>
    %51 = vector.extract_strided_slice %44 {offsets = [0, 38], sizes = [8, 323], strides = [1, 1]} : vector<8x363xf32> to vector<8x323xf32>
    %52 = vector.extract_strided_slice %44 {offsets = [0, 39], sizes = [8, 323], strides = [1, 1]} : vector<8x363xf32> to vector<8x323xf32>
    %53 = vector.extract_strided_slice %44 {offsets = [0, 40], sizes = [8, 323], strides = [1, 1]} : vector<8x363xf32> to vector<8x323xf32>
    %54 = tpu.concatenate %45, %46, %47, %48, %49, %50, %51, %52, %53 in 0 : vector<8x323xf32>, vector<8x323xf32>, vector<8x323xf32>, vector<8x323xf32>, vector<8x323xf32>, vector<8x323xf32>, vector<8x323xf32>, vector<8x323xf32>, vector<8x323xf32> -> vector<72x323xf32>
    %cst_10 = arith.constant dense<0.000000e+00> : vector<4x323xf32>
    %55 = tpu.matmul %41, %54, %cst_10 {dimension_numbers = #tpu.dot_dimension_numbers<[1], [0], [0], [1], [0, 0, 1, 1], [], []>} : vector<4x72xf32>, vector<72x323xf32>, vector<4x323xf32> -> vector<4x323xf32>
    %56 = vector.broadcast %42 : vector<4x1xf32> to vector<4x323xf32>
    %57 = arith.addf %55, %56 : vector<4x323xf32>
    %c0_11 = arith.constant 0 : index
    %c0_12 = arith.constant 0 : index
    %c0_13 = arith.constant 0 : index
    %c0_14 = arith.constant 0 : index
    %58 = vector.load %arg2[%c0_11, %c0_12, %c0_13, %c0_14] : memref<1x4x20x20xf32, #tpu.memory_space<vmem>>, vector<1x4x20x20xf32>
    %59 = vector.shape_cast %58 : vector<1x4x20x20xf32> to vector<4x20x20xf32>
    %60 = vector.extract_strided_slice %57 {offsets = [0, 19], sizes = [4, 17], strides = [1, 1]} : vector<4x323xf32> to vector<4x17xf32>
    %61 = vector.extract_strided_slice %59 {offsets = [0, 2, 1], sizes = [4, 1, 17], strides = [1, 1, 1]} : vector<4x20x20xf32> to vector<4x1x17xf32>
    %62 = vector.shape_cast %61 : vector<4x1x17xf32> to vector<4x17xf32>
    %63 = tpu.concatenate %60, %62 in 0 : vector<4x17xf32>, vector<4x17xf32> -> vector<8x17xf32>
    %64 = vector.extract_strided_slice %63 {offsets = [0, 1], sizes = [8, 1], strides = [1, 1]} : vector<8x17xf32> to vector<8x1xf32>
    %65 = vector.extract_strided_slice %63 {offsets = [0, 15], sizes = [8, 1], strides = [1, 1]} : vector<8x17xf32> to vector<8x1xf32>
    %66 = tpu.concatenate %64, %63, %65 in 1 : vector<8x1xf32>, vector<8x17xf32>, vector<8x1xf32> -> vector<8x19xf32>
    %67 = vector.extract_strided_slice %57 {offsets = [0, 0], sizes = [4, 17], strides = [1, 1]} : vector<4x323xf32> to vector<4x17xf32>
    %68 = vector.extract_strided_slice %59 {offsets = [0, 1, 1], sizes = [4, 1, 17], strides = [1, 1, 1]} : vector<4x20x20xf32> to vector<4x1x17xf32>
    %69 = vector.shape_cast %68 : vector<4x1x17xf32> to vector<4x17xf32>
    %70 = tpu.concatenate %67, %69 in 0 : vector<4x17xf32>, vector<4x17xf32> -> vector<8x17xf32>
    %71 = vector.extract_strided_slice %70 {offsets = [0, 1], sizes = [8, 1], strides = [1, 1]} : vector<8x17xf32> to vector<8x1xf32>
    %72 = vector.extract_strided_slice %70 {offsets = [0, 15], sizes = [8, 1], strides = [1, 1]} : vector<8x17xf32> to vector<8x1xf32>
    %73 = tpu.concatenate %71, %70, %72 in 1 : vector<8x1xf32>, vector<8x17xf32>, vector<8x1xf32> -> vector<8x19xf32>
    %74 = vector.extract_strided_slice %63 {offsets = [0, 1], sizes = [8, 1], strides = [1, 1]} : vector<8x17xf32> to vector<8x1xf32>
    %75 = vector.extract_strided_slice %63 {offsets = [0, 15], sizes = [8, 1], strides = [1, 1]} : vector<8x17xf32> to vector<8x1xf32>
    %76 = tpu.concatenate %74, %63, %75 in 1 : vector<8x1xf32>, vector<8x17xf32>, vector<8x1xf32> -> vector<8x19xf32>
    %77 = vector.extract_strided_slice %57 {offsets = [0, 38], sizes = [4, 17], strides = [1, 1]} : vector<4x323xf32> to vector<4x17xf32>
    %78 = vector.extract_strided_slice %59 {offsets = [0, 3, 1], sizes = [4, 1, 17], strides = [1, 1, 1]} : vector<4x20x20xf32> to vector<4x1x17xf32>
    %79 = vector.shape_cast %78 : vector<4x1x17xf32> to vector<4x17xf32>
    %80 = tpu.concatenate %77, %79 in 0 : vector<4x17xf32>, vector<4x17xf32> -> vector<8x17xf32>
    %81 = vector.extract_strided_slice %80 {offsets = [0, 1], sizes = [8, 1], strides = [1, 1]} : vector<8x17xf32> to vector<8x1xf32>
    %82 = vector.extract_strided_slice %80 {offsets = [0, 15], sizes = [8, 1], strides = [1, 1]} : vector<8x17xf32> to vector<8x1xf32>
    %83 = tpu.concatenate %81, %80, %82 in 1 : vector<8x1xf32>, vector<8x17xf32>, vector<8x1xf32> -> vector<8x19xf32>
    %84 = vector.extract_strided_slice %57 {offsets = [0, 57], sizes = [4, 17], strides = [1, 1]} : vector<4x323xf32> to vector<4x17xf32>
    %85 = vector.extract_strided_slice %59 {offsets = [0, 4, 1], sizes = [4, 1, 17], strides = [1, 1, 1]} : vector<4x20x20xf32> to vector<4x1x17xf32>
    %86 = vector.shape_cast %85 : vector<4x1x17xf32> to vector<4x17xf32>
    %87 = tpu.concatenate %84, %86 in 0 : vector<4x17xf32>, vector<4x17xf32> -> vector<8x17xf32>
    %88 = vector.extract_strided_slice %87 {offsets = [0, 1], sizes = [8, 1], strides = [1, 1]} : vector<8x17xf32> to vector<8x1xf32>
    %89 = vector.extract_strided_slice %87 {offsets = [0, 15], sizes = [8, 1], strides = [1, 1]} : vector<8x17xf32> to vector<8x1xf32>
    %90 = tpu.concatenate %88, %87, %89 in 1 : vector<8x1xf32>, vector<8x17xf32>, vector<8x1xf32> -> vector<8x19xf32>
    %91 = vector.extract_strided_slice %57 {offsets = [0, 76], sizes = [4, 17], strides = [1, 1]} : vector<4x323xf32> to vector<4x17xf32>
    %92 = vector.extract_strided_slice %59 {offsets = [0, 5, 1], sizes = [4, 1, 17], strides = [1, 1, 1]} : vector<4x20x20xf32> to vector<4x1x17xf32>
    %93 = vector.shape_cast %92 : vector<4x1x17xf32> to vector<4x17xf32>
    %94 = tpu.concatenate %91, %93 in 0 : vector<4x17xf32>, vector<4x17xf32> -> vector<8x17xf32>
    %95 = vector.extract_strided_slice %94 {offsets = [0, 1], sizes = [8, 1], strides = [1, 1]} : vector<8x17xf32> to vector<8x1xf32>
    %96 = vector.extract_strided_slice %94 {offsets = [0, 15], sizes = [8, 1], strides = [1, 1]} : vector<8x17xf32> to vector<8x1xf32>
    %97 = tpu.concatenate %95, %94, %96 in 1 : vector<8x1xf32>, vector<8x17xf32>, vector<8x1xf32> -> vector<8x19xf32>
    %98 = vector.extract_strided_slice %57 {offsets = [0, 95], sizes = [4, 17], strides = [1, 1]} : vector<4x323xf32> to vector<4x17xf32>
    %99 = vector.extract_strided_slice %59 {offsets = [0, 6, 1], sizes = [4, 1, 17], strides = [1, 1, 1]} : vector<4x20x20xf32> to vector<4x1x17xf32>
    %100 = vector.shape_cast %99 : vector<4x1x17xf32> to vector<4x17xf32>
    %101 = tpu.concatenate %98, %100 in 0 : vector<4x17xf32>, vector<4x17xf32> -> vector<8x17xf32>
    %102 = vector.extract_strided_slice %101 {offsets = [0, 1], sizes = [8, 1], strides = [1, 1]} : vector<8x17xf32> to vector<8x1xf32>
    %103 = vector.extract_strided_slice %101 {offsets = [0, 15], sizes = [8, 1], strides = [1, 1]} : vector<8x17xf32> to vector<8x1xf32>
    %104 = tpu.concatenate %102, %101, %103 in 1 : vector<8x1xf32>, vector<8x17xf32>, vector<8x1xf32> -> vector<8x19xf32>
    %105 = vector.extract_strided_slice %57 {offsets = [0, 114], sizes = [4, 17], strides = [1, 1]} : vector<4x323xf32> to vector<4x17xf32>
    %106 = vector.extract_strided_slice %59 {offsets = [0, 7, 1], sizes = [4, 1, 17], strides = [1, 1, 1]} : vector<4x20x20xf32> to vector<4x1x17xf32>
    %107 = vector.shape_cast %106 : vector<4x1x17xf32> to vector<4x17xf32>
    %108 = tpu.concatenate %105, %107 in 0 : vector<4x17xf32>, vector<4x17xf32> -> vector<8x17xf32>
    %109 = vector.extract_strided_slice %108 {offsets = [0, 1], sizes = [8, 1], strides = [1, 1]} : vector<8x17xf32> to vector<8x1xf32>
    %110 = vector.extract_strided_slice %108 {offsets = [0, 15], sizes = [8, 1], strides = [1, 1]} : vector<8x17xf32> to vector<8x1xf32>
    %111 = tpu.concatenate %109, %108, %110 in 1 : vector<8x1xf32>, vector<8x17xf32>, vector<8x1xf32> -> vector<8x19xf32>
    %112 = vector.extract_strided_slice %57 {offsets = [0, 133], sizes = [4, 17], strides = [1, 1]} : vector<4x323xf32> to vector<4x17xf32>
    %113 = vector.extract_strided_slice %59 {offsets = [0, 8, 1], sizes = [4, 1, 17], strides = [1, 1, 1]} : vector<4x20x20xf32> to vector<4x1x17xf32>
    %114 = vector.shape_cast %113 : vector<4x1x17xf32> to vector<4x17xf32>
    %115 = tpu.concatenate %112, %114 in 0 : vector<4x17xf32>, vector<4x17xf32> -> vector<8x17xf32>
    %116 = vector.extract_strided_slice %115 {offsets = [0, 1], sizes = [8, 1], strides = [1, 1]} : vector<8x17xf32> to vector<8x1xf32>
    %117 = vector.extract_strided_slice %115 {offsets = [0, 15], sizes = [8, 1], strides = [1, 1]} : vector<8x17xf32> to vector<8x1xf32>
    %118 = tpu.concatenate %116, %115, %117 in 1 : vector<8x1xf32>, vector<8x17xf32>, vector<8x1xf32> -> vector<8x19xf32>
    %119 = vector.extract_strided_slice %57 {offsets = [0, 152], sizes = [4, 17], strides = [1, 1]} : vector<4x323xf32> to vector<4x17xf32>
    %120 = vector.extract_strided_slice %59 {offsets = [0, 9, 1], sizes = [4, 1, 17], strides = [1, 1, 1]} : vector<4x20x20xf32> to vector<4x1x17xf32>
    %121 = vector.shape_cast %120 : vector<4x1x17xf32> to vector<4x17xf32>
    %122 = tpu.concatenate %119, %121 in 0 : vector<4x17xf32>, vector<4x17xf32> -> vector<8x17xf32>
    %123 = vector.extract_strided_slice %122 {offsets = [0, 1], sizes = [8, 1], strides = [1, 1]} : vector<8x17xf32> to vector<8x1xf32>
    %124 = vector.extract_strided_slice %122 {offsets = [0, 15], sizes = [8, 1], strides = [1, 1]} : vector<8x17xf32> to vector<8x1xf32>
    %125 = tpu.concatenate %123, %122, %124 in 1 : vector<8x1xf32>, vector<8x17xf32>, vector<8x1xf32> -> vector<8x19xf32>
    %126 = vector.extract_strided_slice %57 {offsets = [0, 171], sizes = [4, 17], strides = [1, 1]} : vector<4x323xf32> to vector<4x17xf32>
    %127 = vector.extract_strided_slice %59 {offsets = [0, 10, 1], sizes = [4, 1, 17], strides = [1, 1, 1]} : vector<4x20x20xf32> to vector<4x1x17xf32>
    %128 = vector.shape_cast %127 : vector<4x1x17xf32> to vector<4x17xf32>
    %129 = tpu.concatenate %126, %128 in 0 : vector<4x17xf32>, vector<4x17xf32> -> vector<8x17xf32>
    %130 = vector.extract_strided_slice %129 {offsets = [0, 1], sizes = [8, 1], strides = [1, 1]} : vector<8x17xf32> to vector<8x1xf32>
    %131 = vector.extract_strided_slice %129 {offsets = [0, 15], sizes = [8, 1], strides = [1, 1]} : vector<8x17xf32> to vector<8x1xf32>
    %132 = tpu.concatenate %130, %129, %131 in 1 : vector<8x1xf32>, vector<8x17xf32>, vector<8x1xf32> -> vector<8x19xf32>
    %133 = vector.extract_strided_slice %57 {offsets = [0, 190], sizes = [4, 17], strides = [1, 1]} : vector<4x323xf32> to vector<4x17xf32>
    %134 = vector.extract_strided_slice %59 {offsets = [0, 11, 1], sizes = [4, 1, 17], strides = [1, 1, 1]} : vector<4x20x20xf32> to vector<4x1x17xf32>
    %135 = vector.shape_cast %134 : vector<4x1x17xf32> to vector<4x17xf32>
    %136 = tpu.concatenate %133, %135 in 0 : vector<4x17xf32>, vector<4x17xf32> -> vector<8x17xf32>
    %137 = vector.extract_strided_slice %136 {offsets = [0, 1], sizes = [8, 1], strides = [1, 1]} : vector<8x17xf32> to vector<8x1xf32>
    %138 = vector.extract_strided_slice %136 {offsets = [0, 15], sizes = [8, 1], strides = [1, 1]} : vector<8x17xf32> to vector<8x1xf32>
    %139 = tpu.concatenate %137, %136, %138 in 1 : vector<8x1xf32>, vector<8x17xf32>, vector<8x1xf32> -> vector<8x19xf32>
    %140 = vector.extract_strided_slice %57 {offsets = [0, 209], sizes = [4, 17], strides = [1, 1]} : vector<4x323xf32> to vector<4x17xf32>
    %141 = vector.extract_strided_slice %59 {offsets = [0, 12, 1], sizes = [4, 1, 17], strides = [1, 1, 1]} : vector<4x20x20xf32> to vector<4x1x17xf32>
    %142 = vector.shape_cast %141 : vector<4x1x17xf32> to vector<4x17xf32>
    %143 = tpu.concatenate %140, %142 in 0 : vector<4x17xf32>, vector<4x17xf32> -> vector<8x17xf32>
    %144 = vector.extract_strided_slice %143 {offsets = [0, 1], sizes = [8, 1], strides = [1, 1]} : vector<8x17xf32> to vector<8x1xf32>
    %145 = vector.extract_strided_slice %143 {offsets = [0, 15], sizes = [8, 1], strides = [1, 1]} : vector<8x17xf32> to vector<8x1xf32>
    %146 = tpu.concatenate %144, %143, %145 in 1 : vector<8x1xf32>, vector<8x17xf32>, vector<8x1xf32> -> vector<8x19xf32>
    %147 = vector.extract_strided_slice %57 {offsets = [0, 228], sizes = [4, 17], strides = [1, 1]} : vector<4x323xf32> to vector<4x17xf32>
    %148 = vector.extract_strided_slice %59 {offsets = [0, 13, 1], sizes = [4, 1, 17], strides = [1, 1, 1]} : vector<4x20x20xf32> to vector<4x1x17xf32>
    %149 = vector.shape_cast %148 : vector<4x1x17xf32> to vector<4x17xf32>
    %150 = tpu.concatenate %147, %149 in 0 : vector<4x17xf32>, vector<4x17xf32> -> vector<8x17xf32>
    %151 = vector.extract_strided_slice %150 {offsets = [0, 1], sizes = [8, 1], strides = [1, 1]} : vector<8x17xf32> to vector<8x1xf32>
    %152 = vector.extract_strided_slice %150 {offsets = [0, 15], sizes = [8, 1], strides = [1, 1]} : vector<8x17xf32> to vector<8x1xf32>
    %153 = tpu.concatenate %151, %150, %152 in 1 : vector<8x1xf32>, vector<8x17xf32>, vector<8x1xf32> -> vector<8x19xf32>
    %154 = vector.extract_strided_slice %57 {offsets = [0, 247], sizes = [4, 17], strides = [1, 1]} : vector<4x323xf32> to vector<4x17xf32>
    %155 = vector.extract_strided_slice %59 {offsets = [0, 14, 1], sizes = [4, 1, 17], strides = [1, 1, 1]} : vector<4x20x20xf32> to vector<4x1x17xf32>
    %156 = vector.shape_cast %155 : vector<4x1x17xf32> to vector<4x17xf32>
    %157 = tpu.concatenate %154, %156 in 0 : vector<4x17xf32>, vector<4x17xf32> -> vector<8x17xf32>
    %158 = vector.extract_strided_slice %157 {offsets = [0, 1], sizes = [8, 1], strides = [1, 1]} : vector<8x17xf32> to vector<8x1xf32>
    %159 = vector.extract_strided_slice %157 {offsets = [0, 15], sizes = [8, 1], strides = [1, 1]} : vector<8x17xf32> to vector<8x1xf32>
    %160 = tpu.concatenate %158, %157, %159 in 1 : vector<8x1xf32>, vector<8x17xf32>, vector<8x1xf32> -> vector<8x19xf32>
    %161 = vector.extract_strided_slice %57 {offsets = [0, 266], sizes = [4, 17], strides = [1, 1]} : vector<4x323xf32> to vector<4x17xf32>
    %162 = vector.extract_strided_slice %59 {offsets = [0, 15, 1], sizes = [4, 1, 17], strides = [1, 1, 1]} : vector<4x20x20xf32> to vector<4x1x17xf32>
    %163 = vector.shape_cast %162 : vector<4x1x17xf32> to vector<4x17xf32>
    %164 = tpu.concatenate %161, %163 in 0 : vector<4x17xf32>, vector<4x17xf32> -> vector<8x17xf32>
    %165 = vector.extract_strided_slice %164 {offsets = [0, 1], sizes = [8, 1], strides = [1, 1]} : vector<8x17xf32> to vector<8x1xf32>
    %166 = vector.extract_strided_slice %164 {offsets = [0, 15], sizes = [8, 1], strides = [1, 1]} : vector<8x17xf32> to vector<8x1xf32>
    %167 = tpu.concatenate %165, %164, %166 in 1 : vector<8x1xf32>, vector<8x17xf32>, vector<8x1xf32> -> vector<8x19xf32>
    %168 = vector.extract_strided_slice %57 {offsets = [0, 285], sizes = [4, 17], strides = [1, 1]} : vector<4x323xf32> to vector<4x17xf32>
    %169 = vector.extract_strided_slice %59 {offsets = [0, 16, 1], sizes = [4, 1, 17], strides = [1, 1, 1]} : vector<4x20x20xf32> to vector<4x1x17xf32>
    %170 = vector.shape_cast %169 : vector<4x1x17xf32> to vector<4x17xf32>
    %171 = tpu.concatenate %168, %170 in 0 : vector<4x17xf32>, vector<4x17xf32> -> vector<8x17xf32>
    %172 = vector.extract_strided_slice %171 {offsets = [0, 1], sizes = [8, 1], strides = [1, 1]} : vector<8x17xf32> to vector<8x1xf32>
    %173 = vector.extract_strided_slice %171 {offsets = [0, 15], sizes = [8, 1], strides = [1, 1]} : vector<8x17xf32> to vector<8x1xf32>
    %174 = tpu.concatenate %172, %171, %173 in 1 : vector<8x1xf32>, vector<8x17xf32>, vector<8x1xf32> -> vector<8x19xf32>
    %175 = vector.extract_strided_slice %57 {offsets = [0, 304], sizes = [4, 17], strides = [1, 1]} : vector<4x323xf32> to vector<4x17xf32>
    %176 = vector.extract_strided_slice %59 {offsets = [0, 17, 1], sizes = [4, 1, 17], strides = [1, 1, 1]} : vector<4x20x20xf32> to vector<4x1x17xf32>
    %177 = vector.shape_cast %176 : vector<4x1x17xf32> to vector<4x17xf32>
    %178 = tpu.concatenate %175, %177 in 0 : vector<4x17xf32>, vector<4x17xf32> -> vector<8x17xf32>
    %179 = vector.extract_strided_slice %178 {offsets = [0, 1], sizes = [8, 1], strides = [1, 1]} : vector<8x17xf32> to vector<8x1xf32>
    %180 = vector.extract_strided_slice %178 {offsets = [0, 15], sizes = [8, 1], strides = [1, 1]} : vector<8x17xf32> to vector<8x1xf32>
    %181 = tpu.concatenate %179, %178, %180 in 1 : vector<8x1xf32>, vector<8x17xf32>, vector<8x1xf32> -> vector<8x19xf32>
    %182 = vector.extract_strided_slice %171 {offsets = [0, 1], sizes = [8, 1], strides = [1, 1]} : vector<8x17xf32> to vector<8x1xf32>
    %183 = vector.extract_strided_slice %171 {offsets = [0, 15], sizes = [8, 1], strides = [1, 1]} : vector<8x17xf32> to vector<8x1xf32>
    %184 = tpu.concatenate %182, %171, %183 in 1 : vector<8x1xf32>, vector<8x17xf32>, vector<8x1xf32> -> vector<8x19xf32>
    %185 = tpu.concatenate %66, %73, %76, %83, %90, %97, %104, %111, %118, %125, %132, %139, %146, %153, %160, %167 in 1 : vector<8x19xf32>, vector<8x19xf32>, vector<8x19xf32>, vector<8x19xf32>, vector<8x19xf32>, vector<8x19xf32>, vector<8x19xf32>, vector<8x19xf32>, vector<8x19xf32>, vector<8x19xf32>, vector<8x19xf32>, vector<8x19xf32>, vector<8x19xf32>, vector<8x19xf32>, vector<8x19xf32>, vector<8x19xf32> -> vector<8x304xf32>
    %186 = tpu.concatenate %174, %181, %184 in 1 : vector<8x19xf32>, vector<8x19xf32>, vector<8x19xf32> -> vector<8x57xf32>
    %187 = tpu.concatenate %185, %186 in 1 : vector<8x304xf32>, vector<8x57xf32> -> vector<8x361xf32>
    %c0_15 = arith.constant 0 : index
    %c0_16 = arith.constant 0 : index
    %188 = vector.load %arg5[%c0_15, %c0_16] : memref<4x72xf32, #tpu.memory_space<vmem>>, vector<4x72xf32>
    %c0_17 = arith.constant 0 : index
    %c0_18 = arith.constant 0 : index
    %189 = vector.load %arg6[%c0_17, %c0_18] : memref<4x1xf32, #tpu.memory_space<vmem>>, vector<4x1xf32>
    %cst_19 = arith.constant 0.000000e+00 : f32
    %190 = vector.broadcast %cst_19 : f32 to vector<8x2xf32>
    %191 = tpu.concatenate %187, %190 in 1 : vector<8x361xf32>, vector<8x2xf32> -> vector<8x363xf32>
    %192 = vector.extract_strided_slice %191 {offsets = [0, 0], sizes = [8, 323], strides = [1, 1]} : vector<8x363xf32> to vector<8x323xf32>
    %193 = vector.extract_strided_slice %191 {offsets = [0, 1], sizes = [8, 323], strides = [1, 1]} : vector<8x363xf32> to vector<8x323xf32>
    %194 = vector.extract_strided_slice %191 {offsets = [0, 2], sizes = [8, 323], strides = [1, 1]} : vector<8x363xf32> to vector<8x323xf32>
    %195 = vector.extract_strided_slice %191 {offsets = [0, 19], sizes = [8, 323], strides = [1, 1]} : vector<8x363xf32> to vector<8x323xf32>
    %196 = vector.extract_strided_slice %191 {offsets = [0, 20], sizes = [8, 323], strides = [1, 1]} : vector<8x363xf32> to vector<8x323xf32>
    %197 = vector.extract_strided_slice %191 {offsets = [0, 21], sizes = [8, 323], strides = [1, 1]} : vector<8x363xf32> to vector<8x323xf32>
    %198 = vector.extract_strided_slice %191 {offsets = [0, 38], sizes = [8, 323], strides = [1, 1]} : vector<8x363xf32> to vector<8x323xf32>
    %199 = vector.extract_strided_slice %191 {offsets = [0, 39], sizes = [8, 323], strides = [1, 1]} : vector<8x363xf32> to vector<8x323xf32>
    %200 = vector.extract_strided_slice %191 {offsets = [0, 40], sizes = [8, 323], strides = [1, 1]} : vector<8x363xf32> to vector<8x323xf32>
    %201 = tpu.concatenate %192, %193, %194, %195, %196, %197, %198, %199, %200 in 0 : vector<8x323xf32>, vector<8x323xf32>, vector<8x323xf32>, vector<8x323xf32>, vector<8x323xf32>, vector<8x323xf32>, vector<8x323xf32>, vector<8x323xf32>, vector<8x323xf32> -> vector<72x323xf32>
    %cst_20 = arith.constant dense<0.000000e+00> : vector<4x323xf32>
    %202 = tpu.matmul %188, %201, %cst_20 {dimension_numbers = #tpu.dot_dimension_numbers<[1], [0], [0], [1], [0, 0, 1, 1], [], []>} : vector<4x72xf32>, vector<72x323xf32>, vector<4x323xf32> -> vector<4x323xf32>
    %203 = vector.broadcast %189 : vector<4x1xf32> to vector<4x323xf32>
    %204 = arith.addf %202, %203 : vector<4x323xf32>
    %cst_21 = arith.constant 0.000000e+00 : f32
    %205 = vector.broadcast %cst_21 : f32 to vector<4x323xf32>
    %206 = arith.cmpf ogt, %204, %205 : vector<4x323xf32>
    %cst_22 = arith.constant 1.000000e-01 : f32
    %207 = vector.broadcast %cst_22 : f32 to vector<4x323xf32>
    %208 = arith.mulf %207, %204 : vector<4x323xf32>
    %209 = arith.select %206, %204, %208 : vector<4x323xi1>, vector<4x323xf32>
    %210 = vector.extract_strided_slice %209 {offsets = [0, 19], sizes = [4, 17], strides = [1, 1]} : vector<4x323xf32> to vector<4x17xf32>
    %211 = vector.extract_strided_slice %210 {offsets = [0, 1], sizes = [4, 1], strides = [1, 1]} : vector<4x17xf32> to vector<4x1xf32>
    %212 = vector.extract_strided_slice %210 {offsets = [0, 15], sizes = [4, 1], strides = [1, 1]} : vector<4x17xf32> to vector<4x1xf32>
    %213 = tpu.concatenate %211, %210, %212 in 1 : vector<4x1xf32>, vector<4x17xf32>, vector<4x1xf32> -> vector<4x19xf32>
    %214 = vector.extract_strided_slice %209 {offsets = [0, 0], sizes = [4, 17], strides = [1, 1]} : vector<4x323xf32> to vector<4x17xf32>
    %215 = vector.extract_strided_slice %214 {offsets = [0, 1], sizes = [4, 1], strides = [1, 1]} : vector<4x17xf32> to vector<4x1xf32>
    %216 = vector.extract_strided_slice %214 {offsets = [0, 15], sizes = [4, 1], strides = [1, 1]} : vector<4x17xf32> to vector<4x1xf32>
    %217 = tpu.concatenate %215, %214, %216 in 1 : vector<4x1xf32>, vector<4x17xf32>, vector<4x1xf32> -> vector<4x19xf32>
    %218 = vector.extract_strided_slice %210 {offsets = [0, 1], sizes = [4, 1], strides = [1, 1]} : vector<4x17xf32> to vector<4x1xf32>
    %219 = vector.extract_strided_slice %210 {offsets = [0, 15], sizes = [4, 1], strides = [1, 1]} : vector<4x17xf32> to vector<4x1xf32>
    %220 = tpu.concatenate %218, %210, %219 in 1 : vector<4x1xf32>, vector<4x17xf32>, vector<4x1xf32> -> vector<4x19xf32>
    %221 = vector.extract_strided_slice %209 {offsets = [0, 38], sizes = [4, 17], strides = [1, 1]} : vector<4x323xf32> to vector<4x17xf32>
    %222 = vector.extract_strided_slice %221 {offsets = [0, 1], sizes = [4, 1], strides = [1, 1]} : vector<4x17xf32> to vector<4x1xf32>
    %223 = vector.extract_strided_slice %221 {offsets = [0, 15], sizes = [4, 1], strides = [1, 1]} : vector<4x17xf32> to vector<4x1xf32>
    %224 = tpu.concatenate %222, %221, %223 in 1 : vector<4x1xf32>, vector<4x17xf32>, vector<4x1xf32> -> vector<4x19xf32>
    %225 = vector.extract_strided_slice %209 {offsets = [0, 57], sizes = [4, 17], strides = [1, 1]} : vector<4x323xf32> to vector<4x17xf32>
    %226 = vector.extract_strided_slice %225 {offsets = [0, 1], sizes = [4, 1], strides = [1, 1]} : vector<4x17xf32> to vector<4x1xf32>
    %227 = vector.extract_strided_slice %225 {offsets = [0, 15], sizes = [4, 1], strides = [1, 1]} : vector<4x17xf32> to vector<4x1xf32>
    %228 = tpu.concatenate %226, %225, %227 in 1 : vector<4x1xf32>, vector<4x17xf32>, vector<4x1xf32> -> vector<4x19xf32>
    %229 = vector.extract_strided_slice %209 {offsets = [0, 76], sizes = [4, 17], strides = [1, 1]} : vector<4x323xf32> to vector<4x17xf32>
    %230 = vector.extract_strided_slice %229 {offsets = [0, 1], sizes = [4, 1], strides = [1, 1]} : vector<4x17xf32> to vector<4x1xf32>
    %231 = vector.extract_strided_slice %229 {offsets = [0, 15], sizes = [4, 1], strides = [1, 1]} : vector<4x17xf32> to vector<4x1xf32>
    %232 = tpu.concatenate %230, %229, %231 in 1 : vector<4x1xf32>, vector<4x17xf32>, vector<4x1xf32> -> vector<4x19xf32>
    %233 = vector.extract_strided_slice %209 {offsets = [0, 95], sizes = [4, 17], strides = [1, 1]} : vector<4x323xf32> to vector<4x17xf32>
    %234 = vector.extract_strided_slice %233 {offsets = [0, 1], sizes = [4, 1], strides = [1, 1]} : vector<4x17xf32> to vector<4x1xf32>
    %235 = vector.extract_strided_slice %233 {offsets = [0, 15], sizes = [4, 1], strides = [1, 1]} : vector<4x17xf32> to vector<4x1xf32>
    %236 = tpu.concatenate %234, %233, %235 in 1 : vector<4x1xf32>, vector<4x17xf32>, vector<4x1xf32> -> vector<4x19xf32>
    %237 = vector.extract_strided_slice %209 {offsets = [0, 114], sizes = [4, 17], strides = [1, 1]} : vector<4x323xf32> to vector<4x17xf32>
    %238 = vector.extract_strided_slice %237 {offsets = [0, 1], sizes = [4, 1], strides = [1, 1]} : vector<4x17xf32> to vector<4x1xf32>
    %239 = vector.extract_strided_slice %237 {offsets = [0, 15], sizes = [4, 1], strides = [1, 1]} : vector<4x17xf32> to vector<4x1xf32>
    %240 = tpu.concatenate %238, %237, %239 in 1 : vector<4x1xf32>, vector<4x17xf32>, vector<4x1xf32> -> vector<4x19xf32>
    %241 = vector.extract_strided_slice %209 {offsets = [0, 133], sizes = [4, 17], strides = [1, 1]} : vector<4x323xf32> to vector<4x17xf32>
    %242 = vector.extract_strided_slice %241 {offsets = [0, 1], sizes = [4, 1], strides = [1, 1]} : vector<4x17xf32> to vector<4x1xf32>
    %243 = vector.extract_strided_slice %241 {offsets = [0, 15], sizes = [4, 1], strides = [1, 1]} : vector<4x17xf32> to vector<4x1xf32>
    %244 = tpu.concatenate %242, %241, %243 in 1 : vector<4x1xf32>, vector<4x17xf32>, vector<4x1xf32> -> vector<4x19xf32>
    %245 = vector.extract_strided_slice %209 {offsets = [0, 152], sizes = [4, 17], strides = [1, 1]} : vector<4x323xf32> to vector<4x17xf32>
    %246 = vector.extract_strided_slice %245 {offsets = [0, 1], sizes = [4, 1], strides = [1, 1]} : vector<4x17xf32> to vector<4x1xf32>
    %247 = vector.extract_strided_slice %245 {offsets = [0, 15], sizes = [4, 1], strides = [1, 1]} : vector<4x17xf32> to vector<4x1xf32>
    %248 = tpu.concatenate %246, %245, %247 in 1 : vector<4x1xf32>, vector<4x17xf32>, vector<4x1xf32> -> vector<4x19xf32>
    %249 = vector.extract_strided_slice %209 {offsets = [0, 171], sizes = [4, 17], strides = [1, 1]} : vector<4x323xf32> to vector<4x17xf32>
    %250 = vector.extract_strided_slice %249 {offsets = [0, 1], sizes = [4, 1], strides = [1, 1]} : vector<4x17xf32> to vector<4x1xf32>
    %251 = vector.extract_strided_slice %249 {offsets = [0, 15], sizes = [4, 1], strides = [1, 1]} : vector<4x17xf32> to vector<4x1xf32>
    %252 = tpu.concatenate %250, %249, %251 in 1 : vector<4x1xf32>, vector<4x17xf32>, vector<4x1xf32> -> vector<4x19xf32>
    %253 = vector.extract_strided_slice %209 {offsets = [0, 190], sizes = [4, 17], strides = [1, 1]} : vector<4x323xf32> to vector<4x17xf32>
    %254 = vector.extract_strided_slice %253 {offsets = [0, 1], sizes = [4, 1], strides = [1, 1]} : vector<4x17xf32> to vector<4x1xf32>
    %255 = vector.extract_strided_slice %253 {offsets = [0, 15], sizes = [4, 1], strides = [1, 1]} : vector<4x17xf32> to vector<4x1xf32>
    %256 = tpu.concatenate %254, %253, %255 in 1 : vector<4x1xf32>, vector<4x17xf32>, vector<4x1xf32> -> vector<4x19xf32>
    %257 = vector.extract_strided_slice %209 {offsets = [0, 209], sizes = [4, 17], strides = [1, 1]} : vector<4x323xf32> to vector<4x17xf32>
    %258 = vector.extract_strided_slice %257 {offsets = [0, 1], sizes = [4, 1], strides = [1, 1]} : vector<4x17xf32> to vector<4x1xf32>
    %259 = vector.extract_strided_slice %257 {offsets = [0, 15], sizes = [4, 1], strides = [1, 1]} : vector<4x17xf32> to vector<4x1xf32>
    %260 = tpu.concatenate %258, %257, %259 in 1 : vector<4x1xf32>, vector<4x17xf32>, vector<4x1xf32> -> vector<4x19xf32>
    %261 = vector.extract_strided_slice %209 {offsets = [0, 228], sizes = [4, 17], strides = [1, 1]} : vector<4x323xf32> to vector<4x17xf32>
    %262 = vector.extract_strided_slice %261 {offsets = [0, 1], sizes = [4, 1], strides = [1, 1]} : vector<4x17xf32> to vector<4x1xf32>
    %263 = vector.extract_strided_slice %261 {offsets = [0, 15], sizes = [4, 1], strides = [1, 1]} : vector<4x17xf32> to vector<4x1xf32>
    %264 = tpu.concatenate %262, %261, %263 in 1 : vector<4x1xf32>, vector<4x17xf32>, vector<4x1xf32> -> vector<4x19xf32>
    %265 = vector.extract_strided_slice %209 {offsets = [0, 247], sizes = [4, 17], strides = [1, 1]} : vector<4x323xf32> to vector<4x17xf32>
    %266 = vector.extract_strided_slice %265 {offsets = [0, 1], sizes = [4, 1], strides = [1, 1]} : vector<4x17xf32> to vector<4x1xf32>
    %267 = vector.extract_strided_slice %265 {offsets = [0, 15], sizes = [4, 1], strides = [1, 1]} : vector<4x17xf32> to vector<4x1xf32>
    %268 = tpu.concatenate %266, %265, %267 in 1 : vector<4x1xf32>, vector<4x17xf32>, vector<4x1xf32> -> vector<4x19xf32>
    %269 = vector.extract_strided_slice %209 {offsets = [0, 266], sizes = [4, 17], strides = [1, 1]} : vector<4x323xf32> to vector<4x17xf32>
    %270 = vector.extract_strided_slice %269 {offsets = [0, 1], sizes = [4, 1], strides = [1, 1]} : vector<4x17xf32> to vector<4x1xf32>
    %271 = vector.extract_strided_slice %269 {offsets = [0, 15], sizes = [4, 1], strides = [1, 1]} : vector<4x17xf32> to vector<4x1xf32>
    %272 = tpu.concatenate %270, %269, %271 in 1 : vector<4x1xf32>, vector<4x17xf32>, vector<4x1xf32> -> vector<4x19xf32>
    %273 = vector.extract_strided_slice %209 {offsets = [0, 285], sizes = [4, 17], strides = [1, 1]} : vector<4x323xf32> to vector<4x17xf32>
    %274 = vector.extract_strided_slice %273 {offsets = [0, 1], sizes = [4, 1], strides = [1, 1]} : vector<4x17xf32> to vector<4x1xf32>
    %275 = vector.extract_strided_slice %273 {offsets = [0, 15], sizes = [4, 1], strides = [1, 1]} : vector<4x17xf32> to vector<4x1xf32>
    %276 = tpu.concatenate %274, %273, %275 in 1 : vector<4x1xf32>, vector<4x17xf32>, vector<4x1xf32> -> vector<4x19xf32>
    %277 = vector.extract_strided_slice %209 {offsets = [0, 304], sizes = [4, 17], strides = [1, 1]} : vector<4x323xf32> to vector<4x17xf32>
    %278 = vector.extract_strided_slice %277 {offsets = [0, 1], sizes = [4, 1], strides = [1, 1]} : vector<4x17xf32> to vector<4x1xf32>
    %279 = vector.extract_strided_slice %277 {offsets = [0, 15], sizes = [4, 1], strides = [1, 1]} : vector<4x17xf32> to vector<4x1xf32>
    %280 = tpu.concatenate %278, %277, %279 in 1 : vector<4x1xf32>, vector<4x17xf32>, vector<4x1xf32> -> vector<4x19xf32>
    %281 = vector.extract_strided_slice %273 {offsets = [0, 1], sizes = [4, 1], strides = [1, 1]} : vector<4x17xf32> to vector<4x1xf32>
    %282 = vector.extract_strided_slice %273 {offsets = [0, 15], sizes = [4, 1], strides = [1, 1]} : vector<4x17xf32> to vector<4x1xf32>
    %283 = tpu.concatenate %281, %273, %282 in 1 : vector<4x1xf32>, vector<4x17xf32>, vector<4x1xf32> -> vector<4x19xf32>
    %284 = tpu.concatenate %213, %217, %220, %224, %228, %232, %236, %240, %244, %248, %252, %256, %260, %264, %268, %272 in 1 : vector<4x19xf32>, vector<4x19xf32>, vector<4x19xf32>, vector<4x19xf32>, vector<4x19xf32>, vector<4x19xf32>, vector<4x19xf32>, vector<4x19xf32>, vector<4x19xf32>, vector<4x19xf32>, vector<4x19xf32>, vector<4x19xf32>, vector<4x19xf32>, vector<4x19xf32>, vector<4x19xf32>, vector<4x19xf32> -> vector<4x304xf32>
    %285 = tpu.concatenate %276, %280, %283 in 1 : vector<4x19xf32>, vector<4x19xf32>, vector<4x19xf32> -> vector<4x57xf32>
    %286 = tpu.concatenate %284, %285 in 1 : vector<4x304xf32>, vector<4x57xf32> -> vector<4x361xf32>
    %c0_23 = arith.constant 0 : index
    %c0_24 = arith.constant 0 : index
    %287 = vector.load %arg7[%c0_23, %c0_24] : memref<4x36xf32, #tpu.memory_space<vmem>>, vector<4x36xf32>
    %c0_25 = arith.constant 0 : index
    %c0_26 = arith.constant 0 : index
    %288 = vector.load %arg8[%c0_25, %c0_26] : memref<4x1xf32, #tpu.memory_space<vmem>>, vector<4x1xf32>
    %cst_27 = arith.constant 0.000000e+00 : f32
    %289 = vector.broadcast %cst_27 : f32 to vector<4x2xf32>
    %290 = tpu.concatenate %286, %289 in 1 : vector<4x361xf32>, vector<4x2xf32> -> vector<4x363xf32>
    %291 = vector.extract_strided_slice %290 {offsets = [0, 0], sizes = [4, 323], strides = [1, 1]} : vector<4x363xf32> to vector<4x323xf32>
    %292 = vector.extract_strided_slice %290 {offsets = [0, 1], sizes = [4, 323], strides = [1, 1]} : vector<4x363xf32> to vector<4x323xf32>
    %293 = vector.extract_strided_slice %290 {offsets = [0, 2], sizes = [4, 323], strides = [1, 1]} : vector<4x363xf32> to vector<4x323xf32>
    %294 = vector.extract_strided_slice %290 {offsets = [0, 19], sizes = [4, 323], strides = [1, 1]} : vector<4x363xf32> to vector<4x323xf32>
    %295 = vector.extract_strided_slice %290 {offsets = [0, 20], sizes = [4, 323], strides = [1, 1]} : vector<4x363xf32> to vector<4x323xf32>
    %296 = vector.extract_strided_slice %290 {offsets = [0, 21], sizes = [4, 323], strides = [1, 1]} : vector<4x363xf32> to vector<4x323xf32>
    %297 = vector.extract_strided_slice %290 {offsets = [0, 38], sizes = [4, 323], strides = [1, 1]} : vector<4x363xf32> to vector<4x323xf32>
    %298 = vector.extract_strided_slice %290 {offsets = [0, 39], sizes = [4, 323], strides = [1, 1]} : vector<4x363xf32> to vector<4x323xf32>
    %299 = vector.extract_strided_slice %290 {offsets = [0, 40], sizes = [4, 323], strides = [1, 1]} : vector<4x363xf32> to vector<4x323xf32>
    %300 = tpu.concatenate %291, %292, %293, %294, %295, %296, %297, %298, %299 in 0 : vector<4x323xf32>, vector<4x323xf32>, vector<4x323xf32>, vector<4x323xf32>, vector<4x323xf32>, vector<4x323xf32>, vector<4x323xf32>, vector<4x323xf32>, vector<4x323xf32> -> vector<36x323xf32>
    %cst_28 = arith.constant dense<0.000000e+00> : vector<4x323xf32>
    %301 = tpu.matmul %287, %300, %cst_28 {dimension_numbers = #tpu.dot_dimension_numbers<[1], [0], [0], [1], [0, 0, 1, 1], [], []>} : vector<4x36xf32>, vector<36x323xf32>, vector<4x323xf32> -> vector<4x323xf32>
    %302 = vector.broadcast %288 : vector<4x1xf32> to vector<4x323xf32>
    %303 = arith.addf %301, %302 : vector<4x323xf32>
    %cst_29 = arith.constant 0.000000e+00 : f32
    %304 = vector.broadcast %cst_29 : f32 to vector<4x323xf32>
    %305 = arith.cmpf ogt, %303, %304 : vector<4x323xf32>
    %cst_30 = arith.constant 1.000000e-01 : f32
    %306 = vector.broadcast %cst_30 : f32 to vector<4x323xf32>
    %307 = arith.mulf %306, %303 : vector<4x323xf32>
    %308 = arith.select %305, %303, %307 : vector<4x323xi1>, vector<4x323xf32>
    %309 = vector.extract_strided_slice %308 {offsets = [0, 0], sizes = [4, 17], strides = [1, 1]} : vector<4x323xf32> to vector<4x17xf32>
    %310 = vector.extract_strided_slice %308 {offsets = [0, 19], sizes = [4, 17], strides = [1, 1]} : vector<4x323xf32> to vector<4x17xf32>
    %311 = vector.extract_strided_slice %308 {offsets = [0, 38], sizes = [4, 17], strides = [1, 1]} : vector<4x323xf32> to vector<4x17xf32>
    %312 = vector.extract_strided_slice %308 {offsets = [0, 57], sizes = [4, 17], strides = [1, 1]} : vector<4x323xf32> to vector<4x17xf32>
    %313 = vector.extract_strided_slice %308 {offsets = [0, 76], sizes = [4, 17], strides = [1, 1]} : vector<4x323xf32> to vector<4x17xf32>
    %314 = vector.extract_strided_slice %308 {offsets = [0, 95], sizes = [4, 17], strides = [1, 1]} : vector<4x323xf32> to vector<4x17xf32>
    %315 = vector.extract_strided_slice %308 {offsets = [0, 114], sizes = [4, 17], strides = [1, 1]} : vector<4x323xf32> to vector<4x17xf32>
    %316 = vector.extract_strided_slice %308 {offsets = [0, 133], sizes = [4, 17], strides = [1, 1]} : vector<4x323xf32> to vector<4x17xf32>
    %317 = vector.extract_strided_slice %308 {offsets = [0, 152], sizes = [4, 17], strides = [1, 1]} : vector<4x323xf32> to vector<4x17xf32>
    %318 = vector.extract_strided_slice %308 {offsets = [0, 171], sizes = [4, 17], strides = [1, 1]} : vector<4x323xf32> to vector<4x17xf32>
    %319 = vector.extract_strided_slice %308 {offsets = [0, 190], sizes = [4, 17], strides = [1, 1]} : vector<4x323xf32> to vector<4x17xf32>
    %320 = vector.extract_strided_slice %308 {offsets = [0, 209], sizes = [4, 17], strides = [1, 1]} : vector<4x323xf32> to vector<4x17xf32>
    %321 = vector.extract_strided_slice %308 {offsets = [0, 228], sizes = [4, 17], strides = [1, 1]} : vector<4x323xf32> to vector<4x17xf32>
    %322 = vector.extract_strided_slice %308 {offsets = [0, 247], sizes = [4, 17], strides = [1, 1]} : vector<4x323xf32> to vector<4x17xf32>
    %323 = vector.extract_strided_slice %308 {offsets = [0, 266], sizes = [4, 17], strides = [1, 1]} : vector<4x323xf32> to vector<4x17xf32>
    %324 = vector.extract_strided_slice %308 {offsets = [0, 285], sizes = [4, 17], strides = [1, 1]} : vector<4x323xf32> to vector<4x17xf32>
    %325 = vector.extract_strided_slice %308 {offsets = [0, 304], sizes = [4, 17], strides = [1, 1]} : vector<4x323xf32> to vector<4x17xf32>
    %326 = tpu.concatenate %309, %310, %311, %312, %313, %314, %315, %316, %317, %318, %319, %320, %321, %322, %323, %324 in 1 : vector<4x17xf32>, vector<4x17xf32>, vector<4x17xf32>, vector<4x17xf32>, vector<4x17xf32>, vector<4x17xf32>, vector<4x17xf32>, vector<4x17xf32>, vector<4x17xf32>, vector<4x17xf32>, vector<4x17xf32>, vector<4x17xf32>, vector<4x17xf32>, vector<4x17xf32>, vector<4x17xf32>, vector<4x17xf32> -> vector<4x272xf32>
    %327 = tpu.concatenate %326, %325 in 1 : vector<4x272xf32>, vector<4x17xf32> -> vector<4x289xf32>
    %c0_31 = arith.constant 0 : index
    %c0_32 = arith.constant 0 : index
    %c0_33 = arith.constant 0 : index
    %328 = vector.load %arg9[%c0_31, %c0_32, %c0_33] : memref<1x4x289xf32, #tpu.memory_space<vmem>>, vector<1x4x289xf32>
    %329 = vector.shape_cast %328 : vector<1x4x289xf32> to vector<4x289xf32>
    %330 = vector.shape_cast %327 : vector<4x289xf32> to vector<1x4x289xf32>
    tpu.vector_store %arg9[%c0_31, %c0_32, %c0_33], %330 {strides = array<i32>} : memref<1x4x289xf32, #tpu.memory_space<vmem>>, vector<1x4x289xf32>,
    return
  }
  func.func @transform_0(%arg0: i32) -> (i32, i32, i32, i32) {
    %c0_i32 = arith.constant 0 : i32
    %c0_i32_0 = arith.constant 0 : i32
    %c0_i32_1 = arith.constant 0 : i32
    %c0_i32_2 = arith.constant 0 : i32
    return %arg0, %c0_i32, %c0_i32_0, %c0_i32_1 : i32, i32, i32, i32
  }
  func.func @transform_1(%arg0: i32) -> (i32, i32, i32, i32) {
    %c0_i32 = arith.constant 0 : i32
    %c0_i32_0 = arith.constant 0 : i32
    %c0_i32_1 = arith.constant 0 : i32
    %c0_i32_2 = arith.constant 0 : i32
    return %arg0, %c0_i32, %c0_i32_0, %c0_i32_1 : i32, i32, i32, i32
  }
  func.func @transform_2(%arg0: i32) -> (i32, i32) {
    %c0_i32 = arith.constant 0 : i32
    %c0_i32_0 = arith.constant 0 : i32
    %c0_i32_1 = arith.constant 0 : i32
    return %c0_i32, %c0_i32_0 : i32, i32
  }
  func.func @transform_3(%arg0: i32) -> (i32, i32) {
    %c0_i32 = arith.constant 0 : i32
    %c0_i32_0 = arith.constant 0 : i32
    %c0_i32_1 = arith.constant 0 : i32
    return %c0_i32, %c0_i32_0 : i32, i32
  }
  func.func @transform_4(%arg0: i32) -> (i32, i32) {
    %c0_i32 = arith.constant 0 : i32
    %c0_i32_0 = arith.constant 0 : i32
    %c0_i32_1 = arith.constant 0 : i32
    return %c0_i32, %c0_i32_0 : i32, i32
  }
  func.func @transform_5(%arg0: i32) -> (i32, i32) {
    %c0_i32 = arith.constant 0 : i32
    %c0_i32_0 = arith.constant 0 : i32
    %c0_i32_1 = arith.constant 0 : i32
    return %c0_i32, %c0_i32_0 : i32, i32
  }
  func.func @transform_6(%arg0: i32) -> (i32, i32) {
    %c0_i32 = arith.constant 0 : i32
    %c0_i32_0 = arith.constant 0 : i32
    %c0_i32_1 = arith.constant 0 : i32
    return %c0_i32, %c0_i32_0 : i32, i32
  }
  func.func @transform_7(%arg0: i32) -> (i32, i32) {
    %c0_i32 = arith.constant 0 : i32
    %c0_i32_0 = arith.constant 0 : i32
    %c0_i32_1 = arith.constant 0 : i32
    return %c0_i32, %c0_i32_0 : i32, i32
  }
  func.func @transform_8(%arg0: i32) -> (i32, i32, i32) {
    %c0_i32 = arith.constant 0 : i32
    %c0_i32_0 = arith.constant 0 : i32
    %c0_i32_1 = arith.constant 0 : i32
    return %arg0, %c0_i32, %c0_i32_0 : i32, i32, i32
  }
}

</mosaic_0001>

<bundles_post_ra>
// kernel: tpu_custom_call.1
= control target key start
LH: loop header
LB: loop body
LE: loop exit
PB: predicated region body
PF: predicated region fallthrough
CT: control target
= control target key end

     0   :  { %s3714_s0 = inlined_call_operand.vmem [shape: f32[2,8,8,8], index: 0, kind: input, shape index: {}]   ;;  %s3715_s1 = inlined_call_operand.vmem [shape: f32[2,4,20,20], index: 1, kind: input, shape index: {}]   ;;  %s3716_s2 = inlined_call_operand.vmem [shape: f32[4,72], index: 2, kind: input, shape index: {}]   ;;  %s3717_s3 = inlined_call_operand.vmem [shape: f32[4,1], index: 3, kind: input, shape index: {}]   ;;  %s3718_s4 = inlined_call_operand.vmem [shape: f32[4,72], index: 4, kind: input, shape index: {}]   ;;  %s3719_s5 = inlined_call_operand.vmem [shape: f32[4,1], index: 5, kind: input, shape index: {}]   ;;  %s3720_s6 = inlined_call_operand.vmem [shape: f32[4,36], index: 6, kind: input, shape index: {}]   ;;  %s3721_s7 = inlined_call_operand.vmem [shape: f32[4,1], index: 7, kind: input, shape index: {}]   ;;  %s3722_s8 = inlined_call_operand.hbm [shape: f32[2,4,289], index: 8, kind: output, shape index: {}]  }
   0x1   :  { %3850 = sst [smem:[#allocation14_spill]] %s3714_s0 }
   0x2   :  { %3851 = sst [smem:[#allocation15_spill]] %s3715_s1 }
   0x3   :  { %3852 = sst [smem:[#allocation16_spill]] %s3716_s2 }
   0x4   :  { %3853 = sst [smem:[#allocation17_spill]] %s3717_s3 }
   0x5   :  { %3854 = sst [smem:[#allocation18_spill]] %s3718_s4 }
   0x6   :  { %3855 = sst [smem:[#allocation19_spill]] %s3719_s5 }
   0x7   :  { %3856 = sst [smem:[#allocation20_spill]] %s3722_s8 }
   0x8   :  { %13 = vsyncpa [#allocation3], 0 }
   0x9   :  { %15 = vsyncpa [#allocation3 + $0x1], 0  ;;  %s2645_s27 = smov 0   ;;  %s2647_s28 = smov 0  }
   0xa   :  { %s2649_s29 = smov 0   ;;  %s2651_s30 = smov 0  }
   0xb LB: > { %3857 = sst [smem:[#allocation5_spill]] %s2499_s27  ;;  %s2666_s9 = sadd.s32 4294967295, %s2511_s30   ;;  %s2511_s30 = sphi %s2651_s30, %s4053_s30   ;;  %s2507_s29 = sphi %s2649_s29, %s4056_s29   ;;  %s2503_s28 = sphi %s2647_s28, %s4055_s28   ;;  %s2499_s27 = sphi %s2645_s27, %s4054_s27  }
   0xc   : > { %3858 = sst [smem:[#allocation6_spill]] %s2503_s28  ;;  %s2151_s10 = sadd.s32 4294967294, %s2511_s30  }
   0xd   : > { %3859 = sst [smem:[#allocation7_spill]] %s2507_s29  ;;  %s2670_s11 = sadd.s32 1, %s2511_s30  }
   0xe   : > { %3860 = sst [smem:[#allocation8_spill]] %s2511_s30  ;;  %s206_s12 = sadd.s32 1, %s2507_s29 }
   0xf   : > { %3861 = sst [smem:[#allocation9_spill]] %s2666_s9  ;;  %s203_s13 = ssub.s32 %s2511_s30, %s2670_s11 }
  0x10   : > { %3862 = sst [smem:[#allocation10_spill]] %s2670_s11  ;;  %p216_p0 = scmp.ne.s32.totalorder %s2507_s29, %s2503_s28 }
  0x11   : > { %p204_p1 = scmp.eq.s32.totalorder %s203_s13, 0  ;;  %p217_p2 = scmp.eq.s32.totalorder %s2666_s9, 1 }
  0x12   : > { %p222_p3 = scmp.ne.s32.totalorder %s2503_s28, %s2499_s27  ;;  %p223_p4 = scmp.eq.s32.totalorder %s2151_s10, 1 }
  0x13   : > { %s2681_s14 = scalar_select %p204_p1, %s2507_s29, %s206_s12  }
  0x14   : > { %p2683_p5 = por %p217_p2, %p216_p0  ;;  %p2687_p6 = por %p223_p4, %p222_p3 }
  0x15   : > { %3863 = sst [smem:[#allocation11_spill]] %s2681_s14  ;;  %p2154_p7 = scmp.ge.s32.totalorder %s2511_s30, 1 }
  0x16   : > { %s3864_s15 = scalar_select %p2683_p5, 1, 0 }
  0x17   : > { %s3866_s16 = scalar_select %p2687_p6, 1, 0 }
  0x18   : > { %3865 = sst [smem:[#allocation12_spill]] %s3864_s15  ;;  %p275_p8 = scmp.lt.s32.totalorder %s2511_s30, 3 }
  0x19   : > { %3867 = sst [smem:[#allocation13_spill]] %s3866_s16 }
  0x1a   : > { %p276_p9 = pnand %p2154_p7, %p275_p8 }
  0x1b   : > { %p314_p10 = scmp.lt.s32.totalorder (!%p276_p9), %s2666_s9, 1  ;;  %s3868_s0 = sld [smem:[#allocation14_spill]] (!%p276_p9) }
  0x1c   : > { %279 = sbr.rel (%p276_p9) target bundleno = 2461 (0x99d), region = 52  ;;  %s2514_s22 = smov (!%p276_p9), 2  }
  0x1d   : > { %s3728_s23 = smov (!%p276_p9), 62   ;;  %s3747_s24 = smov (!%p276_p9), 10  }
  0x1e   : > { %s3730_s25 = smov (!%p276_p9), 114   ;;  %s3732_s26 = smov (!%p276_p9), 48  }
  0x1f   : > { %s3831_s10 = smov (!%p276_p9), 100   ;;  %s3726_s12 = smov (!%p276_p9), 24  }
  0x20   : > { %s3836_s13 = smov (!%p276_p9), 90   ;;  %s3786_s19 = smov (!%p276_p9), 88  }
  0x21   : > { %v332_v0 = vlaneseq  ;;  %s2695_s17 = scalar_select %p314_p10, %s2666_s9, 1  ;;  %vm3723_vm0 = vcmask 64512   ;;  %v2513_v5 = vmov 1.0   ;;  %vm415_vm2 = vcmask 1041409  }
  0x22   : > { %vm418_vm3 = vcmask 1042434   ;;  %vm424_vm4 = vcmask 1044484   ;;  %vm421_vm5 = vcmask 1043459   ;;  %vm427_vm6 = vcmask 1045509   ;;  %s3764_s20 = smov 109   ;;  %s3869_s1 = sld [smem:[#allocation15_spill]] }
  0x23   : > { %v333_v1 = vshrl.u32 %v332_v0, 7  ;;  %v335_v2 = vand.u32 127, %v332_v0  ;;  %s2186_s18 = sshll.u32 %s2695_s17, 6  ;;  %vm430_vm7 = vcmask 1046534   ;;  %vm433_vm8 = vcmask 1047559   ;;  %s3870_s3 = sld [smem:[#allocation17_spill]] }
  0x24   : > { %s318_s21 = scalar_lea.vmem %s3868_s0, %s2186_s18  ;;  %vm438_vm9 = vcmask 15360   ;;  %vm3735_vm10 = vcmask 138240   ;;  %vm3724_vm11 = vcmask 154624   ;;  %vm3750_vm12 = vcmask 310272   ;;  %s3808_s18 = smov 89  }
  0x25   : > { %v336_v3 = vmul.u32 2, %v333_v1  ;;  %v324_v4 = vld [vmem:[%s318_s21] sm:$0xff]  ;;  %v325_v6 = vld [vmem:[%s318_s21 + $0x8] sm:$0xff]  ;;  %v326_v7 = vld [vmem:[%s318_s21 + $0x10] sm:$0xff]  ;;  %vm3725_vm13 = vcmask 80896   ;;  %vm3744_vm14 = vcmask 39936  }
  0x26   : > { %v327_v8 = vld [vmem:[%s318_s21 + $0x18] sm:$0xff]  ;;  %v328_v9 = vld [vmem:[%s318_s21 + $0x20] sm:$0xff]  ;;  %v329_v10 = vld [vmem:[%s318_s21 + $0x28] sm:$0xff]  ;;  %vm3743_vm15 = vcmask 195584   ;;  %s3871_s2 = sld [smem:[#allocation16_spill]]  ;;  %s3901_s0 = smov 126  }
  0x27   : > { %vm337_vm1 = vcmp.eq.s32.totalorder %v335_v2, %v336_v3  ;;  %v330_v11 = vld [vmem:[%s318_s21 + $0x30] sm:$0xff]  ;;  %v331_v12 = vld [vmem:[%s318_s21 + $0x38] sm:$0xff]  ;;  %s3756_s21 = smov 108   ;;  %s3903_s5 = sld [smem:[#allocation19_spill]] }
  0x28   : > { %2159 = vmatpush.msk.msra.mxu0 %vm337_vm1, %v2513_v5  ;;  %vm3739_vm1 = vcmask 236544   ;;  %s3905_s4 = sld [smem:[#allocation18_spill]]  ;;  %s3920_s29 = smov 34  }
  0x29   : > { %2160 = vmatmul.msk.f32.vlgmr.msra.gmra.mxu0 %vm3723_vm0, %v324_v4  ;;  %s3921_s14 = smov 32   ;;  %s3925_s11 = smov 91  }
  0x2a   : > { %s3926_s16 = smov 1   ;;  %s3932_s27 = smov 93  }
  0x2b   : > { %s3934_s30 = smov 83   ;;  %s3937_s15 = smov 79  }
  0x2c   : > { %s3938_s8 = smov 117   ;;  %s3939_s9 = smov 121  }
  0x2d   : > { %s3947_s28 = smov 84  }
  0x31   : > { %2161 = vmatmul.msk.f32.gmra.mxu0 %vm3723_vm0, %v325_v6 }
  0x39   : > { %2162 = vmatmul.msk.f32.gmra.mxu0 %vm3723_vm0, %v326_v7 }
  0x41   : > { %2163 = vmatmul.msk.f32.gmra.mxu0 %vm3723_vm0, %v327_v8 }
  0x49   : > { %2164 = vmatmul.msk.f32.gmra.mxu0 %vm3723_vm0, %v328_v9 }
  0x51   : > { %2165 = vmatmul.msk.f32.gmra.mxu0 %vm3723_vm0, %v329_v10 }
  0x59   : > { %2166 = vmatmul.msk.f32.gmra.mxu0 %vm3723_vm0, %v330_v11 }
  0x61   : > { %2167 = vmatmul.msk.f32.gmra.mxu0 %vm3723_vm0, %v331_v12  ;;  %vm3734_vm0 = vcmask 818176  }
  0xa6   : > { %v382_v13 = vpop.f32.mrf.mxu0 }
  0xa7   : > { %v442_v19 = vrot.slane %v382_v13, 1  ;;  %v537_v20 = vrot.slane %v382_v13, 6  ;;  %v499_v22 = vrot.slane %v382_v13, 4  ;;  %v461_v25 = vrot.slane %v382_v13, 2 }
  0xa8   : > { %v556_v27 = vrot.slane %v382_v13, 7  ;;  %v518_v29 = vrot.slane %v382_v13, 5  ;;  %v480_v34 = vrot.slane %v382_v13, 3 }
  0xae   : > { %v385_v14 = vpop.f32.mrf.mxu0 }
  0xaf   : > { %v538_v21 = vrot.slane %v385_v14, 5  ;;  %v500_v23 = vrot.slane %v385_v14, 3  ;;  %v414_v24 = vrot.slane %v385_v14, 7  ;;  %v462_v26 = vrot.slane %v385_v14, 1 }
  0xb0   : > { %v557_v28 = vrot.slane %v385_v14, 6  ;;  %v519_v30 = vrot.slane %v385_v14, 4  ;;  %v481_v31 = vrot.slane %v385_v14, 2  ;;  %v443_v35 = vsel %vm415_vm2, %v385_v14, %v442_v19 }
  0xb1   : > { %v539_v38 = vsel %vm415_vm2, %v538_v21, %v537_v20  ;;  %v501_v39 = vsel %vm415_vm2, %v500_v23, %v499_v22  ;;  %v463_v40 = vsel %vm415_vm2, %v462_v26, %v461_v25  ;;  %v416_v43 = vsel %vm415_vm2, %v414_v24, %v382_v13 }
  0xb2   : > { %v558_v45 = vsel %vm415_vm2, %v557_v28, %v556_v27  ;;  %v520_v46 = vsel %vm415_vm2, %v519_v30, %v518_v29  ;;  %v482_v47 = vsel %vm415_vm2, %v481_v31, %v480_v34  ;;  %vm3740_vm2 = vcmask 351232  }
  0xb6   : > { %v388_v15 = vpop.f32.mrf.mxu0 }
  0xb7   : > { %v540_v32 = vrot.slane %v388_v15, 4  ;;  %v502_v33 = vrot.slane %v388_v15, 2  ;;  %v417_v36 = vrot.slane %v388_v15, 6  ;;  %v444_v37 = vrot.slane %v388_v15, 7 }
  0xb8   : > { %v559_v41 = vrot.slane %v388_v15, 5  ;;  %v521_v42 = vrot.slane %v388_v15, 3  ;;  %v483_v48 = vrot.slane %v388_v15, 1  ;;  %v464_v51 = vsel %vm418_vm3, %v388_v15, %v463_v40 }
  0xb9   : > { %v541_v49 = vsel %vm418_vm3, %v540_v32, %v539_v38  ;;  %v503_v50 = vsel %vm418_vm3, %v502_v33, %v501_v39  ;;  %v419_v54 = vsel %vm418_vm3, %v417_v36, %v416_v43  ;;  %v445_v55 = vsel %vm418_vm3, %v444_v37, %v443_v35 }
  0xba   : > { %v560_v58 = vsel %vm418_vm3, %v559_v41, %v558_v45  ;;  %v522_v59 = vsel %vm418_vm3, %v521_v42, %v520_v46  ;;  %v484_v63 = vsel %vm418_vm3, %v483_v48, %v482_v47  ;;  %vm3738_vm3 = vcmask 392192  }
  0xbe   : > { %v2709_v16 = vpop.f32.mrf.mxu0 }
  0xbf   : > { %v542_v52 = vrot.slane %v2709_v16, 3  ;;  %v504_v53 = vrot.slane %v2709_v16, 1  ;;  %v465_v57 = vrot.slane %v2709_v16, 7  ;;  %v561_v1 = vrot.slane %v2709_v16, 4 }
  0xc0   : > { %v523_v2 = vrot.slane %v2709_v16, 2  ;;  %v420_v10 = vrot.slane %v2709_v16, 5  ;;  %v446_v15 = vrot.slane %v2709_v16, 6  ;;  %v485_v33 = vsel %vm421_vm5, %v2709_v16, %v484_v63 }
  0xc1   : > { %v543_v3 = vsel %vm421_vm5, %v542_v52, %v541_v49  ;;  %v505_v4 = vsel %vm421_vm5, %v504_v53, %v503_v50  ;;  %v466_v9 = vsel %vm421_vm5, %v465_v57, %v464_v51  ;;  %v562_v31 = vsel %vm421_vm5, %v561_v1, %v560_v58 }
  0xc2   : > { %v524_v32 = vsel %vm421_vm5, %v523_v2, %v522_v59  ;;  %v422_v37 = vsel %vm421_vm5, %v420_v10, %v419_v54  ;;  %v447_v38 = vsel %vm421_vm5, %v446_v15, %v445_v55  ;;  %vm3736_vm5 = vcmask 662528  }
  0xc6   : > { %v2711_v17 = vpop.f32.mrf.mxu0 }
  0xc7   : > { %v544_v56 = vrot.slane %v2711_v17, 2  ;;  %v467_v62 = vrot.slane %v2711_v17, 6  ;;  %v506_v8 = vsel %vm424_vm4, %v2711_v17, %v505_v4  ;;  %v563_v26 = vrot.slane %v2711_v17, 3 }
  0xc8   : > { %v525_v30 = vrot.slane %v2711_v17, 1  ;;  %v486_v34 = vrot.slane %v2711_v17, 7  ;;  %v423_v16 = vrot.slane %v2711_v17, 4  ;;  %v448_v46 = vrot.slane %v2711_v17, 5 }
  0xc9   : > { %v545_v7 = vsel %vm424_vm4, %v544_v56, %v543_v3  ;;  %v468_v14 = vsel %vm424_vm4, %v467_v62, %v466_v9  ;;  %v564_v42 = vsel %vm424_vm4, %v563_v26, %v562_v31 }
  0xca   : > { %v526_v43 = vsel %vm424_vm4, %v525_v30, %v524_v32  ;;  %v487_v48 = vsel %vm424_vm4, %v486_v34, %v485_v33  ;;  %v425_v62 = vsel %vm424_vm4, %v423_v16, %v422_v37  ;;  %v449_v63 = vsel %vm424_vm4, %v448_v46, %v447_v38 }
  0xcb   : > { %vm3737_vm4 = vcmask 506880  }
  0xce   : > { %v2713_v18 = vpop.f32.mrf.mxu0 }
  0xcf   : > { %v546_v60 = vrot.slane %v2713_v18, 1  ;;  %v507_v61 = vrot.slane %v2713_v18, 7  ;;  %v469_v0 = vrot.slane %v2713_v18, 5  ;;  %v565_v35 = vrot.slane %v2713_v18, 2 }
  0xd0   : > { %v488_v36 = vrot.slane %v2713_v18, 6  ;;  %v527_v47 = vsel %vm427_vm6, %v2713_v18, %v526_v43  ;;  %v426_v50 = vrot.slane %v2713_v18, 3  ;;  %v450_v54 = vrot.slane %v2713_v18, 4 }
  0xd1   : > { %v547_v12 = vsel %vm427_vm6, %v546_v60, %v545_v7  ;;  %v508_v13 = vsel %vm427_vm6, %v507_v61, %v506_v8  ;;  %v470_v21 = vsel %vm427_vm6, %v469_v0, %v468_v14  ;;  %v566_v51 = vsel %vm427_vm6, %v565_v35, %v564_v42 }
  0xd2   : > { %v489_v52 = vsel %vm427_vm6, %v488_v36, %v487_v48  ;;  %v451_v0 = vsel %vm427_vm6, %v450_v54, %v449_v63 }
  0xd6   : > { %v2720_v44 = vpop.f32.mrf.mxu0 }
  0xd7   : > { %v509_v5 = vrot.slane %v2720_v44, 6  ;;  %v471_v6 = vrot.slane %v2720_v44, 4  ;;  %v548_v23 = vsel %vm430_vm7, %v2720_v44, %v547_v12  ;;  %v567_v39 = vrot.slane %v2720_v44, 1 }
  0xd8   : > { %v528_v40 = vrot.slane %v2720_v44, 7  ;;  %v490_v41 = vrot.slane %v2720_v44, 5  ;;  %v429_v53 = vrot.slane %v2720_v44, 2  ;;  %v452_v57 = vrot.slane %v2720_v44, 3 }
  0xd9   : > { %v510_v24 = vsel %vm430_vm7, %v509_v5, %v508_v13  ;;  %v472_v25 = vsel %vm430_vm7, %v471_v6, %v470_v21  ;;  %v568_v55 = vsel %vm430_vm7, %v567_v39, %v566_v51  ;;  %v428_v44 = vsel %vm427_vm6, %v426_v50, %v425_v62 }
  0xda   : > { %v529_v17 = vsel %vm430_vm7, %v528_v40, %v527_v47  ;;  %v491_v56 = vsel %vm430_vm7, %v490_v41, %v489_v52  ;;  %v431_v1 = vsel %vm430_vm7, %v429_v53, %v428_v44  ;;  %v453_v2 = vsel %vm430_vm7, %v452_v57, %v451_v0 }
  0xde   : > { %v2752_v11 = vpop.f32.mrf.mxu0 }
  0xdf   : > { %v549_v19 = vrot.slane %v2752_v11, 7  ;;  %v511_v20 = vrot.slane %v2752_v11, 5  ;;  %v473_v22 = vrot.slane %v2752_v11, 3  ;;  %v530_v45 = vrot.slane %v2752_v11, 6 }
  0xe0   : > { %v492_v49 = vrot.slane %v2752_v11, 4  ;;  %v569_v58 = vsel %vm433_vm8, %v2752_v11, %v568_v55  ;;  %v432_v60 = vrot.slane %v2752_v11, 1  ;;  %v454_v61 = vrot.slane %v2752_v11, 2 }
  0xe1   : > { %v550_v27 = vsel %vm433_vm8, %v549_v19, %v548_v23  ;;  %v512_v28 = vsel %vm433_vm8, %v511_v20, %v510_v24  ;;  %v474_v29 = vsel %vm433_vm8, %v473_v22, %v472_v25  ;;  %v531_v59 = vsel %vm433_vm8, %v530_v45, %v529_v17 }
  0xe2   : > { %551 = vrot.lane.b32.xlu0 %v550_v27, %s2514_s22  ;;  %513 = vrot.lane.b32.xlu2 %v512_v28, %s2514_s22  ;;  %v493_v18 = vsel %vm433_vm8, %v492_v49, %v491_v56  ;;  %v434_v3 = vsel %vm433_vm8, %v432_v60, %v431_v1  ;;  %v455_v4 = vsel %vm433_vm8, %v454_v61, %v453_v2 }
  0xe3   : > { %475 = vrot.lane.b32.xlu1 %v474_v29, %s2514_s22  ;;  %v2316_v5 = vpack.i.bf16 %v455_v4, %v434_v3 }
  0xea   : > { %570 = vrot.lane.b32.xlu0 %v569_v58, %s2514_s22  ;;  %532 = vrot.lane.b32.xlu2 %v531_v59, %s2514_s22 }
  0xeb   : > { %494 = vrot.lane.b32.xlu1 %v493_v18, %s2514_s22 }
  0xf2   : > { %2317 = vrot.lane.b32.xlu2 %v2316_v5, %s2514_s22  ;;  %s3782_s22 = smov 107  }
 0x13c   : > { %v514_v6 = vpop.permute.xlu2 %513 }
 0x13d   : > { %v516_v7 = vsel %vm438_vm9, 0.0, %v514_v6 }
 0x13e   : > { %v517_v8 = vsel %vm3735_vm10, %v516_v7, 0.0 }
 0x13f   : > { %592 = vrot.lane.b32.xlu2 %v517_v8, %s3728_s23  ;;  %s3745_s23 = smov 38  }
 0x144   : > { %v533_v22 = vpop.permute.xlu2 %532 }
 0x145   : > { %v535_v25 = vsel %vm438_vm9, 0.0, %v533_v22 }
 0x146   : > { %v536_v27 = vsel %vm3735_vm10, %v535_v25, 0.0 }
 0x14c   : > { %v2318_v31 = vpop.permute.xlu2 %2317 }
 0x14d   : > { %v2319_v48 = vunpack.i.l.bf16 %v2318_v31  ;;  %v2320_v51 = vunpack.i.h.bf16 %v2318_v31 }
 0x14f   : > { %v439_v49 = vsel %vm438_vm9, 0.0, %v2319_v48  ;;  %v459_v52 = vsel %vm438_vm9, 0.0, %v2320_v51 }
 0x150   : > { %v441_v50 = vsel %vm3735_vm10, %v439_v49, 0.0  ;;  %v460_v53 = vsel %vm3735_vm10, %v459_v52, 0.0 }
 0x154   : > { %v552_v9 = vpop.permute.xlu0 %551 }
 0x155   : > { %v554_v10 = vsel %vm438_vm9, 0.0, %v552_v9  ;;  %v476_v12 = vpop.permute.xlu1 %475 }
 0x156   : > { %v555_v11 = vsel %vm3735_vm10, %v554_v10, 0.0  ;;  %v478_v13 = vsel %vm438_vm9, 0.0, %v476_v12 }
 0x157   : > { %600 = vrot.lane.b32.xlu0 %v555_v11, %s3747_s24  ;;  %v479_v20 = vsel %vm3735_vm10, %v478_v13, 0.0  ;;  %s2537_s24 = smov 23  }
 0x15c   : > { %v571_v14 = vpop.permute.xlu0 %570 }
 0x15d   : > { %v573_v15 = vsel %vm438_vm9, 0.0, %v571_v14  ;;  %v495_v24 = vpop.permute.xlu1 %494 }
 0x15e   : > { %v574_v19 = vsel %vm3735_vm10, %v573_v15, 0.0  ;;  %v497_v26 = vsel %vm438_vm9, 0.0, %v495_v24  ;;  %vm725_vm9 = vcmask 728064  }
 0x15f   : > { %584 = vrot.lane.b32.xlu0 %v479_v20, %s3730_s25  ;;  %v632_v21 = vsel %vm3724_vm11, %v574_v19, 0.0  ;;  %v498_v28 = vsel %vm3735_vm10, %v497_v26, 0.0  ;;  %vm642_vm11 = vcmask 859136   ;;  %s3780_s25 = smov 126   ;;  %vm713_vm10 = vcmask 736256  }
 0x160   : > { %v633_v23 = vsel %vm3750_vm12, %v632_v21, 0.0 }
 0x161   : > { %635 = vrot.lane.b32.xlu1 %v633_v23, %s3732_s26  ;;  %s3741_s26 = smov 76  }
 0x167   : > { %596 = vrot.lane.b32.xlu0 %v536_v27, %s3831_s10 }
 0x169   : > { %588 = vrot.lane.b32.xlu1 %v498_v28, %s3726_s12  ;;  %s3761_s12 = smov 127  }
 0x199   : > { %v593_v37 = vpop.permute.xlu2 %592 }
 0x1c9   : > { %v601_v29 = vpop.permute.xlu0 %600 }
 0x1ca   : > { %v628_v33 = vsel %vm3725_vm13, 0.0, %v601_v29  ;;  %vm625_vm13 = vcmask 973824  }
 0x1cb   : > { %v630_v38 = vsel %vm3739_vm1, %v628_v33, 0.0  ;;  %vm3749_vm1 = vcmask 1031168  }
 0x1d1   : > { %v2842_v32 = vpop.permute.xlu0 %584 }
 0x1d2   : > { %v614_v34 = vsel %vm3744_vm14, %v2842_v32, 0.0  ;;  %vm607_vm14 = vcmask 621568  }
 0x1d3   : > { %v636_v30 = vpop.permute.xlu1 %635 }
 0x1d4   : > { %v2851_v40 = vsel %vm3738_vm3, %v630_v38, %v636_v30  ;;  %vm3825_vm3 = vcmask 891904  }
 0x1d5   : > { %v643_v45 = vsel %vm642_vm11, %v2851_v40, 0.0 }
 0x1d9   : > { %v597_v16 = vpop.permute.xlu0 %596 }
 0x1db   : > { %v589_v35 = vpop.permute.xlu1 %588 }
 0x1dc   : > { %v616_v36 = vsel %vm3743_vm15, %v614_v34, %v589_v35  ;;  %vm605_vm15 = vcmask 465920  }
 0x1dd   : > { %v618_v39 = vsel %vm3740_vm2, %v616_v36, 0.0  ;;  %vm3822_vm2 = vcmask 1039360  }
 0x1de   : > { %v620_v41 = vsel %vm3737_vm4, %v618_v39, %v593_v37  ;;  %vm3827_vm4 = vcmask 883712  }
 0x1df   : > { %v622_v42 = vsel %vm3736_vm5, %v620_v41, 0.0  ;;  %vm3752_vm5 = vcmask 875520  }
 0x1e0   : > { %v2856_v43 = vsel %vm3734_vm0, %v622_v42, %v597_v16  ;;  %vm737_vm0 = vcmask 719872  }
 0x1e1   : > { %v626_v46 = vsel %vm625_vm13, %v2856_v43, 0.0 }
 0x1e2   : > { %v2331_v47 = vpack.i.bf16 %v626_v46, %v643_v45 }
 0x1e4   : > { %2332 = vrot.lane.b32.xlu0 %v2331_v47, %s3836_s13  ;;  %2327 = vrot.lane.b32.xlu2 %v2331_v47, %s3808_s18 }
 0x1e5   : > { %2322 = vrot.lane.b32.xlu1 %v2331_v47, %s3786_s19 }
 0x1ec   : > { %2347 = vrot.lane.b32.xlu0 %v2331_v47, %s3764_s20  ;;  %2342 = vrot.lane.b32.xlu2 %v2331_v47, %s3756_s21 }
 0x1ed   : > { %2337 = vrot.lane.b32.xlu1 %v2331_v47, %s3782_s22 }
 0x1f4   : > { %2357 = vrot.lane.b32.xlu2 %v2331_v47, %s3761_s12  ;;  %576 = vrot.lane.b32.xlu0 %v441_v50, %s3745_s23  ;;  %s2531_s23 = smov 28  }
 0x1f5   : > { %2352 = vrot.lane.b32.xlu1 %v2331_v47, %s3780_s25 }
 0x1fd   : > { %580 = vrot.lane.b32.xlu1 %v460_v53, %s3741_s26  ;;  %s2188_s26 = smul.u32 96, %s2695_s17 }
 0x1ff   : > { %s2937_s17 = scalar_lea.vmem %s3869_s1, %s2188_s26  ;;  %s2534_s26 = smov 18  }
 0x200   : > { %v2947_v28 = vld [vmem:[%s2937_s17] sm:$0xff]  ;;  %v2950_v29 = vld [vmem:[%s2937_s17 + $0x18] sm:$0xff]  ;;  %v2963_v31 = vld [vmem:[%s2937_s17 + $0x30] sm:$0xff]  ;;  %s3902_s1 = smov 90  }
 0x201   : > { %v854_v33 = vrot.slane %v2947_v28, 5  ;;  %v855_v34 = vrot.slane %v2950_v29, 4  ;;  %v857_v35 = vrot.slane %v2963_v31, 3  ;;  %v2986_v41 = vld [vmem:[%s2937_s17 + $0x10] sm:$0xf]  ;;  %v3005_v52 = vld [vmem:[%s2937_s17 + $0x8] sm:$0xff] }
 0x202   : > { %v2989_v16 = vld [vmem:[%s2937_s17 + $0x28] sm:$0xf]  ;;  %v2992_v42 = vld [vmem:[%s2937_s17 + $0x40] sm:$0xf]  ;;  %v2997_v46 = vld [vmem:[%s2937_s17 + $0x58] sm:$0xf] }
 0x203   : > { %v856_v36 = vsel %vm427_vm6, %v855_v34, %v854_v33  ;;  %v1188_v45 = vrot.slane %v2989_v16, 3  ;;  %v1190_v47 = vrot.slane %v2992_v42, 2  ;;  %v1192_v49 = vrot.slane %v2997_v46, 1  ;;  %v3008_v53 = vld [vmem:[%s2937_s17 + $0x38] sm:$0xff] }
 0x204   : > { %v858_v38 = vsel %vm430_vm7, %v857_v35, %v856_v36  ;;  %v1161_v35 = vrot.slane %v3005_v52, 3 }
 0x23e   : > { %v2876_v54 = vpop.permute.xlu2 %2327 }
 0x23f   : > { %v2330_v56 = vunpack.i.h.bf16 %v2876_v54  ;;  %v2329_v59 = vunpack.i.l.bf16 %v2876_v54 }
 0x241   : > { %v727_v63 = vsel %vm725_vm9, %v2330_v56, %v2329_v59 }
 0x246   : > { %v2891_v62 = vpop.permute.xlu2 %2342 }
 0x247   : > { %v2345_v2 = vunpack.i.h.bf16 %v2891_v62  ;;  %v2344_v5 = vunpack.i.l.bf16 %v2891_v62 }
 0x249   : > { %v691_v9 = vsel %vm3827_vm4, %v2345_v2, %v2344_v5 }
 0x24e   : > { %v2915_v10 = vpop.permute.xlu2 %2357 }
 0x24f   : > { %v2360_v13 = vunpack.i.h.bf16 %v2915_v10  ;;  %v2359_v19 = vunpack.i.l.bf16 %v2915_v10 }
 0x251   : > { %v655_v23 = vsel %vm3822_vm2, %v2360_v13, %v2359_v19 }
 0x256   : > { %v2878_v55 = vpop.permute.xlu0 %2332 }
 0x257   : > { %v2880_v17 = vpop.permute.xlu1 %2322  ;;  %v2335_v60 = vunpack.i.h.bf16 %v2878_v55  ;;  %v2334_v18 = vunpack.i.l.bf16 %v2878_v55 }
 0x258   : > { %v2325_v57 = vunpack.i.h.bf16 %v2880_v17  ;;  %v2324_v58 = vunpack.i.l.bf16 %v2880_v17  ;;  %v944_v17 = vrot.slane %v2947_v28, 2 }
 0x259   : > { %v715_v44 = vsel %vm713_vm10, %v2335_v60, %v2334_v18 }
 0x25a   : > { %799 = vmatpush.msra.mxu3 %v2324_v58  ;;  %v739_v61 = vsel %vm737_vm0, %v2325_v57, %v2324_v58  ;;  %v1112_v58 = vrot.slane %v3005_v52, 1 }
 0x25b   : > { %779 = vmatpush.msra.mxu2 %v739_v61  ;;  %v3015_v61 = vld [vmem:[%s2937_s17 + $0x20] sm:$0xff] }
 0x25c   : > { %800 = vmatpush.msra.mxu3 %v2329_v59  ;;  %v641_v59 = vld [vmem:[%s3870_s3] sm:$0xf]  ;;  %v1162_v36 = vrot.slane %v3015_v61, 2  ;;  %v999_v55 = vrot.slane %v3015_v61, 3  ;;  %s3919_s3 = smov 15  }
 0x25d   : > { %780 = vmatpush.msra.mxu2 %v727_v63  ;;  %v1114_v63 = vrot.slane %v3008_v53, 7 }
 0x25e   : > { %801 = vmatpush.msra.mxu3 %v2334_v18  ;;  %v2899_v0 = vpop.permute.xlu0 %2347  ;;  %v3018_v18 = vld [vmem:[%s2937_s17 + $0x50] sm:$0xff] }
 0x25f   : > { %v2901_v1 = vpop.permute.xlu1 %2337  ;;  %781 = vmatpush.msra.mxu2 %v715_v44  ;;  %v2350_v6 = vunpack.i.h.bf16 %v2899_v0  ;;  %v2349_v8 = vunpack.i.l.bf16 %v2899_v0  ;;  %v2532_v44 = vmov 0   ;;  %v1070_v0 = vrot.slane %v3008_v53, 5 }
 0x260   : > { %v2340_v3 = vunpack.i.h.bf16 %v2901_v1  ;;  %v2339_v4 = vunpack.i.l.bf16 %v2901_v1  ;;  %2366 = vset.pattern.permute.xlu1 %v2532_v44  ;;  %2412 = vset.pattern.permute.xlu2 %v2532_v44 }
 0x261   : > { %v679_v11 = vsel %vm3825_vm3, %v2350_v6, %v2349_v8  ;;  %2448 = vset.pattern.permute.xlu0 %v2532_v44 }
 0x262   : > { %802 = vmatpush.msra.mxu3 %v2339_v4  ;;  %v703_v7 = vsel %vm3752_vm5, %v2340_v3, %v2339_v4  ;;  %v1113_v4 = vsel %vm427_vm6, %v3015_v61, %v1112_v58 }
 0x263   : > { %782 = vmatpush.msra.mxu2 %v703_v7  ;;  %v1115_v7 = vsel %vm430_vm7, %v1114_v63, %v1113_v4  ;;  %v1090_v63 = vrot.slane %v3015_v61, 7  ;;  %v1092_v4 = vrot.slane %v3008_v53, 6 }
 0x264   : > { %803 = vmatpush.msra.mxu3 %v2344_v5  ;;  %v1116_v5 = vrot.slane %v3018_v18, 6 }
 0x265   : > { %783 = vmatpush.msra.mxu2 %v691_v9  ;;  %v3029_v9 = vld [vmem:[%s3871_s2] sm:$0xf]  ;;  %s3918_s2 = smov 13  }
 0x266   : > { %804 = vmatpush.msra.mxu3 %v2349_v8  ;;  %v577_v20 = vpop.permute.xlu0 %576  ;;  %v1117_v8 = vsel %vm433_vm8, %v1116_v5, %v1115_v7  ;;  %v1094_v5 = vrot.slane %v3018_v18, 5 }
 0x267   : > { %v2920_v12 = vpop.permute.xlu1 %2352  ;;  %784 = vmatpush.msra.mxu2 %v679_v11  ;;  %v604_v22 = vsel %vm3750_vm12, 0.0, %v577_v20  ;;  %vm3751_vm12 = vcmask 932864   ;;  %v828_v11 = vrot.slane %v2947_v28, 6  ;;  %v831_v20 = vrot.slane %v2963_v31, 4 }
 0x268   : > { %v2355_v14 = vunpack.i.h.bf16 %v2920_v12  ;;  %v2354_v15 = vunpack.i.l.bf16 %v2920_v12  ;;  %v606_v24 = vsel %vm605_vm15, %v604_v22, 0.0  ;;  %v969_v22 = vrot.slane %v2963_v31, 1 }
 0x26a   : > { %805 = vmatpush.msra.mxu3 %v2354_v15  ;;  %v667_v21 = vsel %vm3749_vm1, %v2355_v14, %v2354_v15  ;;  %vm609_vm1 = vcmask 777216   ;;  %v829_v15 = vrot.slane %v2950_v29, 5 }
 0x26b   : > { %785 = vmatpush.msra.mxu2 %v667_v21  ;;  %v967_v21 = vrot.slane %v2950_v29, 2 }
 0x26c   : > { %806 = vmatpush.msra.mxu3 %v2359_v19  ;;  %v966_v19 = vrot.slane %v2947_v28, 3 }
 0x26d   : > { %786 = vmatpush.msra.mxu2 %v655_v23  ;;  %v830_v23 = vsel %vm427_vm6, %v829_v15, %v828_v11 }
 0x26e   : > { %2171 = vmatpush.msk.msra.mxu3 %vm642_vm11, %v2851_v40 }
 0x26f   : > { %2169 = vmatpush.msk.msra.mxu2 %vm625_vm13, %v2856_v43  ;;  %v581_v25 = vpop.permute.xlu1 %580  ;;  %v1187_v43 = vrot.slane %v2986_v41, 4 }
 0x270   : > { %v608_v26 = vsel %vm607_vm14, %v606_v24, %v581_v25  ;;  %v832_v25 = vsel %vm430_vm7, %v831_v20, %v830_v23  ;;  %v1047_v23 = vrot.slane %v3008_v53, 4 }
 0x271   : > { %v610_v27 = vsel %vm609_vm1, %v608_v26, 0.0  ;;  %v1189_v48 = vsel %vm427_vm6, %v1188_v45, %v1187_v43  ;;  %v968_v26 = vsel %vm427_vm6, %v967_v21, %v966_v19  ;;  %v1024_v43 = vrot.slane %v3008_v53, 3 }
 0x272   : > { %v2954_v30 = vsel %vm3751_vm12, %v610_v27, %v2842_v32  ;;  %v2968_v32 = vld [vmem:[%s2937_s17 + $0x48] sm:$0xff]  ;;  %v1191_v50 = vsel %vm430_vm7, %v1190_v47, %v1189_v48  ;;  %vm3826_vm12 = vcmask 588800   ;;  %v970_v33 = vsel %vm430_vm7, %v969_v22, %v968_v26  ;;  %s2536_s17 = smov 9  }
 0x273   : > { %707 = vrot.lane.b32.xlu1 %v2954_v30, %s3836_s13  ;;  %719 = vrot.lane.b32.xlu0 %v2954_v30, %s3808_s18  ;;  %v859_v37 = vrot.slane %v2968_v32, 2  ;;  %v1193_v51 = vsel %vm433_vm8, %v1192_v49, %v1191_v50  ;;  %v833_v24 = vrot.slane %v2968_v32, 3  ;;  %v971_v34 = vsel %vm433_vm8, %v2968_v32, %v970_v33 }
 0x274   : > { %731 = vrot.lane.b32.xlu2 %v2954_v30, %s3786_s19  ;;  %2172 = vmatmul.msk.f32.vlgmr.msra.gmra.mxu3 %vm3826_vm12, %v3029_v9  ;;  %v1163_v47 = vsel %vm427_vm6, %v1162_v36, %v1161_v35  ;;  %v1026_v49 = vrot.slane %v3018_v18, 2  ;;  %v948_v44 = vrot.slane %v2968_v32, 7  ;;  %v1044_v21 = vrot.slane %v3005_v52, 6 }
 0x275   : > { %v860_v39 = vsel %vm433_vm8, %v859_v37, %v858_v38  ;;  %2170 = vmatmul.msk.f32.vlgmr.msra.gmra.mxu2 %vm3826_vm12, %v3029_v9  ;;  %v834_v27 = vsel %vm433_vm8, %v833_v24, %v832_v25  ;;  %v1021_v37 = vrot.slane %v3005_v52, 5  ;;  %v1022_v38 = vrot.slane %v3015_v61, 4 }
 0x276   : > { %v2361_v40 = vpack.i.bf16 %v860_v39, %v2954_v30  ;;  %v1045_v22 = vrot.slane %v3015_v61, 5  ;;  %v1049_v24 = vrot.slane %v3018_v18, 3  ;;  %v877_v25 = vrot.slane %v2947_v28, 7 }
 0x277   : > { %v1023_v48 = vsel %vm427_vm6, %v1022_v38, %v1021_v37  ;;  %v878_v26 = vrot.slane %v2950_v29, 6  ;;  %v882_v33 = vrot.slane %v2968_v32, 4  ;;  %v900_v35 = vrot.slane %v2950_v29, 7 }
 0x278   : > { %v922_v38 = vrot.slane %v2947_v28, 1 }
 0x279   : > { %v879_v37 = vsel %vm427_vm6, %v878_v26, %v877_v25  ;;  %v1003_v25 = vrot.slane %v3018_v18, 1 }
 0x27b   : > { %671 = vrot.lane.b32.xlu1 %v2954_v30, %s3764_s20  ;;  %683 = vrot.lane.b32.xlu0 %v2954_v30, %s3756_s21  ;;  %s3770_s20 = smov 12  }
 0x27c   : > { %695 = vrot.lane.b32.xlu2 %v2954_v30, %s3782_s22 }
 0x283   : > { %2362 = vrot.lane.b32.xlu0 %v2361_v40, %s3761_s12  ;;  %745 = vperm.xlu1 %2366, %v641_v59   ;;  %v1164_v40 = vrot.slane %v3008_v53, 1 }
 0x284   : > { %659 = vrot.lane.b32.xlu2 %v2954_v30, %s3780_s25 }
 0x285   : > { %v1165_v50 = vsel %vm430_vm7, %v1164_v40, %v1163_v47  ;;  %v901_v47 = vsel %vm427_vm6, %v900_v35, %v2947_v28  ;;  %v1134_v28 = vrot.slane %v3005_v52, 2 }
 0x286   : > { %v1166_v58 = vsel %vm433_vm8, %v3018_v18, %v1165_v50  ;;  %v1210_v50 = vrot.slane %v2986_v41, 5  ;;  %v1135_v41 = vrot.slane %v3015_v61, 1 }
 0x28b   : > { %1194 = vrot.lane.b32.xlu0 %v1193_v51, %s2531_s23  ;;  %s2533_s23 = smov 99   ;;  %835 = vrot.lane.b32.xlu1 %v834_v27, %s2534_s26  ;;  %v1025_v51 = vsel %vm430_vm7, %v1024_v43, %v1023_v48  ;;  %s2538_s26 = smov 94   ;;  %v880_v27 = vrot.slane %v2963_v31, 5  ;;  %v902_v43 = vrot.slane %v2963_v31, 6  ;;  %v924_v48 = vrot.slane %v2963_v31, 7 }
 0x28c   : > { %v1027_v59 = vsel %vm433_vm8, %v1026_v49, %v1025_v51  ;;  %v923_v49 = vsel %vm427_vm6, %v2950_v29, %v922_v38  ;;  %v1211_v51 = vrot.slane %v2989_v16, 4 }
 0x28d   : > { %v881_v40 = vsel %vm430_vm7, %v880_v27, %v879_v37  ;;  %v1068_v27 = vrot.slane %v3015_v61, 6 }
 0x293   : > { %1118 = vrot.lane.b32.xlu0 %v1117_v8, %s2533_s23  ;;  %s2535_s23 = smov 113   ;;  %1167 = vrot.lane.b32.xlu1 %v1166_v58, %s2536_s17  ;;  %v1091_v8 = vsel %vm427_vm6, %v1090_v63, %v3005_v52  ;;  %s2540_s17 = smov 42   ;;  %v904_v58 = vrot.slane %v2968_v32, 5  ;;  %v926_v63 = vrot.slane %v2968_v32, 6 }
 0x294   : > { %v1093_v15 = vsel %vm430_vm7, %v1092_v4, %v1091_v8  ;;  %v925_v4 = vsel %vm430_vm7, %v924_v48, %v923_v49 }
 0x295   : > { %v1095_v20 = vsel %vm433_vm8, %v1094_v5, %v1093_v15  ;;  %v1138_v15 = vrot.slane %v3018_v18, 7 }
 0x29b   : > { %972 = vrot.lane.b32.xlu0 %v971_v34, %s2535_s23  ;;  %s2539_s23 = smov 80   ;;  %v1046_v34 = vsel %vm427_vm6, %v1045_v22, %v1044_v21  ;;  %v1001_v22 = vrot.slane %v3008_v53, 2 }
 0x29c   : > { %v1048_v36 = vsel %vm430_vm7, %v1047_v23, %v1046_v34 }
 0x2a3   : > { %1028 = vrot.lane.b32.xlu0 %v1027_v59, %s2537_s24  ;;  %s2541_s24 = smov 37   ;;  %v1213_v59 = vrot.slane %v2992_v42, 3 }
 0x2ab   : > { %1096 = vrot.lane.b32.xlu0 %v1095_v20, %s2539_s23  ;;  %s2543_s23 = smov 56  }
 0x2ce   : > { %v732_v39 = vpop.permute.xlu2 %731 }
 0x2cf   : > { %v738_v45 = vsel %vm737_vm0, %v732_v39, %v2325_v57  ;;  %v945_v57 = vrot.slane %v2950_v29, 1  ;;  %v1050_v39 = vsel %vm433_vm8, %v1049_v24, %v1048_v36  ;;  %v1212_v29 = vsel %vm427_vm6, %v1211_v51, %v1210_v50 }
 0x2d0   : > { %759 = vmatpush.msra.mxu1 %v738_v45  ;;  %v883_v45 = vsel %vm433_vm8, %v882_v33, %v881_v40  ;;  %v1214_v5 = vsel %vm430_vm7, %v1213_v59, %v1212_v29 }
 0x2d1   : > { %v946_v7 = vsel %vm427_vm6, %v945_v57, %v944_v17  ;;  %884 = vrot.lane.b32.xlu0 %v883_v45, %s2541_s24  ;;  %v1215_v17 = vrot.slane %v2997_v46, 2  ;;  %v903_v57 = vsel %vm430_vm7, %v902_v43, %v901_v47  ;;  %s3753_s24 = smov 118  }
 0x2d2   : > { %v947_v11 = vsel %vm430_vm7, %v2963_v31, %v946_v7  ;;  %v1136_v7 = vsel %vm427_vm6, %v1135_v41, %v1134_v28  ;;  %v905_v32 = vsel %vm433_vm8, %v904_v58, %v903_v57 }
 0x2d3   : > { %v949_v19 = vsel %vm433_vm8, %v948_v44, %v947_v11  ;;  %v1216_v46 = vsel %vm433_vm8, %v1215_v17, %v1214_v5  ;;  %v927_v11 = vsel %vm433_vm8, %v926_v63, %v925_v4  ;;  %v1137_v54 = vsel %vm430_vm7, %v3008_v53, %v1136_v7 }
 0x2d4   : > { %950 = vrot.lane.b32.xlu1 %v949_v19, %s2538_s26  ;;  %s2542_s26 = smov 47   ;;  %v998_v19 = vrot.slane %v3005_v52, 4 }
 0x2d5   : > { %1217 = vrot.lane.b32.xlu2 %v1216_v46, %s2542_s26  ;;  %s2546_s26 = smov 4  }
 0x2d6   : > { %v696_v31 = vpop.permute.xlu2 %695 }
 0x2dc   : > { %1051 = vrot.lane.b32.xlu1 %v1050_v39, %s2540_s17  ;;  %s2544_s17 = smov 75  }
 0x2dd   : > { %928 = vrot.lane.b32.xlu0 %v927_v11, %s2544_s17  ;;  %s3755_s17 = smov 13  }
 0x2de   : > { %v660_v23 = vpop.permute.xlu2 %659 }
 0x2e4   : > { %906 = vrot.lane.b32.xlu1 %v905_v32, %s2543_s23  ;;  %s2547_s23 = smov 61  }
 0x2e5   : > { %v708_v16 = vpop.permute.xlu1 %707  ;;  %v720_v44 = vpop.permute.xlu0 %719 }
 0x2e6   : > { %v726_v42 = vsel %vm725_vm9, %v720_v44, %v2330_v56  ;;  %v714_v8 = vsel %vm713_vm10, %v708_v16, %v2335_v60  ;;  %v702_v56 = vsel %vm3752_vm5, %v696_v31, %v2340_v3  ;;  %v1139_v60 = vsel %vm433_vm8, %v1138_v15, %v1137_v54 }
 0x2e7   : > { %760 = vmatpush.msra.mxu1 %v726_v42  ;;  %v1000_v3 = vsel %vm427_vm6, %v999_v55, %v998_v19  ;;  %1140 = vrot.lane.b32.xlu2 %v1139_v60, %s3753_s24  ;;  %vm3872_vm5 = vcmask 1031168   ;;  %s3760_s24 = smov 32  }
 0x2e8   : > { %v1002_v26 = vsel %vm430_vm7, %v1001_v22, %v1000_v3  ;;  %v666_v62 = vsel %vm3872_vm5, %v660_v23, %v2355_v14  ;;  %v1072_v14 = vrot.slane %v3018_v18, 4  ;;  %vm3876_vm5 = vcmask 80896  }
 0x2e9   : > { %761 = vmatpush.msra.mxu1 %v714_v8  ;;  %v1004_v33 = vsel %vm433_vm8, %v1003_v25, %v1002_v26 }
 0x2eb   : > { %762 = vmatpush.msra.mxu1 %v702_v56 }
 0x2ed   : > { %v672_v20 = vpop.permute.xlu1 %671  ;;  %v684_v21 = vpop.permute.xlu0 %683 }
 0x2ee   : > { %v690_v1 = vsel %vm3827_vm4, %v684_v21, %v2345_v2  ;;  %v678_v24 = vsel %vm3825_vm3, %v672_v20, %v2350_v6  ;;  %v1067_v2 = vrot.slane %v3005_v52, 7  ;;  %vm3888_vm3 = vcmask 392192  }
 0x2ef   : > { %763 = vmatpush.msra.mxu1 %v690_v1  ;;  %1005 = vrot.lane.b32.xlu2 %v1004_v33, %s2546_s26  ;;  %s3754_s26 = smov 34   ;;  %vm3890_vm4 = vcmask 662528  }
 0x2f0   : > { %v1069_v35 = vsel %vm427_vm6, %v1068_v27, %v1067_v2  ;;  %vm3815_vm6 = vcmask 1043456  }
 0x2f1   : > { %764 = vmatpush.msra.mxu1 %v678_v24  ;;  %v1071_v52 = vsel %vm430_vm7, %v1070_v0, %v1069_v35  ;;  %vm3823_vm7 = vcmask 7168  }
 0x2f2   : > { %v1073_v53 = vsel %vm433_vm8, %v1072_v14, %v1071_v52  ;;  %vm3824_vm8 = vcmask 146432  }
 0x2f3   : > { %765 = vmatpush.msra.mxu1 %v666_v62 }
 0x2f5   : > { %v2363_v34 = vpop.permute.xlu0 %2362  ;;  %v746_v61 = vpop.permute.xlu1 %745 }
 0x2f6   : > { %v2364_v6 = vunpack.i.l.bf16 %v2363_v34  ;;  %v2365_v45 = vunpack.i.h.bf16 %v2363_v34 }
 0x2f7   : > { %1074 = vrot.lane.b32.xlu2 %v1073_v53, %s2547_s23  ;;  %s3758_s23 = smov 110   ;;  %v809_v48 = vpop.f32.mrf.mxu3 }
 0x2f8   : > { %v654_v12 = vsel %vm3822_vm2, %v2364_v6, %v2360_v13  ;;  %v810_v49 = vadd.f32 %v809_v48, %v746_v61  ;;  %v789_v28 = vpop.f32.mrf.mxu2  ;;  %vm3885_vm2 = vcmask 80896  }
 0x2f9   : > { %766 = vmatpush.msra.mxu1 %v654_v12  ;;  %v790_v31 = vadd.f32 %v789_v28, %v746_v61 }
 0x2fb   : > { %767 = vmatpush.msra.mxu1 %v2954_v30 }
 0x2fc   : > { %2168 = vmatmul.msk.f32.vlgmr.msra.gmra.mxu1 %vm3826_vm12, %v3029_v9  ;;  %vm3889_vm12 = vcmask 506880  }
 0x2fd   : > { %v1195_v36 = vpop.permute.xlu0 %1194  ;;  %v836_v37 = vpop.permute.xlu1 %835 }
 0x2fe   : > { %v1197_v58 = vsel %vm3815_vm6, %v810_v49, %v1195_v36 }
 0x305   : > { %v3161_v10 = vpop.permute.xlu0 %1118  ;;  %v1168_v13 = vpop.permute.xlu1 %1167 }
 0x306   : > { %v1170_v57 = vsel %vm3815_vm6, %v810_v49, %v1168_v13  ;;  %v1121_v4 = vsel %vm3815_vm6, %v790_v31, %v3161_v10 }
 0x30d   : > { %v973_v39 = vpop.permute.xlu0 %972 }
 0x30e   : > { %v976_v29 = vsel %vm3815_vm6, %v790_v31, %v973_v39 }
 0x315   : > { %v1029_v44 = vpop.permute.xlu0 %1028 }
 0x316   : > { %v1031_v5 = vsel %vm3815_vm6, %v790_v31, %v1029_v44 }
 0x31d   : > { %v1097_v11 = vpop.permute.xlu0 %1096 }
 0x31e   : > { %v1099_v15 = vsel %vm3815_vm6, %v790_v31, %v1097_v11 }
 0x32f   : > { %v1218_v50 = vpop.permute.xlu2 %1217 }
 0x330   : > { %v1220_v51 = vsel %vm3815_vm6, %v810_v49, %v1218_v50 }
 0x341   : > { %v1141_v59 = vpop.permute.xlu2 %1140 }
 0x342   : > { %v1144_v17 = vsel %vm3815_vm6, %v810_v49, %v1141_v59  ;;  %v1143_v63 = vsel %vm3815_vm6, %v790_v31, %v1141_v59 }
 0x343   : > { %v885_v56 = vpop.permute.xlu0 %884 }
 0x346   : > { %v951_v40 = vpop.permute.xlu1 %950 }
 0x349   : > { %v1006_v41 = vpop.permute.xlu2 %1005 }
 0x34a   : > { %v1008_v16 = vsel %vm3815_vm6, %v790_v31, %v1006_v41 }
 0x34e   : > { %v1052_v42 = vpop.permute.xlu1 %1051 }
 0x34f   : > { %v1054_v7 = vsel %vm3815_vm6, %v790_v31, %v1052_v42  ;;  %v929_v60 = vpop.permute.xlu0 %928 }
 0x351   : > { %v1075_v32 = vpop.permute.xlu2 %1074 }
 0x352   : > { %v1077_v8 = vsel %vm3815_vm6, %v790_v31, %v1075_v32 }
 0x356   : > { %v907_v55 = vpop.permute.xlu1 %906 }
 0x379   : > { %v769_v38 = vpop.f32.mrf.mxu1 }
 0x37a   : > { %v3163_v18 = vadd.f32 %v769_v38, %v746_v61 }
 0x37c   : > { %v3167_v30 = vsel %vm3815_vm6, %v3163_v18, %v973_v39  ;;  %v953_v9 = vsel %vm3815_vm6, %v3163_v18, %v951_v40  ;;  %v3173_v43 = vsel %vm3815_vm6, %v3163_v18, %v836_v37  ;;  %v864_v47 = vsel %vm3815_vm6, %v3163_v18, %v2365_v45 }
 0x37d   : > { %978 = vrot.lane.b32.xlu1 %v3167_v30, %s3755_s17  ;;  %958 = vrot.lane.b32.xlu0 %v953_v9, %s3754_s26  ;;  %s3763_s26 = smov 3   ;;  %s3833_s17 = smov 81   ;;  %v2367_v46 = vpack.i.bf16 %v976_v29, %v3167_v30  ;;  %v887_v3 = vsel %vm3815_vm6, %v3163_v18, %v885_v56  ;;  %v909_v26 = vsel %vm3815_vm6, %v3163_v18, %v907_v55 }
 0x37e   : > { %841 = vrot.lane.b32.xlu2 %v3173_v43, %s3756_s21  ;;  %s3766_s21 = smov 36   ;;  %v931_v13 = vsel %vm3815_vm6, %v3163_v18, %v929_v60  ;;  %vm3879_vm6 = vcmask 154624  }
 0x385   : > { %866 = vrot.lane.b32.xlu1 %v864_v47, %s3761_s12  ;;  %844 = vrot.lane.b32.xlu0 %v3173_v43, %s3758_s23  ;;  %s3768_s23 = smov 98   ;;  %s3778_s12 = smov 1  }
 0x386   : > { %955 = vrot.lane.b32.xlu2 %v953_v9, %s3760_s24  ;;  %s3767_s24 = smov 83  }
 0x38d   : > { %872 = vrot.lane.b32.xlu1 %v864_v47, %s3763_s26  ;;  %1225 = vrot.lane.b32.xlu0 %v1220_v51, %s3833_s17  ;;  %s3772_s26 = smov 102  }
 0x38e   : > { %961 = vrot.lane.b32.xlu2 %v953_v9, %s3766_s21  ;;  %s3771_s21 = smov 79  }
 0x395   : > { %1199 = vrot.lane.b32.xlu1 %v1197_v58, %s3768_s23  ;;  %1228 = vrot.lane.b32.xlu0 %v1220_v51, %s3767_s24  ;;  %s3777_s24 = smov 117   ;;  %s3774_s23 = smov 8  }
 0x396   : > { %869 = vrot.lane.b32.xlu2 %v864_v47, %s3778_s12  ;;  %s3788_s12 = smov 31  }
 0x39d   : > { %1205 = vrot.lane.b32.xlu1 %v1197_v58, %s3772_s26  ;;  %1156 = vrot.lane.b32.xlu0 %v1144_v17, %s3770_s20  ;;  %s3775_s20 = smov 121   ;;  %s3873_s26 = smov 10  }
 0x39e   : > { %1222 = vrot.lane.b32.xlu2 %v1220_v51, %s3771_s21  ;;  %s3776_s21 = smov 17  }
 0x3a5   : > { %1172 = vrot.lane.b32.xlu1 %v1170_v57, %s3777_s24  ;;  %1146 = vrot.lane.b32.xlu0 %v1143_v63, %s3774_s23  ;;  %s3829_s23 = smov 119   ;;  %s3784_s24 = smov 15  }
 0x3a6   : > { %1202 = vrot.lane.b32.xlu2 %v1197_v58, %s3831_s10 }
 0x3ad   : > { %1178 = vrot.lane.b32.xlu1 %v1170_v57, %s3775_s20  ;;  %989 = vrot.lane.b32.xlu0 %v976_v29, %s3776_s21  ;;  %s3779_s20 = smov 27   ;;  %s3812_s21 = smov 29  }
 0x3ae   : > { %1152 = vrot.lane.b32.xlu2 %v1144_v17, %s3873_s26 }
 0x3b5   : > { %1150 = vrot.lane.b32.xlu1 %v1143_v63, %s3873_s26  ;;  %1016 = vrot.lane.b32.xlu0 %v1008_v16, %s3780_s25  ;;  %s3791_s25 = smov 69  }
 0x3b6   : > { %1175 = vrot.lane.b32.xlu2 %v1170_v57, %s3829_s23 }
 0x3bd   : > { %1123 = vrot.lane.b32.xlu1 %v1121_v4, %s3779_s20  ;;  %1039 = vrot.lane.b32.xlu0 %v1031_v5, %s3782_s22  ;;  %s3789_s20 = smov 122   ;;  %s3792_s22 = smov 124  }
 0x3be   : > { %1126 = vrot.lane.b32.xlu2 %v1121_v4, %s3812_s21 }
 0x3c5   : > { %2368 = vrot.lane.b32.xlu1 %v2367_v46, %s3784_s24  ;;  %1062 = vrot.lane.b32.xlu0 %v1054_v7, %s3786_s19  ;;  %s3794_s24 = smov 103   ;;  %s3795_s19 = smov 50  }
 0x3c6   : > { %1129 = vrot.lane.b32.xlu2 %v1121_v4, %s3788_s12  ;;  %s3796_s12 = smov 105  }
 0x3cd   : > { %1010 = vrot.lane.b32.xlu1 %v1008_v16, %s3789_s20  ;;  %1085 = vrot.lane.b32.xlu0 %v1077_v8, %s3791_s25  ;;  %s3801_s20 = smov 84   ;;  %s3800_s25 = smov 86  }
 0x3ce   : > { %1013 = vrot.lane.b32.xlu2 %v1008_v16, %s3792_s22  ;;  %s3797_s22 = smov 65  }
 0x3d5   : > { %1033 = vrot.lane.b32.xlu1 %v1031_v5, %s3794_s24  ;;  %1107 = vrot.lane.b32.xlu0 %v1099_v15, %s3795_s19  ;;  %s3799_s24 = smov 67   ;;  %s3798_s19 = smov 46  }
 0x3d6   : > { %1036 = vrot.lane.b32.xlu2 %v1031_v5, %s3796_s12  ;;  %s3874_s12 = smov 48  }
 0x3d8   : > { %v3230_v54 = vpop.permute.xlu2 %841 }
 0x3dd   : > { %1056 = vrot.lane.b32.xlu1 %v1054_v7, %s3801_s20  ;;  %s3804_s20 = smov 112  }
 0x3de   : > { %1059 = vrot.lane.b32.xlu2 %v1054_v7, %s3800_s25  ;;  %s3819_s25 = smov 19  }
 0x3e0   : > { %v956_v19 = vpop.permute.xlu2 %955 }
 0x3e5   : > { %1079 = vrot.lane.b32.xlu1 %v1077_v8, %s3797_s22  ;;  %s3806_s22 = smov 91  }
 0x3e6   : > { %1082 = vrot.lane.b32.xlu2 %v1077_v8, %s3799_s24  ;;  %s3802_s24 = smov 74  }
 0x3e8   : > { %v962_v20 = vpop.permute.xlu2 %961 }
 0x3ed   : > { %1101 = vrot.lane.b32.xlu1 %v1099_v15, %s3798_s19  ;;  %s3803_s19 = smov 72  }
 0x3ee   : > { %1104 = vrot.lane.b32.xlu2 %v1099_v15, %s3874_s12 }
 0x3ef   : > { %v3238_v21 = vpop.permute.xlu1 %978  ;;  %v959_v22 = vpop.permute.xlu0 %958 }
 0x3f0   : > { %v3240_v1 = vpop.permute.xlu2 %869  ;;  %v964_v30 = vsel %vm3823_vm7, %v956_v19, %v959_v22 }
 0x3f1   : > { %v965_v18 = vsel %vm3824_vm8, %v964_v30, %v962_v20 }
 0x3f5   : > { %892 = vrot.lane.b32.xlu1 %v887_v3, %s3806_s22  ;;  %s3835_s22 = smov 70  }
 0x3f7   : > { %v3245_v23 = vpop.permute.xlu1 %866  ;;  %v3247_v24 = vpop.permute.xlu0 %844 }
 0x3f8   : > { %v1223_v25 = vpop.permute.xlu2 %1222  ;;  %v875_v60 = vsel %vm3823_vm7, %v3245_v23, %v3240_v1 }
 0x3fd   : > { %914 = vrot.lane.b32.xlu1 %v909_v26, %s3803_s19  ;;  %s3807_s19 = smov 93  }
 0x3ff   : > { %v3252_v62 = vpop.permute.xlu1 %872  ;;  %v1226_v2 = vpop.permute.xlu0 %1225 }
 0x400   : > { %v1203_v27 = vpop.permute.xlu2 %1202  ;;  %v1231_v33 = vsel %vm3823_vm7, %v1223_v25, %v1226_v2  ;;  %v876_v20 = vsel %vm3824_vm8, %v875_v60, %v3252_v62 }
 0x405   : > { %917 = vrot.lane.b32.xlu1 %v909_v26, %s3802_s24  ;;  %s3875_s24 = smov 38  }
 0x407   : > { %v1200_v34 = vpop.permute.xlu1 %1199  ;;  %v1229_v0 = vpop.permute.xlu0 %1228 }
 0x408   : > { %v1232_v6 = vsel %vm3824_vm8, %v1231_v33, %v1229_v0  ;;  %v1208_v35 = vsel %vm3823_vm7, %v1200_v34, %v1203_v27  ;;  %v1153_v12 = vpop.permute.xlu2 %1152 }
 0x409   : > { %1309 = vrot.lane.b32.xlu2 %v1232_v6, %s3819_s25 }
 0x40f   : > { %v1206_v14 = vpop.permute.xlu1 %1205  ;;  %v1157_v36 = vpop.permute.xlu0 %1156 }
 0x410   : > { %v3260_v52 = vsel %vm3824_vm8, %v1208_v35, %v1206_v14  ;;  %v1176_v61 = vpop.permute.xlu2 %1175 }
 0x411   : > { %847 = vrot.lane.b32.xlu2 %v3173_v43, %s3804_s20  ;;  %1313 = vrot.lane.b32.xlu0 %v3260_v52, %s3875_s24  ;;  %s3810_s20 = smov 51  }
 0x417   : > { %v1173_v53 = vpop.permute.xlu1 %1172  ;;  %v1147_v40 = vpop.permute.xlu0 %1146 }
 0x418   : > { %v1181_v37 = vsel %vm3823_vm7, %v1173_v53, %v1176_v61  ;;  %v1127_v39 = vpop.permute.xlu2 %1126 }
 0x419   : > { %895 = vrot.lane.b32.xlu2 %v887_v3, %s3807_s19  ;;  %889 = vrot.lane.b32.xlu0 %v887_v3, %s3808_s18  ;;  %s3811_s19 = smov 53   ;;  %s3877_s18 = smov 114  }
 0x41f   : > { %v1179_v10 = vpop.permute.xlu1 %1178  ;;  %v990_v48 = vpop.permute.xlu0 %989 }
 0x420   : > { %v1182_v38 = vsel %vm3824_vm8, %v1181_v37, %v1179_v10  ;;  %v1130_v45 = vpop.permute.xlu2 %1129 }
 0x421   : > { %933 = vrot.lane.b32.xlu2 %v931_v13, %s3810_s20  ;;  %911 = vrot.lane.b32.xlu0 %v909_v26, %s3835_s22  ;;  %s3814_s20 = smov 55   ;;  %s3898_s22 = smov 107  }
 0x422   : > { %1290 = vrot.lane.b32.xlu1 %v1182_v38, %s3812_s21  ;;  %s3818_s21 = smov 43  }
 0x427   : > { %v1151_v9 = vpop.permute.xlu1 %1150  ;;  %v1017_v28 = vpop.permute.xlu0 %1016 }
 0x428   : > { %v1154_v43 = vsel %vm3876_vm5, %v1151_v9, %v1153_v12  ;;  %v1014_v59 = vpop.permute.xlu2 %1013  ;;  %vm3816_vm5 = vcmask 121856  }
 0x429   : > { %936 = vrot.lane.b32.xlu0 %v931_v13, %s3811_s19  ;;  %v1159_v47 = vsel %vm3823_vm7, %v1147_v40, %v1154_v43  ;;  %s3817_s19 = smov 5   ;;  %v851_v40 = vsel %vm3823_vm7, %v3230_v54, %v3247_v24 }
 0x42a   : > { %1254 = vrot.lane.b32.xlu1 %v965_v18, %s3877_s18  ;;  %v1160_v51 = vsel %vm3824_vm8, %v1159_v47, %v1157_v36 }
 0x42f   : > { %v1124_v49 = vpop.permute.xlu1 %1123  ;;  %v1040_v4 = vpop.permute.xlu0 %1039 }
 0x430   : > { %v1132_v50 = vsel %vm3823_vm7, %v1124_v49, %v1127_v39  ;;  %v1037_v16 = vpop.permute.xlu2 %1036 }
 0x431   : > { %1286 = vrot.lane.b32.xlu0 %v1160_v51, %s3873_s26  ;;  %v1133_v58 = vsel %vm3824_vm8, %v1132_v50, %v1130_v45 }
 0x432   : > { %1282 = vrot.lane.b32.xlu2 %v1133_v58, %s3829_s23  ;;  %s3893_s23 = smov 88  }
 0x437   : > { %v2369_v17 = vpop.permute.xlu1 %2368  ;;  %v1063_v32 = vpop.permute.xlu0 %1062 }
 0x438   : > { %v2371_v31 = vunpack.i.h.bf16 %v2369_v17  ;;  %v2370_v57 = vunpack.i.l.bf16 %v2369_v17  ;;  %v1060_v7 = vpop.permute.xlu2 %1059 }
 0x43a   : > { %939 = vrot.lane.b32.xlu2 %v931_v13, %s3814_s20  ;;  %v987_v63 = vsel %vm3816_vm5, %v2370_v57, %v2371_v31  ;;  %s3878_s20 = smov 62   ;;  %vm3880_vm5 = vcmask 310272  }
 0x43b   : > { %v992_v29 = vsel %vm3823_vm7, %v3238_v21, %v987_v63 }
 0x43c   : > { %v993_v44 = vsel %vm3824_vm8, %v992_v29, %v990_v48 }
 0x43f   : > { %v1011_v41 = vpop.permute.xlu1 %1010  ;;  %v1086_v19 = vpop.permute.xlu0 %1085 }
 0x440   : > { %v1083_v56 = vpop.permute.xlu2 %1082  ;;  %v1019_v0 = vsel %vm3823_vm7, %v1011_v41, %v1014_v59 }
 0x441   : > { %v1020_v14 = vsel %vm3824_vm8, %v1019_v0, %v1017_v28 }
 0x442   : > { %1258 = vrot.lane.b32.xlu2 %v993_v44, %s3817_s19  ;;  %s3881_s19 = smov 24  }
 0x447   : > { %v1034_v5 = vpop.permute.xlu1 %1033  ;;  %v1108_v3 = vpop.permute.xlu0 %1107 }
 0x448   : > { %v1042_v42 = vsel %vm3823_vm7, %v1034_v5, %v1037_v16  ;;  %v1105_v21 = vpop.permute.xlu2 %1104 }
 0x449   : > { %v1043_v46 = vsel %vm3824_vm8, %v1042_v42, %v1040_v4 }
 0x44a   : > { %1266 = vrot.lane.b32.xlu1 %v1043_v46, %s3818_s21  ;;  %s3821_s21 = smov 57  }
 0x44f   : > { %v1057_v8 = vpop.permute.xlu1 %1056 }
 0x450   : > { %v1065_v11 = vsel %vm3823_vm7, %v1057_v8, %v1060_v7 }
 0x451   : > { %v1066_v15 = vsel %vm3824_vm8, %v1065_v11, %v1063_v32 }
 0x452   : > { %1270 = vrot.lane.b32.xlu2 %v1066_v15, %s3878_s20 }
 0x457   : > { %v1080_v55 = vpop.permute.xlu1 %1079 }
 0x45a   : > { %1234 = vrot.lane.b32.xlu2 %v876_v20, %s3819_s25  ;;  %s3882_s25 = smov 76  }
 0x45f   : > { %v1102_v22 = vpop.permute.xlu1 %1101 }
 0x460   : > { %v1110_v25 = vsel %vm3823_vm7, %v1102_v22, %v1105_v21 }
 0x461   : > { %v1111_v26 = vsel %vm3824_vm8, %v1110_v25, %v1108_v3 }
 0x462   : > { %1278 = vrot.lane.b32.xlu1 %v1111_v26, %s3831_s10  ;;  %s3896_s10 = smov 109  }
 0x463   : > { %v1310_v2 = vpop.permute.xlu2 %1309 }
 0x464   : > { %v1316_v1 = vsel %vm3879_vm6, %v3260_v52, %v1310_v2  ;;  %v1088_v52 = vsel %vm3823_vm7, %v1080_v55, %v1083_v56  ;;  %vm3883_vm6 = vcmask 39936  }
 0x465   : > { %v1089_v13 = vsel %vm3824_vm8, %v1088_v52, %v1086_v19 }
 0x467   : > { %v893_v33 = vpop.permute.xlu1 %892 }
 0x46b   : > { %v848_v27 = vpop.permute.xlu2 %847 }
 0x46c   : > { %v853_v30 = vsel %vm3824_vm8, %v851_v40, %v848_v27 }
 0x46f   : > { %v915_v6 = vpop.permute.xlu1 %914 }
 0x473   : > { %v896_v34 = vpop.permute.xlu2 %895 }
 0x477   : > { %v918_v37 = vpop.permute.xlu1 %917 }
 0x47b   : > { %v934_v61 = vpop.permute.xlu2 %933 }
 0x483   : > { %v1314_v23 = vpop.permute.xlu0 %1313 }
 0x484   : > { %v1317_v62 = vsel %vm3880_vm5, %v1316_v1, %v1314_v23  ;;  %vm3884_vm5 = vcmask 195584  }
 0x485   : > { %1319 = vrot.lane.b32.xlu0 %v1317_v62, %s3874_s12 }
 0x48b   : > { %v890_v35 = vpop.permute.xlu0 %889 }
 0x48c   : > { %v898_v12 = vsel %vm3823_vm7, %v890_v35, %v893_v33  ;;  %v1283_v39 = vpop.permute.xlu2 %1282 }
 0x48d   : > { %1262 = vrot.lane.b32.xlu0 %v1020_v14, %s3881_s19  ;;  %v899_v53 = vsel %vm3824_vm8, %v898_v12, %v896_v34 }
 0x48e   : > { %1242 = vrot.lane.b32.xlu1 %v899_v53, %s3821_s21  ;;  %s3828_s21 = smov 95  }
 0x493   : > { %v912_v36 = vpop.permute.xlu0 %911 }
 0x494   : > { %v920_v10 = vsel %vm3823_vm7, %v912_v36, %v915_v6  ;;  %v940_v43 = vpop.permute.xlu2 %939  ;;  %v1291_v47 = vpop.permute.xlu1 %1290  ;;  %v1324_v36 = vld [vmem:[%s3903_s5] sm:$0xf]  ;;  %s3923_s5 = smov 110  }
 0x495   : > { %1274 = vrot.lane.b32.xlu0 %v1089_v13, %s3833_s17  ;;  %v921_v38 = vsel %vm3824_vm8, %v920_v10, %v918_v37  ;;  %s3897_s17 = smov 108  }
 0x496   : > { %1246 = vrot.lane.b32.xlu2 %v921_v38, %s3882_s25 }
 0x49b   : > { %v937_v9 = vpop.permute.xlu0 %936 }
 0x49c   : > { %v942_v18 = vsel %vm3823_vm7, %v934_v61, %v937_v9  ;;  %v1255_v50 = vpop.permute.xlu1 %1254  ;;  %v1259_v51 = vpop.permute.xlu2 %1258  ;;  %vm3886_vm7 = vcmask 351232  }
 0x49d   : > { %1238 = vrot.lane.b32.xlu0 %v853_v30, %s3875_s24  ;;  %v943_v45 = vsel %vm3824_vm8, %v942_v18, %v940_v43  ;;  %v1299_v54 = vsel %vm3883_vm6, %v1255_v50, %v1259_v51  ;;  %vm3887_vm8 = vcmask 236544   ;;  %vm3891_vm6 = vcmask 818176  }
 0x4a3   : > { %v1287_v48 = vpop.permute.xlu0 %1286 }
 0x4a4   : > { %v1306_v17 = vsel %vm3885_vm2, %v1283_v39, %v1287_v48  ;;  %vm3895_vm2 = vcmask 310272  }
 0x4a5   : > { %1250 = vrot.lane.b32.xlu0 %v943_v45, %s3828_s21  ;;  %v1307_v57 = vsel %vm3887_vm8, %v1306_v17, %v1291_v47  ;;  %s3892_s21 = smov 89   ;;  %vm3907_vm8 = vcmask 588800  }
 0x4ac   : > { %v1271_v28 = vpop.permute.xlu2 %1270 }
 0x4b4   : > { %v1235_v7 = vpop.permute.xlu2 %1234 }
 0x4bc   : > { %v1267_v24 = vpop.permute.xlu1 %1266 }
 0x4d4   : > { %v1279_v16 = vpop.permute.xlu1 %1278 }
 0x4f0   : > { %v1247_v19 = vpop.permute.xlu2 %1246 }
 0x4f7   : > { %v1320_v49 = vpop.permute.xlu0 %1319 }
 0x4f8   : > { %v3337_v63 = vsel %vm3888_vm3, %v1307_v57, %v1320_v49  ;;  %vm3899_vm3 = vcmask 932864  }
 0x4f9   : > { %v1325_v5 = vsel %vm642_vm11, %v3337_v63, 0.0 }
 0x4ff   : > { %v1263_v58 = vpop.permute.xlu0 %1262 }
 0x500   : > { %v1300_v59 = vsel %vm3884_vm5, %v1299_v54, %v1263_v58  ;;  %v1243_v15 = vpop.permute.xlu1 %1242 }
 0x501   : > { %v1301_v31 = vsel %vm3886_vm7, %v1300_v59, %v1267_v24  ;;  %vm3906_vm7 = vcmask 883712  }
 0x502   : > { %v1302_v41 = vsel %vm3889_vm12, %v1301_v31, %v1271_v28  ;;  %vm3894_vm12 = vcmask 154624  }
 0x503   : > { %v1293_v8 = vsel %vm3894_vm12, %v853_v30, %v1235_v7  ;;  %vm3910_vm12 = vcmask 891904  }
 0x507   : > { %v1275_v29 = vpop.permute.xlu0 %1274 }
 0x508   : > { %v1303_v44 = vsel %vm3890_vm4, %v1302_v41, %v1275_v29  ;;  %vm3904_vm4 = vcmask 875520  }
 0x509   : > { %v1304_v4 = vsel %vm3891_vm6, %v1303_v44, %v1279_v16  ;;  %vm3908_vm5 = vmmov %vm3904_vm4 }
 0x50a   : > { %v3345_v42 = vsel %vm625_vm13, %v1304_v4, %v1283_v39  ;;  %v1323_v39 = vld [vmem:[%s3905_s4] sm:$0xf]  ;;  %vm3909_vm6 = vmmov %vm3906_vm7  ;;  %s3922_s4 = smov 3  }
 0x50b   : > { %v2382_v46 = vpack.i.bf16 %v3345_v42, %v1325_v5 }
 0x50d   : > { %2383 = vrot.lane.b32.xlu0 %v2382_v46, %s3836_s13  ;;  %2378 = vrot.lane.b32.xlu2 %v2382_v46, %s3892_s21  ;;  %s3900_s13 = smov 127  }
 0x50e   : > { %2373 = vrot.lane.b32.xlu1 %v2382_v46, %s3893_s23 }
 0x50f   : > { %v1239_v32 = vpop.permute.xlu0 %1238 }
 0x510   : > { %v1294_v11 = vsel %vm3895_vm2, %v1293_v8, %v1239_v32  ;;  %vm3911_vm2 = vmmov %vm3910_vm12 }
 0x511   : > { %v1295_v56 = vsel %vm605_vm15, %v1294_v11, %v1243_v15 }
 0x512   : > { %v1296_v60 = vsel %vm607_vm14, %v1295_v56, %v1247_v19 }
 0x515   : > { %1355 = vrot.lane.b32.xlu0 %v1325_v5, %s3896_s10  ;;  %1366 = vrot.lane.b32.xlu2 %v1325_v5, %s3897_s17 }
 0x516   : > { %1377 = vrot.lane.b32.xlu1 %v1325_v5, %s3898_s22 }
 0x517   : > { %v1251_v55 = vpop.permute.xlu0 %1250 }
 0x518   : > { %v1297_v20 = vsel %vm609_vm1, %v1296_v60, %v1251_v55 }
 0x519   : > { %v3360_v21 = vsel %vm3899_vm3, %v1297_v20, %v1255_v50  ;;  %vm3912_vm3 = vcmask 1031168  }
 0x51a   : > { %v2387_v22 = vpack.i.bf16 %v3360_v21, %v3345_v42 }
 0x51d   : > { %1333 = vrot.lane.b32.xlu2 %v1325_v5, %s3900_s13  ;;  %2388 = vrot.lane.b32.xlu0 %v2387_v22, %s3898_s22 }
 0x51e   : > { %1344 = vrot.lane.b32.xlu1 %v1325_v5, %s3901_s0 }
 0x525   : > { %2393 = vrot.lane.b32.xlu2 %v2387_v22, %s3897_s17  ;;  %1395 = vrot.lane.b32.xlu0 %v3360_v21, %s3892_s21 }
 0x526   : > { %1406 = vrot.lane.b32.xlu1 %v3360_v21, %s3893_s23 }
 0x52d   : > { %1384 = vrot.lane.b32.xlu2 %v3360_v21, %s3902_s1  ;;  %2403 = vrot.lane.b32.xlu0 %v2387_v22, %s3901_s0 }
 0x52e   : > { %2398 = vrot.lane.b32.xlu1 %v2387_v22, %s3896_s10 }
 0x535   : > { %1419 = vperm.xlu2 %2412, %v1324_v36  }
 0x536   : > { %2408 = vrot.lane.b32.xlu1 %v2387_v22, %s3900_s13 }
 0x567   : > { %v2379_v3 = vpop.permute.xlu2 %2378 }
 0x568   : > { %v2381_v27 = vunpack.i.h.bf16 %v2379_v3  ;;  %v2380_v23 = vunpack.i.l.bf16 %v2379_v3 }
 0x56a   : > { %v1402_v35 = vsel %vm725_vm9, %v2381_v27, %v2380_v23 }
 0x56f   : > { %v1367_v25 = vpop.permute.xlu2 %1366 }
 0x577   : > { %v3377_v62 = vpop.permute.xlu2 %1333 }
 0x57f   : > { %v2384_v26 = vpop.permute.xlu0 %2383  ;;  %v2394_v52 = vpop.permute.xlu2 %2393 }
 0x580   : > { %v2374_v2 = vpop.permute.xlu1 %2373  ;;  %v2386_v34 = vunpack.i.h.bf16 %v2384_v26  ;;  %v2385_v6 = vunpack.i.l.bf16 %v2384_v26  ;;  %v2395_v37 = vunpack.i.l.bf16 %v2394_v52  ;;  %v2396_v48 = vunpack.i.h.bf16 %v2394_v52 }
 0x581   : > { %v2376_v33 = vunpack.i.h.bf16 %v2374_v2  ;;  %v2375_v1 = vunpack.i.l.bf16 %v2374_v2 }
 0x582   : > { %v1391_v14 = vsel %vm713_vm10, %v2386_v34, %v2385_v6  ;;  %v1369_v40 = vsel %vm3906_vm7, %v2395_v37, %v1367_v25  ;;  %v1368_v54 = vsel %vm3909_vm6, %v2396_v48, %v2395_v37  ;;  %vm3914_vm7 = vcmask 1039360  }
 0x583   : > { %1472 = vmatpush.msrb.mxu3 %v2375_v1  ;;  %v1413_v0 = vsel %vm737_vm0, %v2376_v33, %v2375_v1 }
 0x584   : > { %1452 = vmatpush.msrb.mxu2 %v1413_v0 }
 0x585   : > { %1473 = vmatpush.msrb.mxu3 %v2380_v23 }
 0x586   : > { %1453 = vmatpush.msrb.mxu2 %v1402_v35 }
 0x587   : > { %1474 = vmatpush.msrb.mxu3 %v2385_v6  ;;  %v1356_v12 = vpop.permute.xlu0 %1355  ;;  %v1385_v43 = vpop.permute.xlu2 %1384 }
 0x588   : > { %v1378_v53 = vpop.permute.xlu1 %1377  ;;  %1454 = vmatpush.msrb.mxu2 %v1391_v14  ;;  %v1390_v49 = vsel %vm713_vm10, %v1385_v43, %v2386_v34 }
 0x589   : > { %1475 = vmatpush.msrb.mxu3 %v1378_v53 }
 0x58b   : > { %1476 = vmatpush.msrb.mxu3 %v1367_v25 }
 0x58d   : > { %1477 = vmatpush.msrb.mxu3 %v1356_v12 }
 0x58f   : > { %v2389_v61 = vpop.permute.xlu0 %2388  ;;  %v1420_v46 = vpop.permute.xlu2 %1419 }
 0x590   : > { %v1345_v10 = vpop.permute.xlu1 %1344  ;;  %v2390_v13 = vunpack.i.l.bf16 %v2389_v61  ;;  %v2391_v45 = vunpack.i.h.bf16 %v2389_v61 }
 0x591   : > { %1478 = vmatpush.msrb.mxu3 %v1345_v10 }
 0x592   : > { %v1380_v38 = vsel %vm3904_vm4, %v2390_v13, %v1378_v53  ;;  %v1379_v51 = vsel %vm3908_vm5, %v2391_v45, %v2390_v13  ;;  %vm3913_vm4 = vmmov %vm3912_vm3  ;;  %vm3916_vm5 = vcmask 588800  }
 0x593   : > { %1479 = vmatpush.msrb.mxu3 %v3377_v62  ;;  %1455 = vmatpush.msrb.mxu2 %v1380_v38  ;;  %vm3917_vm6 = vmmov %vm3916_vm5 }
 0x595   : > { %2175 = vmatpush.msk.msrb.mxu3 %vm642_vm11, %v3337_v63  ;;  %1456 = vmatpush.msrb.mxu2 %v1369_v40 }
 0x596   : > { %2176 = vmatmul.msk.f32.vlgmr.msrb.gmra.mxu3 %vm3907_vm8, %v1323_v39  ;;  %vm3915_vm8 = vmmov %vm3914_vm7 }
 0x597   : > { %v1396_v30 = vpop.permute.xlu0 %1395 }
 0x598   : > { %v1407_v9 = vpop.permute.xlu1 %1406  ;;  %v1401_v47 = vsel %vm725_vm9, %v1396_v30, %v2381_v27 }
 0x599   : > { %v1412_v18 = vsel %vm737_vm0, %v1407_v9, %v2376_v33 }
 0x59a   : > { %1432 = vmatpush.msrb.mxu1 %v1412_v18 }
 0x59c   : > { %1433 = vmatpush.msrb.mxu1 %v1401_v47 }
 0x59e   : > { %1434 = vmatpush.msrb.mxu1 %v1390_v49 }
 0x59f   : > { %v2404_v50 = vpop.permute.xlu0 %2403 }
 0x5a0   : > { %v2399_v58 = vpop.permute.xlu1 %2398  ;;  %1435 = vmatpush.msrb.mxu1 %v1379_v51  ;;  %v2406_v17 = vunpack.i.h.bf16 %v2404_v50  ;;  %v2405_v28 = vunpack.i.l.bf16 %v2404_v50 }
 0x5a1   : > { %v2401_v24 = vunpack.i.h.bf16 %v2399_v58  ;;  %v2400_v59 = vunpack.i.l.bf16 %v2399_v58 }
 0x5a2   : > { %1436 = vmatpush.msrb.mxu1 %v1368_v54  ;;  %v1346_v63 = vsel %vm3912_vm3, %v2406_v17, %v2405_v28  ;;  %v1347_v29 = vsel %vm3913_vm4, %v2405_v28, %v1345_v10  ;;  %vm3957_vm4 = vcmask 7168  }
 0x5a3   : > { %v1357_v31 = vsel %vm3910_vm12, %v2401_v24, %v2400_v59  ;;  %v1358_v57 = vsel %vm3911_vm2, %v2400_v59, %v1356_v12 }
 0x5a4   : > { %1437 = vmatpush.msrb.mxu1 %v1357_v31  ;;  %1457 = vmatpush.msrb.mxu2 %v1358_v57 }
 0x5a6   : > { %1438 = vmatpush.msrb.mxu1 %v1346_v63  ;;  %1458 = vmatpush.msrb.mxu2 %v1347_v29 }
 0x5a8   : > { %v2409_v41 = vpop.permute.xlu1 %2408 }
 0x5a9   : > { %v2411_v16 = vunpack.i.h.bf16 %v2409_v41  ;;  %v2410_v44 = vunpack.i.l.bf16 %v2409_v41 }
 0x5ab   : > { %v1335_v4 = vsel %vm3914_vm7, %v2411_v16, %v2410_v44  ;;  %v1336_v5 = vsel %vm3915_vm8, %v2410_v44, %v3377_v62  ;;  %vm3958_vm7 = vmmov %vm3957_vm4  ;;  %vm3959_vm8 = vcmask 146432  }
 0x5ac   : > { %1439 = vmatpush.msrb.mxu1 %v1335_v4  ;;  %1459 = vmatpush.msrb.mxu2 %v1336_v5 }
 0x5ae   : > { %1440 = vmatpush.msrb.mxu1 %v3360_v21  ;;  %1460 = vmatpush.msrb.mxu2 %v3345_v42 }
 0x5af   : > { %2173 = vmatmul.msk.f32.vlgmr.msrb.gmra.mxu1 %vm3916_vm5, %v1323_v39  ;;  %2174 = vmatmul.msk.f32.vlgmr.msrb.gmra.mxu2 %vm3917_vm6, %v1323_v39  ;;  %vm3961_vm5 = vmmov %vm3957_vm4 }
 0x5b0   : > { %vm3962_vm6 = vmmov %vm3957_vm4 }
 0x619   : > { %v1482_v42 = vpop.f32.mrf.mxu3 }
 0x61a   : > { %v1483_v15 = vadd.f32 %v1482_v42, %v1420_v46 }
 0x61c   : > { %v1490_v56 = vmul.f32 0.1, %v1483_v15  ;;  %vm1487_vm2 = vcmp.gt.f32.partialorder %v1483_v15, 0.0 }
 0x61e   : > { %v1493_v19 = vsel %vm1487_vm2, %v1483_v15, %v1490_v56  ;;  %vm3965_vm2 = vmmov %vm3957_vm4 }
 0x62c   : > { %v1442_v7 = vpop.f32.mrf.mxu1 }
 0x62d   : > { %v1443_v32 = vadd.f32 %v1442_v7, %v1420_v46 }
 0x62f   : > { %vm1485_vm12 = vcmp.gt.f32.partialorder %v1443_v32, 0.0  ;;  %v1488_v8 = vmul.f32 0.1, %v1443_v32 }
 0x631   : > { %v3410_v11 = vsel %vm1485_vm12, %v1443_v32, %v1488_v8  ;;  %vm3963_vm12 = vmmov %vm3959_vm8 }
 0x632   : > { %1561 = vrot.lane.b32.xlu2 %v3410_v11, %s3918_s2  ;;  %1565 = vrot.lane.b32.xlu1 %v3410_v11, %s3919_s3  ;;  %s3924_s2 = smov 36   ;;  %v1462_v55 = vpop.f32.mrf.mxu2 }
 0x633   : > { %1495 = vrot.lane.b32.xlu0 %v3410_v11, %s3897_s17  ;;  %v1463_v60 = vadd.f32 %v1462_v55, %v1420_v46 }
 0x635   : > { %v1489_v20 = vmul.f32 0.1, %v1463_v60  ;;  %vm1486_vm3 = vcmp.gt.f32.partialorder %v1463_v60, 0.0 }
 0x637   : > { %v1492_v21 = vsel %vm1486_vm3, %v1463_v60, %v1489_v20  ;;  %vm3966_vm3 = vmmov %vm3959_vm8 }
 0x63a   : > { %1506 = vrot.lane.b32.xlu2 %v3410_v11, %s3900_s13  ;;  %1553 = vrot.lane.b32.xlu1 %v3410_v11, %s3920_s29  ;;  %s3927_s29 = smov 72  }
 0x63b   : > { %1550 = vrot.lane.b32.xlu0 %v3410_v11, %s3921_s14  ;;  %s3929_s14 = smov 112  }
 0x642   : > { %1512 = vrot.lane.b32.xlu2 %v3410_v11, %s3922_s4  ;;  %1498 = vrot.lane.b32.xlu1 %v3410_v11, %s3923_s5  ;;  %s3928_s4 = smov 70   ;;  %s3951_s5 = smov 27  }
 0x643   : > { %1556 = vrot.lane.b32.xlu0 %v3410_v11, %s3924_s2  ;;  %s3931_s2 = smov 81  }
 0x64a   : > { %1520 = vrot.lane.b32.xlu2 %v3410_v11, %s3925_s11  ;;  %1517 = vrot.lane.b32.xlu1 %v3410_v11, %s3892_s21  ;;  %s3930_s11 = smov 98  }
 0x64b   : > { %1509 = vrot.lane.b32.xlu0 %v3410_v11, %s3926_s16  ;;  %s3933_s16 = smov 102  }
 0x652   : > { %1531 = vrot.lane.b32.xlu2 %v3410_v11, %s3927_s29  ;;  %1528 = vrot.lane.b32.xlu1 %v3410_v11, %s3928_s4  ;;  %s3935_s29 = smov 74   ;;  %s3936_s4 = smov 12  }
 0x653   : > { %1501 = vrot.lane.b32.xlu0 %v3410_v11, %s3929_s14 }
 0x65a   : > { %1668 = vrot.lane.b32.xlu2 %v1493_v19, %s3930_s11  ;;  %1682 = vrot.lane.b32.xlu1 %v1493_v19, %s3931_s2  ;;  %s3950_s11 = smov 8  }
 0x65b   : > { %1523 = vrot.lane.b32.xlu0 %v3410_v11, %s3932_s27  ;;  %s3940_s27 = smov 100  }
 0x662   : > { %1674 = vrot.lane.b32.xlu2 %v1493_v19, %s3933_s16  ;;  %1685 = vrot.lane.b32.xlu1 %v1493_v19, %s3934_s30  ;;  %s3941_s30 = smov 17   ;;  %s3952_s16 = smov 65  }
 0x663   : > { %1534 = vrot.lane.b32.xlu0 %v3410_v11, %s3935_s29  ;;  %s3942_s29 = smov 119  }
 0x66a   : > { %1648 = vrot.lane.b32.xlu2 %v1493_v19, %s3873_s26  ;;  %1652 = vrot.lane.b32.xlu1 %v1493_v19, %s3936_s4  ;;  %s3944_s4 = smov 124  }
 0x66b   : > { %1679 = vrot.lane.b32.xlu0 %v1493_v19, %s3937_s15  ;;  %s3943_s15 = smov 122  }
 0x672   : > { %1657 = vrot.lane.b32.xlu2 %v1493_v19, %s3938_s8  ;;  %1663 = vrot.lane.b32.xlu1 %v1493_v19, %s3939_s9  ;;  %s3945_s8 = smov 103   ;;  %s3946_s9 = smov 105  }
 0x673   : > { %1671 = vrot.lane.b32.xlu0 %v1493_v19, %s3940_s27 }
 0x67a   : > { %1571 = vrot.lane.b32.xlu1 %v1492_v21, %s3941_s30  ;;  %1567 = vrot.lane.b32.xlu2 %v1492_v21, %s3919_s3  ;;  %s3948_s30 = smov 86   ;;  %s3949_s3 = smov 29  }
 0x67b   : > { %1660 = vrot.lane.b32.xlu0 %v1493_v19, %s3942_s29 }
 0x682   : > { %1582 = vrot.lane.b32.xlu1 %v1492_v21, %s3901_s0  ;;  %1576 = vrot.lane.b32.xlu2 %v1492_v21, %s3943_s15 }
 0x683   : > { %1579 = vrot.lane.b32.xlu0 %v1492_v21, %s3944_s4 }
 0x68a   : > { %1646 = vrot.lane.b32.xlu1 %v1492_v21, %s3873_s26  ;;  %1587 = vrot.lane.b32.xlu2 %v1492_v21, %s3945_s8  ;;  %s3953_s8 = smov 67  }
 0x68b   : > { %1590 = vrot.lane.b32.xlu0 %v1492_v21, %s3946_s9  ;;  %s3955_s9 = smov 46  }
 0x68c   : > { %v3465_v22 = vpop.permute.xlu2 %1561 }
 0x692   : > { %1598 = vrot.lane.b32.xlu1 %v1492_v21, %s3947_s28  ;;  %1601 = vrot.lane.b32.xlu2 %v1492_v21, %s3948_s30  ;;  %s3954_s28 = smov 69   ;;  %s3956_s30 = smov 31  }
 0x693   : > { %1593 = vrot.lane.b32.xlu0 %v1492_v21, %s3898_s22 }
 0x694   : > { %v1507_v3 = vpop.permute.xlu2 %1506 }
 0x69a   : > { %1634 = vrot.lane.b32.xlu1 %v1492_v21, %s3949_s3  ;;  %1642 = vrot.lane.b32.xlu2 %v1492_v21, %s3950_s11  ;;  %s3964_s11 = smov 55  }
 0x69b   : > { %1631 = vrot.lane.b32.xlu0 %v1492_v21, %s3951_s5  ;;  %s3960_s5 = smov 50  }
 0x69c   : > { %v1513_v25 = vpop.permute.xlu2 %1512 }
 0x6a2   : > { %1609 = vrot.lane.b32.xlu1 %v1492_v21, %s3952_s16  ;;  %1612 = vrot.lane.b32.xlu2 %v1492_v21, %s3953_s8  ;;  %s3971_s16 = smov 19   ;;  %s3974_s8 = smov 53  }
 0x6a3   : > { %1604 = vrot.lane.b32.xlu0 %v1492_v21, %s3893_s23 }
 0x6a4   : > { %v1521_v26 = vpop.permute.xlu2 %1520  ;;  %v3476_v2 = vpop.permute.xlu1 %1565 }
 0x6a5   : > { %v1496_v27 = vpop.permute.xlu0 %1495 }
 0x6aa   : > { %1615 = vrot.lane.b32.xlu1 %v1492_v21, %s3954_s28  ;;  %1620 = vrot.lane.b32.xlu2 %v1492_v21, %s3955_s9  ;;  %s3975_s28 = smov 51  }
 0x6ab   : > { %1637 = vrot.lane.b32.xlu0 %v1492_v21, %s3956_s30 }
 0x6ac   : > { %v1532_v33 = vpop.permute.xlu2 %1531  ;;  %v1554_v1 = vpop.permute.xlu1 %1553 }
 0x6ad   : > { %v1551_v23 = vpop.permute.xlu0 %1550 }
 0x6ae   : > { %v1559_v62 = vsel %vm3957_vm4, %v1551_v23, %v1554_v1  ;;  %vm3967_vm4 = vmmov %vm3966_vm3 }
 0x6b3   : > { %1623 = vrot.lane.b32.xlu0 %v1492_v21, %s3874_s12 }
 0x6b4   : > { %v1499_v34 = vpop.permute.xlu1 %1498  ;;  %v1669_v0 = vpop.permute.xlu2 %1668 }
 0x6b5   : > { %v1504_v6 = vsel %vm3958_vm7, %v1496_v27, %v1499_v34  ;;  %v1557_v35 = vpop.permute.xlu0 %1556  ;;  %vm3968_vm7 = vmmov %vm3966_vm3 }
 0x6b6   : > { %v1560_v12 = vsel %vm3959_vm8, %v1559_v62, %v1557_v35  ;;  %vm3969_vm8 = vmmov %vm3965_vm2 }
 0x6bb   : > { %1626 = vrot.lane.b32.xlu0 %v1492_v21, %s3960_s5  ;;  %s4046_s5 = sld [smem:[#allocation20_spill]] }
 0x6bc   : > { %v1518_v14 = vpop.permute.xlu1 %1517  ;;  %v1675_v53 = vpop.permute.xlu2 %1674 }
 0x6bd   : > { %v1526_v52 = vsel %vm3961_vm5, %v1518_v14, %v1521_v26  ;;  %v1510_v61 = vpop.permute.xlu0 %1509  ;;  %vm3970_vm5 = vmmov %vm3966_vm3 }
 0x6be   : > { %v1515_v36 = vsel %vm3962_vm6, %v1507_v3, %v1510_v61  ;;  %vm3972_vm6 = vmmov %vm3965_vm2 }
 0x6bf   : > { %v3489_v37 = vsel %vm3963_vm12, %v1515_v36, %v1513_v25  ;;  %vm3973_vm12 = vmmov %vm3966_vm3 }
 0x6c3   : > { %1545 = vrot.lane.b32.xlu0 %v3410_v11, %s3964_s11 }
 0x6c4   : > { %v1529_v10 = vpop.permute.xlu1 %1528  ;;  %v1649_v13 = vpop.permute.xlu2 %1648 }
 0x6c5   : > { %v1537_v38 = vsel %vm3965_vm2, %v1529_v10, %v1532_v33  ;;  %v1502_v39 = vpop.permute.xlu0 %1501 }
 0x6c6   : > { %v3495_v40 = vsel %vm3966_vm3, %v1504_v6, %v1502_v39 }
 0x6cc   : > { %v1658_v30 = vpop.permute.xlu2 %1657  ;;  %v1683_v9 = vpop.permute.xlu1 %1682 }
 0x6cd   : > { %v1524_v18 = vpop.permute.xlu0 %1523 }
 0x6ce   : > { %v3498_v43 = vsel %vm3967_vm4, %v1526_v52, %v1524_v18  ;;  %vm3976_vm4 = vmmov %vm3965_vm2 }
 0x6d4   : > { %v1686_v45 = vpop.permute.xlu1 %1685  ;;  %v1568_v48 = vpop.permute.xlu2 %1567 }
 0x6d5   : > { %v1535_v47 = vpop.permute.xlu0 %1534 }
 0x6d6   : > { %v3501_v49 = vsel %vm3968_vm7, %v1537_v38, %v1535_v47  ;;  %vm3977_vm7 = vmmov %vm3966_vm3 }
 0x6dc   : > { %v1653_v50 = vpop.permute.xlu1 %1652  ;;  %v1577_v54 = vpop.permute.xlu2 %1576 }
 0x6dd   : > { %v1680_v51 = vpop.permute.xlu0 %1679 }
 0x6de   : > { %v1688_v58 = vsel %vm3969_vm8, %v1680_v51, %v1683_v9  ;;  %vm3978_vm8 = vcmask 80896  }
 0x6df   : > { %v1689_v24 = vsel %vm3970_vm5, %v1688_v58, %v1686_v45  ;;  %vm3979_vm5 = vmmov %vm3965_vm2 }
 0x6e0   : > { %1766 = vrot.lane.b32.xlu2 %v1689_v24, %s3971_s16 }
 0x6e4   : > { %v1664_v59 = vpop.permute.xlu1 %1663  ;;  %v1588_v57 = vpop.permute.xlu2 %1587 }
 0x6e5   : > { %v1672_v17 = vpop.permute.xlu0 %1671 }
 0x6e6   : > { %v1677_v28 = vsel %vm3972_vm6, %v1669_v0, %v1672_v17  ;;  %vm3980_vm6 = vmmov %vm3966_vm3 }
 0x6e7   : > { %v1678_v31 = vsel %vm3973_vm12, %v1677_v28, %v1675_v53  ;;  %vm3981_vm12 = vmmov %vm3965_vm2 }
 0x6e8   : > { %1770 = vrot.lane.b32.xlu1 %v1678_v31, %s3875_s24  ;;  %1542 = vrot.lane.b32.xlu2 %v3410_v11, %s3974_s8 }
 0x6ec   : > { %v1572_v63 = vpop.permute.xlu1 %1571  ;;  %v1602_v44 = vpop.permute.xlu2 %1601 }
 0x6ed   : > { %v1661_v29 = vpop.permute.xlu0 %1660 }
 0x6ee   : > { %v1666_v41 = vsel %vm3965_vm2, %v1658_v30, %v1661_v29  ;;  %vm3982_vm2 = vmmov %vm3966_vm3 }
 0x6ef   : > { %v1667_v16 = vsel %vm3966_vm3, %v1666_v41, %v1664_v59  ;;  %vm3984_vm3 = vmmov %vm3976_vm4 }
 0x6f0   : > { %1747 = vrot.lane.b32.xlu0 %v1667_v16, %s3949_s3  ;;  %1539 = vrot.lane.b32.xlu1 %v3410_v11, %s3975_s28  ;;  %s3983_s3 = smov 43  }
 0x6f4   : > { %v1583_v4 = vpop.permute.xlu1 %1582  ;;  %v1643_v8 = vpop.permute.xlu2 %1642 }
 0x6f5   : > { %v1580_v5 = vpop.permute.xlu0 %1579 }
 0x6f6   : > { %v1585_v46 = vsel %vm3976_vm4, %v1577_v54, %v1580_v5  ;;  %vm3985_vm4 = vmmov %vm3982_vm2 }
 0x6f7   : > { %v1586_v7 = vsel %vm3977_vm7, %v1585_v46, %v1583_v4  ;;  %vm3986_vm7 = vmmov %vm3984_vm3 }
 0x6f8   : > { %1711 = vrot.lane.b32.xlu1 %v1560_v12, %s3877_s18  ;;  %1719 = vrot.lane.b32.xlu0 %v1586_v7, %s3881_s19  ;;  %s3993_s19 = smov 5  }
 0x6fc   : > { %v1647_v32 = vpop.permute.xlu1 %1646  ;;  %v1613_v1 = vpop.permute.xlu2 %1612 }
 0x6fd   : > { %v1591_v42 = vpop.permute.xlu0 %1590  ;;  %v1650_v15 = vsel %vm3978_vm8, %v1647_v32, %v1649_v13  ;;  %vm3987_vm8 = vmmov %vm3984_vm3 }
 0x6fe   : > { %v1655_v56 = vsel %vm3979_vm5, %v1643_v8, %v1650_v15  ;;  %v1596_v55 = vsel %vm3981_vm12, %v1588_v57, %v1591_v42  ;;  %vm3988_vm5 = vmmov %vm3982_vm2  ;;  %vm3990_vm12 = vcmask 121856  }
 0x6ff   : > { %v1656_v11 = vsel %vm3980_vm6, %v1655_v56, %v1653_v50  ;;  %vm3989_vm6 = vmmov %vm3982_vm2  ;;  %v1569_v12 = vsel %vm3990_vm12, %v3476_v2, %v1568_v48 }
 0x704   : > { %v1599_v19 = vpop.permute.xlu1 %1598  ;;  %v1621_v61 = vpop.permute.xlu2 %1620 }
 0x705   : > { %v1594_v60 = vpop.permute.xlu0 %1593  ;;  %v1607_v26 = vsel %vm3984_vm3, %v1599_v19, %v1602_v44 }
 0x706   : > { %v1597_v20 = vsel %vm3982_vm2, %v1596_v55, %v1594_v60  ;;  %vm3991_vm2 = vmmov %vm3984_vm3 }
 0x707   : > { %1723 = vrot.lane.b32.xlu1 %v1597_v20, %s3983_s3  ;;  %v1574_v14 = vsel %vm3991_vm2, %v3465_v22, %v1569_v12  ;;  %vm3992_vm3 = vmmov %vm3985_vm4 }
 0x708   : > { %v1575_v52 = vsel %vm3992_vm3, %v1574_v14, %v1572_v63  ;;  %vm4000_vm12 = vmmov %vm3992_vm3 }
 0x70c   : > { %v1635_v21 = vpop.permute.xlu1 %1634 }
 0x70d   : > { %v1632_v3 = vpop.permute.xlu0 %1631 }
 0x70e   : > { %v1640_v34 = vsel %vm3987_vm8, %v1632_v3, %v1635_v21  ;;  %vm3996_vm8 = vcmask 154624  }
 0x714   : > { %v1610_v25 = vpop.permute.xlu1 %1609 }
 0x715   : > { %v1605_v27 = vpop.permute.xlu0 %1604  ;;  %v1618_v23 = vsel %vm3986_vm7, %v1610_v25, %v1613_v1  ;;  %vm3995_vm7 = vmmov %vm3992_vm3 }
 0x716   : > { %v1608_v33 = vsel %vm3985_vm4, %v1607_v26, %v1605_v27  ;;  %vm3994_vm4 = vmmov %vm3991_vm2  ;;  %v1781_v27 = vld [vmem:[%s3721_s7] sm:$0xf] }
 0x717   : > { %1727 = vrot.lane.b32.xlu2 %v1608_v33, %s3878_s20  ;;  %s4001_s20 = smov 95   ;;  %vm4003_vm3 = vmmov %vm3996_vm8 }
 0x71c   : > { %v1616_v62 = vpop.permute.xlu1 %1615 }
 0x71d   : > { %v1638_v0 = vpop.permute.xlu0 %1637  ;;  %v1619_v6 = vsel %vm3988_vm5, %v1618_v23, %v1616_v62  ;;  %vm3997_vm5 = vcmask 310272  }
 0x71e   : > { %v1641_v35 = vsel %vm3989_vm6, %v1640_v34, %v1638_v0  ;;  %vm3998_vm6 = vmmov %vm3991_vm2  ;;  %vm4002_vm2 = vcmask 39936  }
 0x71f   : > { %1739 = vrot.lane.b32.xlu0 %v1641_v35, %s3942_s29  ;;  %1731 = vrot.lane.b32.xlu2 %v1619_v6, %s3931_s2  ;;  %s4040_s2 = smov 110   ;;  %s2599_s29 = smov 96  }
 0x725   : > { %v1624_v53 = vpop.permute.xlu0 %1623 }
 0x726   : > { %v1629_v36 = vsel %vm3994_vm4, %v1621_v61, %v1624_v53  ;;  %vm4004_vm4 = vmmov %vm3997_vm5 }
 0x727   : > { %1691 = vrot.lane.b32.xlu0 %v3489_v37, %s3971_s16  ;;  %1715 = vrot.lane.b32.xlu2 %v1575_v52, %s3993_s19 }
 0x72d   : > { %v1627_v10 = vpop.permute.xlu0 %1626 }
 0x72e   : > { %v1630_v13 = vsel %vm3995_vm7, %v1629_v36, %v1627_v10  ;;  %vm4005_vm7 = vcmask 195584  }
 0x72f   : > { %1703 = vrot.lane.b32.xlu0 %v3501_v49, %s3882_s25  ;;  %1735 = vrot.lane.b32.xlu1 %v1630_v13, %s3940_s27  ;;  %s3999_s25 = smov 57  }
 0x735   : > { %v1546_v9 = vpop.permute.xlu0 %1545 }
 0x737   : > { %1743 = vrot.lane.b32.xlu1 %v1656_v11, %s3873_s26  ;;  %s2597_s26 = smov 106  }
 0x73a   : > { %v1767_v22 = vpop.permute.xlu2 %1766 }
 0x73b   : > { %v1773_v2 = vsel %vm3996_vm8, %v1678_v31, %v1767_v22  ;;  %vm4006_vm8 = vcmask 351232  }
 0x73f   : > { %1695 = vrot.lane.b32.xlu1 %v3495_v40, %s3875_s24  ;;  %s4038_s24 = smov 118  }
 0x742   : > { %v1543_v39 = vpop.permute.xlu2 %1542 }
 0x75a   : > { %v1771_v37 = vpop.permute.xlu1 %1770 }
 0x75b   : > { %v1774_v38 = vsel %vm3997_vm5, %v1773_v2, %v1771_v37  ;;  %vm4007_vm5 = vcmask 80896  }
 0x75c   : > { %1776 = vrot.lane.b32.xlu2 %v1774_v38, %s3874_s12 }
 0x762   : > { %v1540_v30 = vpop.permute.xlu1 %1539  ;;  %v1748_v49 = vpop.permute.xlu0 %1747 }
 0x763   : > { %v1548_v18 = vsel %vm3998_vm6, %v1540_v30, %v1543_v39  ;;  %vm4008_vm6 = vcmask 932864  }
 0x764   : > { %1699 = vrot.lane.b32.xlu2 %v3498_v43, %s3999_s25  ;;  %v1549_v45 = vsel %vm4000_vm12, %v1548_v18, %v1546_v9  ;;  %vm4009_vm12 = vcmask 506880  }
 0x765   : > { %1707 = vrot.lane.b32.xlu1 %v1549_v45, %s4001_s20 }
 0x76a   : > { %v1712_v47 = vpop.permute.xlu1 %1711  ;;  %v1720_v58 = vpop.permute.xlu0 %1719 }
 0x771   : > { %v1728_v48 = vpop.permute.xlu2 %1727 }
 0x779   : > { %v1724_v50 = vpop.permute.xlu1 %1723  ;;  %v1732_v51 = vpop.permute.xlu2 %1731 }
 0x781   : > { %v1716_v24 = vpop.permute.xlu2 %1715 }
 0x782   : > { %v1756_v63 = vsel %vm4002_vm2, %v1712_v47, %v1716_v24  ;;  %vm4011_vm2 = vcmask 392192  }
 0x783   : > { %v1757_v16 = vsel %vm4005_vm7, %v1756_v63, %v1720_v58 }
 0x784   : > { %v1758_v5 = vsel %vm4006_vm8, %v1757_v16, %v1724_v50 }
 0x791   : > { %v1740_v59 = vpop.permute.xlu0 %1739 }
 0x799   : > { %v1692_v31 = vpop.permute.xlu0 %1691 }
 0x79a   : > { %v1750_v29 = vsel %vm4003_vm3, %v3495_v40, %v1692_v31  ;;  %v1759_v40 = vsel %vm4009_vm12, %v1758_v5, %v1728_v48  ;;  %vm4013_vm3 = vcmask 818176   ;;  %vm4021_vm12 = vcmask 883712  }
 0x7a1   : > { %v1736_v54 = vpop.permute.xlu1 %1735  ;;  %v1704_v4 = vpop.permute.xlu0 %1703 }
 0x7a9   : > { %v1744_v17 = vpop.permute.xlu1 %1743 }
 0x7aa   : > { %v1763_v32 = vsel %vm4007_vm5, %v1740_v59, %v1744_v17 }
 0x7b1   : > { %v1696_v57 = vpop.permute.xlu1 %1695 }
 0x7b2   : > { %v1751_v41 = vsel %vm4004_vm4, %v1750_v29, %v1696_v57 }
 0x7b6   : > { %v1777_v28 = vpop.permute.xlu2 %1776 }
 0x7be   : > { %v1700_v43 = vpop.permute.xlu2 %1699 }
 0x7bf   : > { %v1752_v44 = vsel %vm605_vm15, %v1751_v41, %v1700_v43  ;;  %vm4010_vm15 = vcmask 236544  }
 0x7c0   : > { %v1753_v7 = vsel %vm607_vm14, %v1752_v44, %v1704_v4  ;;  %v1764_v56 = vsel %vm4010_vm15, %v1763_v32, %v1748_v49  ;;  %vm4024_vm15 = vcmask 1031168   ;;  %v1780_v4 = vld [vmem:[%s3720_s6] sm:$0xf] }
 0x7c1   : > { %v1779_v11 = vsel %vm4011_vm2, %v1764_v56, %v1777_v28 }
 0x7c2   : > { %v3584_v60 = vsel %vm642_vm11, %v1779_v11, 0.0  ;;  %vm4014_vm11 = vcmask 1043456  }
 0x7c3   : > { %v1788_v3 = vrot.slane %v3584_v60, 4  ;;  %vm4015_vm4 = vmmov %vm4014_vm11 }
 0x7c4   : > { %vm4016_vm7 = vmmov %vm4015_vm4 }
 0x7c5   : > { %vm4017_vm8 = vmmov %vm4015_vm4 }
 0x7c6   : > { %vm4018_vm5 = vmmov %vm4015_vm4 }
 0x7d7   : > { %v1708_v46 = vpop.permute.xlu1 %1707 }
 0x7d8   : > { %v1754_v8 = vsel %vm609_vm1, %v1753_v7, %v1708_v46  ;;  %vm4012_vm1 = vcmask 662528  }
 0x7d9   : > { %v3570_v42 = vsel %vm4008_vm6, %v1754_v8, %v1712_v47  ;;  %v1760_v19 = vsel %vm4012_vm1, %v1759_v40, %v1732_v51  ;;  %vm4026_vm1 = vcmask 891904  }
 0x7da   : > { %1844 = vrot.lane.b32.xlu0 %v3570_v42, %s3902_s1  ;;  %1866 = vrot.lane.b32.xlu2 %v3570_v42, %s3893_s23  ;;  %v1786_v15 = vrot.slane %v3570_v42, 4  ;;  %v1761_v55 = vsel %vm4013_vm3, %v1760_v19, %v1736_v54 }
 0x7db   : > { %v3587_v20 = vsel %vm625_vm13, %v1761_v55, %v1740_v59 }
 0x7dc   : > { %1855 = vrot.lane.b32.xlu1 %v1786_v15, %s3892_s21  ;;  %v2413_v21 = vpack.i.bf16 %v3584_v60, %v3587_v20  ;;  %v1787_v25 = vrot.slane %v3587_v20, 4 }
 0x7de   : > { %v2433_v26 = vpack.i.bf16 %v1788_v3, %v1787_v25 }
 0x7e2   : > { %1870 = vrot.lane.b32.xlu0 %v3584_v60, %s3893_s23  ;;  %1868 = vrot.lane.b32.xlu2 %v3587_v20, %s3893_s23  ;;  %s2598_s23 = smov 104  }
 0x7e4   : > { %2414 = vrot.lane.b32.xlu1 %v2413_v21, %s3902_s1 }
 0x7ea   : > { %2419 = vrot.lane.b32.xlu0 %v2413_v21, %s3897_s17  ;;  %2424 = vrot.lane.b32.xlu2 %v2413_v21, %s3901_s0 }
 0x7ec   : > { %2434 = vrot.lane.b32.xlu1 %v2433_v26, %s3898_s22 }
 0x7f2   : > { %2439 = vrot.lane.b32.xlu0 %v2433_v26, %s3896_s10  ;;  %2429 = vrot.lane.b32.xlu2 %v2433_v26, %s3892_s21  ;;  %s2595_s21 = smov 120  }
 0x7f4   : > { %2444 = vrot.lane.b32.xlu1 %v2433_v26, %s3900_s13 }
 0x7fa   : > { %1822 = vrot.lane.b32.xlu2 %v3570_v42, %s3897_s17  ;;  %1833 = vrot.lane.b32.xlu0 %v1786_v15, %s3898_s22  ;;  %s2596_s22 = smov 116  }
 0x7fc   : > { %1800 = vrot.lane.b32.xlu1 %v3570_v42, %s3901_s0 }
 0x802   : > { %1811 = vrot.lane.b32.xlu2 %v1786_v15, %s3896_s10  ;;  %1789 = vrot.lane.b32.xlu0 %v1786_v15, %s3900_s13  ;;  %s2469_s10 = scalar_lea.hbm %s4046_s5, 24 }
 0x804   : > { %1888 = vperm.xlu1 %2366, %v1781_v27  }
 0x834   : > { %v1867_v33 = vpop.permute.xlu2 %1866 }
 0x83c   : > { %v1869_v1 = vpop.permute.xlu2 %1868 }
 0x83d   : > { %v1872_v23 = vsel %vm737_vm0, %v1867_v33, %v1869_v1 }
 0x83e   : > { %2177 = vmatpush.msk.msra.mxu1 %vm4014_vm11, %v1872_v23  ;;  %vm1891_vm11 = vcmask 293888  }
 0x844   : > { %v3616_v62 = vpop.permute.xlu2 %2424 }
 0x845   : > { %v2427_v58 = vunpack.i.h.bf16 %v3616_v62  ;;  %v2426_v54 = vunpack.i.l.bf16 %v3616_v62 }
 0x847   : > { %v1807_v63 = vsel %vm4024_vm15, %v2426_v54, %v2427_v58 }
 0x84c   : > { %v1845_v34 = vpop.permute.xlu0 %1844  ;;  %v2430_v6 = vpop.permute.xlu2 %2429 }
 0x84d   : > { %v2431_v35 = vunpack.i.l.bf16 %v2430_v6  ;;  %v2432_v14 = vunpack.i.h.bf16 %v2430_v6 }
 0x84e   : > { %v1856_v0 = vpop.permute.xlu1 %1855 }
 0x84f   : > { %v1861_v10 = vsel %vm725_vm9, %v1856_v0, %v2431_v35  ;;  %v1862_v37 = vsel %vm725_vm9, %v2431_v35, %v2432_v14 }
 0x854   : > { %v1871_v12 = vpop.permute.xlu0 %1870  ;;  %v1823_v59 = vpop.permute.xlu2 %1822 }
 0x855   : > { %v1873_v53 = vsel %vm737_vm0, %v1869_v1, %v1871_v12  ;;  %2181 = vmatpush.msk.msra.mxu3 %vm4015_vm4, %v1871_v12  ;;  %vm4019_vm0 = vmmov %vm4015_vm4 }
 0x856   : > { %2179 = vmatpush.msk.msra.mxu2 %vm4016_vm7, %v1873_v53  ;;  %v2415_v52 = vpop.permute.xlu1 %2414  ;;  %vm4020_vm6 = vmmov %vm4019_vm0  ;;  %vm4029_vm7 = vcmask 1039360  }
 0x857   : > { %v2417_v61 = vunpack.i.h.bf16 %v2415_v52  ;;  %v2416_v36 = vunpack.i.l.bf16 %v2415_v52  ;;  %vm4023_vm9 = vmmov %vm4019_vm0 }
 0x858   : > { %vm4025_vm2 = vmmov %vm4019_vm0 }
 0x859   : > { %v1885_v13 = vsel %vm4017_vm8, %v2417_v61, %v2432_v14  ;;  %v1850_v22 = vsel %vm713_vm10, %v1845_v34, %v2416_v36  ;;  %v1851_v2 = vsel %vm713_vm10, %v2416_v36, %v2417_v61  ;;  %vm4022_vm10 = vcmask 875520   ;;  %vm4027_vm3 = vmmov %vm4019_vm0 }
 0x85a   : > { %1953 = vmatpush.msra.mxu3 %v1885_v13  ;;  %v1883_v38 = vsel %vm4018_vm5, %v1850_v22, %v1861_v10  ;;  %v1884_v39 = vsel %vm4019_vm0, %v1851_v2, %v1862_v37  ;;  %vm4028_vm4 = vmmov %vm4019_vm0 }
 0x85b   : > { %1913 = vmatpush.msra.mxu1 %v1883_v38  ;;  %1933 = vmatpush.msra.mxu2 %v1884_v39  ;;  %vm4030_vm8 = vmmov %vm4019_vm0 }
 0x85c   : > { %v2420_v30 = vpop.permute.xlu0 %2419  ;;  %vm4031_vm5 = vmmov %vm4022_vm10  ;;  %v1812_v15 = vpop.permute.xlu2 %1811 }
 0x85d   : > { %v2422_v9 = vunpack.i.h.bf16 %v2420_v30  ;;  %v2421_v18 = vunpack.i.l.bf16 %v2420_v30  ;;  %vm4032_vm0 = vmmov %vm4021_vm12 }
 0x85e   : > { %v2435_v45 = vpop.permute.xlu1 %2434 }
 0x85f   : > { %v2437_v47 = vunpack.i.h.bf16 %v2435_v45  ;;  %v2436_v48 = vunpack.i.l.bf16 %v2435_v45  ;;  %v1829_v50 = vsel %vm4021_vm12, %v2421_v18, %v2422_v9  ;;  %v1828_v40 = vsel %vm4032_vm0, %v1823_v59, %v2421_v18  ;;  %vm4034_vm12 = vmmov %vm4024_vm15 }
 0x860   : > { %vm4037_vm15 = vmmov %vm4029_vm7  ;;  %vm2027_vm0 = vcmask 277504  }
 0x861   : > { %v1882_v49 = vsel %vm4020_vm6, %v2422_v9, %v2437_v47  ;;  %v1840_v51 = vsel %vm4022_vm10, %v2436_v48, %v2437_v47  ;;  %vm4033_vm6 = vmmov %vm4025_vm2 }
 0x862   : > { %1954 = vmatpush.msra.mxu3 %v1882_v49  ;;  %v1881_v24 = vsel %vm4023_vm9, %v1829_v50, %v1840_v51  ;;  %vm4035_vm10 = vmmov %vm4026_vm1 }
 0x863   : > { %1934 = vmatpush.msra.mxu2 %v1881_v24  ;;  %vm4036_vm9 = vmmov %vm4025_vm2 }
 0x864   : > { %v2440_v17 = vpop.permute.xlu0 %2439 }
 0x865   : > { %v2442_v28 = vunpack.i.h.bf16 %v2440_v17  ;;  %v2441_v31 = vunpack.i.l.bf16 %v2440_v17 }
 0x866   : > { %v2445_v57 = vpop.permute.xlu1 %2444 }
 0x867   : > { %v2447_v43 = vunpack.i.h.bf16 %v2445_v57  ;;  %v2446_v29 = vunpack.i.l.bf16 %v2445_v57  ;;  %v1879_v41 = vsel %vm4025_vm2, %v2427_v58, %v2442_v28  ;;  %v1818_v16 = vsel %vm4026_vm1, %v2441_v31, %v2442_v28 }
 0x868   : > { %1955 = vmatpush.msra.mxu3 %v1879_v41  ;;  %v1878_v44 = vsel %vm4027_vm3, %v1807_v63, %v1818_v16  ;;  %v1817_v55 = vsel %vm4035_vm10, %v1812_v15, %v2441_v31  ;;  %vm1991_vm10 = vcmask 949248  }
 0x869   : > { %1935 = vmatpush.msra.mxu2 %v1878_v44  ;;  %v1876_v5 = vsel %vm4028_vm4, %v3584_v60, %v2447_v43  ;;  %v1796_v46 = vsel %vm4029_vm7, %v2446_v29, %v2447_v43  ;;  %vm4043_vm4 = vcmask 64512   ;;  %vm2038_vm7 = vcmask 203776  }
 0x86a   : > { %1956 = vmatpush.msra.mxu3 %v1876_v5  ;;  %v1875_v7 = vsel %vm4030_vm8, %v3587_v20, %v1796_v46  ;;  %vm2040_vm8 = vcmask 343040  }
 0x86b   : > { %1936 = vmatpush.msra.mxu2 %v1875_v7  ;;  %2182 = vmatmul.msk.f32.vlgmr.msra.gmra.mxu3 %vm1891_vm11, %v1780_v4 }
 0x86c   : > { %v1834_v32 = vpop.permute.xlu0 %1833  ;;  %2180 = vmatmul.msk.f32.vlgmr.msra.gmra.mxu2 %vm1891_vm11, %v1780_v4 }
 0x86d   : > { %v1839_v8 = vsel %vm4031_vm5, %v1834_v32, %v2436_v48  ;;  %vm2042_vm5 = vcmask 482304  }
 0x86e   : > { %v1801_v56 = vpop.permute.xlu1 %1800  ;;  %v1880_v11 = vsel %vm4033_vm6, %v1828_v40, %v1839_v8  ;;  %vm2029_vm6 = vcmask 416768  }
 0x86f   : > { %v1806_v19 = vsel %vm4034_vm12, %v1801_v56, %v2426_v54  ;;  %1914 = vmatpush.msra.mxu1 %v1880_v11  ;;  %vm4045_vm12 = vcmask 138240  }
 0x870   : > { %v1877_v60 = vsel %vm4036_vm9, %v1806_v19, %v1817_v55  ;;  %vm2017_vm9 = vcmask 834560  }
 0x871   : > { %1915 = vmatpush.msra.mxu1 %v1877_v60 }
 0x874   : > { %v1790_v20 = vpop.permute.xlu0 %1789 }
 0x875   : > { %v1795_v21 = vsel %vm4037_vm15, %v1790_v20, %v2446_v29  ;;  %vm2045_vm15 = vcmask 760832  }
 0x876   : > { %v1874_v3 = vsel %vm4025_vm2, %v3570_v42, %v1795_v21  ;;  %v1889_v25 = vpop.permute.xlu1 %1888  ;;  %vm2031_vm2 = vcmask 556032  }
 0x877   : > { %1916 = vmatpush.msra.mxu1 %v1874_v3 }
 0x878   : > { %2178 = vmatmul.msk.f32.vlgmr.msra.gmra.mxu1 %vm1891_vm11, %v1780_v4 }
 0x8ee   : > { %v1958_v62 = vpop.f32.mrf.mxu3 }
 0x8ef   : > { %v1938_v23 = vpop.f32.mrf.mxu2  ;;  %v1959_v0 = vadd.f32 %v1958_v62, %v1889_v25 }
 0x8f0   : > { %v1939_v34 = vadd.f32 %v1938_v23, %v1889_v25 }
 0x8f1   : > { %v1966_v6 = vmul.f32 0.1, %v1959_v0  ;;  %vm1963_vm11 = vcmp.gt.f32.partialorder %v1959_v0, 0.0 }
 0x8f2   : > { %v1965_v42 = vmul.f32 0.1, %v1939_v34  ;;  %vm1962_vm3 = vcmp.gt.f32.partialorder %v1939_v34, 0.0 }
 0x8f3   : > { %v1969_v12 = vsel %vm1963_vm11, %v1959_v0, %v1966_v6  ;;  %vm2053_vm11 = vcmask 130048  }
 0x8f4   : > { %v1968_v35 = vsel %vm1962_vm3, %v1939_v34, %v1965_v42  ;;  %vm2047_vm3 = vcmask 900096  }
 0x8f5   : > { %v1918_v26 = vpop.f32.mrf.mxu1 }
 0x8f6   : > { %v1919_v27 = vadd.f32 %v1918_v26, %v1889_v25 }
 0x8f8   : > { %vm1961_vm1 = vcmp.gt.f32.partialorder %v1919_v27, 0.0  ;;  %v1964_v33 = vmul.f32 0.1, %v1919_v27 }
 0x8fa   : > { %v1967_v1 = vsel %vm1961_vm1, %v1919_v27, %v1964_v33  ;;  %vm2033_vm1 = vcmask 695296  }
 0x8fb   : > { %1980 = vrot.lane.b32.xlu1 %v1967_v1, %s2595_s21  ;;  %1977 = vrot.lane.b32.xlu0 %v1967_v1, %s3943_s15 }
 0x8fc   : > { %1971 = vrot.lane.b32.xlu2 %v1967_v1, %s3901_s0  ;;  %s4039_s0 = smov 102  }
 0x903   : > { %1987 = vrot.lane.b32.xlu1 %v1967_v1, %s2596_s22  ;;  %1983 = vrot.lane.b32.xlu0 %v1967_v1, %s4038_s24 }
 0x904   : > { %1974 = vrot.lane.b32.xlu2 %v1967_v1, %s3944_s4 }
 0x90b   : > { %1997 = vrot.lane.b32.xlu1 %v1968_v35, %s3929_s14  ;;  %1994 = vrot.lane.b32.xlu0 %v1968_v35, %s3877_s18  ;;  %s4041_s14 = smov 98   ;;  %s4042_s18 = sld [smem:[#allocation6_spill]] }
 0x90c   : > { %2015 = vrot.lane.b32.xlu2 %v1969_v12, %s4039_s0 }
 0x913   : > { %2006 = vrot.lane.b32.xlu1 %v1968_v35, %s2597_s26  ;;  %2003 = vrot.lane.b32.xlu0 %v1968_v35, %s3897_s17  ;;  %s4044_s17 = sld [smem:[#allocation9_spill]] }
 0x914   : > { %2020 = vrot.lane.b32.xlu2 %v1969_v12, %s3940_s27  ;;  %s311_s27 = sand.u32 1, %s4042_s18  }
 0x915   : > { %s2187_s4 = smul.u32 12, %s311_s27  ;;  %s2064_s19 = scalar_lea.sflag [#allocation3], %s311_s27 }
 0x917   : > { %s313_s16 = scalar_lea.vmem [#allocation2], %s2187_s4 }
 0x918   : > { %s2077_s8 = sshll.u32 %s313_s16, 4  ;;  %s2078_s8 = int_to_ptr.vmem [resolvable:$true] %s2077_s8 }
 0x919   : > { %s2189_s15 = smul.u32 12, %s4044_s17 }
 0x91b   : > { %2013 = vrot.lane.b32.xlu1 %v1968_v35, %s4039_s0  ;;  %2009 = vrot.lane.b32.xlu0 %v1968_v35, %s2598_s23  ;;  %s2075_s11 = scalar_lea.hbm %s4046_s5, %s2189_s15 }
 0x91c   : > { %2000 = vrot.lane.b32.xlu2 %v1968_v35, %s4040_s2  ;;  %s2079_s3 = sshll.u32 %s2075_s11, 4  ;;  %s2080_s3 = int_to_ptr.hbm [resolvable:$true] %s2079_s3 }
 0x91d   : > { %s2463_s25 = sshra.s32 %s2080_s3, 4  ;;  %s2464_s25 = int_to_ptr.hbm [resolvable:$true] %s2463_s25 }
 0x91e   : > { %s2465_s20 = scalar_lea.hbm %s2464_s25, 12  ;;  %p2470_p0 = scmp.lt.s32.totalorder %s2464_s25, %s4046_s5 }
 0x91f   : > { %p2466_p11 = scmp.ne.s32.totalorder %s2464_s25, %s2465_s20  ;;  %p2471_p1 = scmp.lt.s32.totalorder %s2469_s10, %s2465_s20 }
 0x921   : > { %p2467_p12 = pnand %p2466_p11, %p2683_p5  ;;  %p2472_p2 = por %p2471_p1, %p2470_p0 }
 0x923   : > { %2050 = vrot.lane.b32.xlu1 %v1969_v12, %s2599_s29  ;;  %2023 = vrot.lane.b32.xlu0 %v1969_v12, %s4041_s14  ;;  %p2468_p13 = pneg %p2467_p12 }
 0x924   : > { %1989 = vrot.lane.b32.xlu2 %v1968_v35, %s2596_s22 }
 0x925   : > { %p2473_p3 = pnand %p2472_p2, %p2468_p13 }
 0x956   : > { %v1972_v14 = vpop.permute.xlu2 %1971 }
 0x957   : > { %v2026_v49 = vsel %vm4045_vm12, %v1967_v1, %v1972_v14 }
 0x95e   : > { %v1975_v53 = vpop.permute.xlu2 %1974 }
 0x95f   : > { %v2028_v51 = vsel %vm2027_vm0, %v2026_v49, %v1975_v53 }
 0x966   : > { %v2016_v36 = vpop.permute.xlu2 %2015 }
 0x96d   : > { %v1981_v52 = vpop.permute.xlu1 %1980  ;;  %v1978_v61 = vpop.permute.xlu0 %1977 }
 0x96e   : > { %v2021_v22 = vpop.permute.xlu2 %2020  ;;  %v2030_v59 = vsel %vm2029_vm6, %v2028_v51, %v1978_v61 }
 0x96f   : > { %v2032_v31 = vsel %vm2031_vm2, %v2030_v59, %v1981_v52 }
 0x975   : > { %v1988_v10 = vpop.permute.xlu1 %1987  ;;  %v1984_v13 = vpop.permute.xlu0 %1983 }
 0x976   : > { %v2001_v38 = vpop.permute.xlu2 %2000  ;;  %v2034_v57 = vsel %vm2033_vm1, %v2032_v31, %v1984_v13 }
 0x97d   : > { %v1998_v2 = vpop.permute.xlu1 %1997  ;;  %v1995_v37 = vpop.permute.xlu0 %1994 }
 0x97e   : > { %v2037_v9 = vsel %vm4043_vm4, %v1995_v37, %v1998_v2  ;;  %v1990_v58 = vpop.permute.xlu2 %1989  ;;  %vm2061_vm4 = vcmask 265216  }
 0x97f   : > { %v2039_v18 = vsel %vm2038_vm7, %v2037_v9, %v2001_v38  ;;  %v1992_v17 = vsel %vm1991_vm10, %v1988_v10, %v1990_v58  ;;  %vm4049_vm7 = vcmask 1043456  }
 0x980   : > { %v2035_v63 = vsel %vm2017_vm9, %v2034_v57, %v1992_v17 }
 0x981   : > { %v2036_v5 = vsel %vm625_vm13, %v2035_v63, %v1995_v37 }
 0x985   : > { %v2007_v39 = vpop.permute.xlu1 %2006  ;;  %v2004_v30 = vpop.permute.xlu0 %2003 }
 0x986   : > { %v2041_v45 = vsel %vm2040_vm8, %v2039_v18, %v2004_v30 }
 0x987   : > { %v2043_v50 = vsel %vm2042_vm5, %v2041_v45, %v2007_v39 }
 0x98d   : > { %v2014_v47 = vpop.permute.xlu1 %2013  ;;  %v2010_v48 = vpop.permute.xlu0 %2009 }
 0x98e   : > { %v2018_v54 = vsel %vm2017_vm9, %v2014_v47, %v2016_v36  ;;  %v2044_v24 = vsel %vm607_vm14, %v2043_v50, %v2010_v48  ;;  %vm4048_vm14 = vcmask 1039360  }
 0x98f   : > { %v2046_v28 = vsel %vm2045_vm15, %v2044_v24, %v2018_v54 }
 0x990   : > { %v2048_v41 = vsel %vm2047_vm3, %v2046_v28, %v2021_v22 }
 0x995   : > { %v2051_v43 = vpop.permute.xlu1 %2050  ;;  %v2024_v29 = vpop.permute.xlu0 %2023 }
 0x996   : > { %v2049_v16 = vsel %vm4048_vm14, %v2048_v41, %v2024_v29  ;;  %v2054_v44 = vsel %vm2053_vm11, %v2024_v29, %v2051_v43 }
 0x997   : > { %v2057_v4 = vrot.slane %v2049_v16, 4  ;;  %2062 = vst.msk [vmem:[%s313_s16 + $0x8] sm:$0xf] %vm2061_vm4, %v2054_v44 }
 0x999   : > { %v2058_v46 = vsel %vm4049_vm7, %v2036_v5, %v2057_v4 }
 0x99a   : > { %2060 = vst [vmem:[%s313_s16] sm:$0xff] %v2058_v46 }
 0x99b   : > { %2476 = shalt.err (!%p2473_p3)
}
 0x99c   : > { %2190 = dma.vmem_to_hbm [thread:$0]  (%p2683_p5), %s2078_s8, 192, %s2080_s3, %s2064_s19  }
 0x99d PF: > { %s4050_s22 = sld [smem:[#allocation8_spill]] }
 0x99e   : > { %s4051_s24 = sld [smem:[#allocation5_spill]] }
 0x9a3   : > { %p2196_p4 = scmp.ge.s32.totalorder %s4050_s22, 2 }
 0x9a4   : > { %s2091_s26 = sand.u32 1, %s4051_s24  }
 0x9a5   : > { %p2193_p7 = pnand %p2196_p4, %p2687_p6  ;;  %s2092_s23 = scalar_lea.sflag [#allocation3], %s2091_s26 }
 0x9a7   : > { %p2194_p8 = pneg %p2193_p7 }
 0x9a9   : > { %2494 = dma.done.wait (%p2194_p8), %s2092_s23, 192  }
 0x9aa   : > { %2496 = vsyncadd (%p2194_p8), %s2092_s23, 4294967104  ;;  %s4053_s30 = sld [smem:[#allocation10_spill]] }
 0x9ab   : > { %s4054_s27 = sld [smem:[#allocation6_spill]] }
 0x9ac   : > { %s4055_s28 = sld [smem:[#allocation7_spill]] }
 0x9ad   : > { %s4056_s29 = sld [smem:[#allocation11_spill]] }
 0x9b0   : > { %p18_p9 = scmp.ge.s32.totalorder %s4053_s30, 4  }
 0x9b2   :  { %20 = sbr.rel (!%p18_p9) target bundleno = 11 (0xb), region = 90 }
 0x9b7   :  { %2098 = vsyncpa [#allocation3], 1 }
 0x9b8   :  { %2100 = vsyncpa [#allocation3 + $0x1], 1 }

</bundles_post_ra>
